<compile_context>
chip_gen: v7x
topology: tpu7x:2x2x1
jax: 0.10.0
libtpu: 0.0.40
codegen_flags: <defaults>
</compile_context>

<pallas_src>
import numpy as np
import jax
import jax.numpy as jnp
from jax.experimental import pallas as pl
from jax.experimental.pallas import tpu as pltpu

LANE = 128          # lane width: hidden/input feature dims padded to this
MAX_CHILDREN = 8    # fixed (zero-padded) child count per node
TILE_N = 8          # nodes per grid step (one sublane tile)


def _round_up(x, m):
    return ((x + m - 1) // m) * m


def _sigmoid(x):
    # exp goes to the EUP; exact reciprocal keeps the numerical check tight
    # (pl.reciprocal(..., approx=True) is also fine if tolerance allows).
    return pl.reciprocal(1.0 + jnp.exp(-x), approx=False)


# ---------------------------------------------------------------------------
# Pallas kernel: one tile of TILE_N nodes of a single tree level.
# Weights are VMEM-resident (constant index_maps across the node-tile grid).
# ---------------------------------------------------------------------------
def level_kernel(x_ref, s_ref, cc_ref, ch_ref,
                 e2h_ref, xw_ref, xb_ref, hw_ref, hb_ref, fhw_ref, fhb_ref,
                 c_ref, h_ref):
    hp = c_ref.shape[-1]
    mc = cc_ref.shape[0]

    # sum_k h_k @ E[w_k]  ==  S_flat @ E_flat  (S_flat is one-hot scattered h)
    hsum = jnp.dot(s_ref[...], e2h_ref[...],
                   preferred_element_type=jnp.float32)          # (TILE_N, H)

    # fused x-side matmul: [ioux | fx] in one (TILE_N, I) @ (I, 4H)
    xg = (jnp.dot(x_ref[...], xw_ref[...],
                  preferred_element_type=jnp.float32)
          + xb_ref[...])                                        # (TILE_N, 4H)

    iou = (xg[:, :3 * hp] + hb_ref[...]
           + jnp.dot(hsum, hw_ref[...],
                     preferred_element_type=jnp.float32))       # (TILE_N, 3H)
    i_g = _sigmoid(iou[:, 0 * hp:1 * hp])
    o_g = _sigmoid(iou[:, 1 * hp:2 * hp])
    u_g = jnp.tanh(iou[:, 2 * hp:3 * hp])

    fx_t = xg[:, 3 * hp:4 * hp]                                 # (TILE_N, H)
    fc_sum = jnp.zeros_like(fx_t)
    for k in range(mc):   # static unroll; padded children have c == 0
        f_k = _sigmoid(jnp.dot(ch_ref[k], fhw_ref[...],
                               preferred_element_type=jnp.float32)
                       + fhb_ref[...] + fx_t)                   # (TILE_N, H)
        fc_sum = fc_sum + f_k * cc_ref[k]

    c = i_g * u_g + fc_sum
    c_ref[...] = c
    h_ref[...] = o_g * jnp.tanh(c)


def _level_pallas(x, s_flat, cc_t, ch_t, pp):
    n_pad, i_pad = x.shape
    h_pad = pp["fhw"].shape[0]
    mc = cc_t.shape[0]
    shp = s_flat.shape[1]
    tiles = n_pad // TILE_N

    node2 = lambda i: (i, 0)
    const2 = lambda i: (0, 0)

    in_specs = [
        pl.BlockSpec((TILE_N, i_pad), node2),                      # x
        pl.BlockSpec((TILE_N, shp), node2),                        # S_flat
        pl.BlockSpec((mc, TILE_N, h_pad), lambda i: (0, i, 0)),    # child_c
        pl.BlockSpec((mc, TILE_N, h_pad), lambda i: (0, i, 0)),    # child_h
        pl.BlockSpec((shp, h_pad), const2),                        # e2h_flat
        pl.BlockSpec((i_pad, 4 * h_pad), const2),                  # xw (fused)
        pl.BlockSpec((1, 4 * h_pad), const2),                      # xb (fused)
        pl.BlockSpec((h_pad, 3 * h_pad), const2),                  # iouh_w
        pl.BlockSpec((1, 3 * h_pad), const2),                      # iouh_b
        pl.BlockSpec((h_pad, h_pad), const2),                      # fh_w
        pl.BlockSpec((1, h_pad), const2),                          # fh_b
    ]
    out_specs = [pl.BlockSpec((TILE_N, h_pad), node2),
                 pl.BlockSpec((TILE_N, h_pad), node2)]

    flops = 2 * n_pad * (shp * h_pad + i_pad * 4 * h_pad
                         + h_pad * 3 * h_pad + mc * h_pad * h_pad)
    bytes_accessed = 4 * (n_pad * (i_pad + shp + 2 * mc * h_pad + 2 * h_pad)
                          + shp * h_pad + i_pad * 4 * h_pad
                          + h_pad * 3 * h_pad + h_pad * h_pad + 8 * h_pad)
    cost = pl.CostEstimate(flops=int(flops),
                           transcendentals=int(n_pad * h_pad * (4 + 2 * mc)),
                           bytes_accessed=int(bytes_accessed))

    return pl.pallas_call(
        level_kernel,
        out_shape=(jax.ShapeDtypeStruct((n_pad, h_pad), jnp.float32),
                   jax.ShapeDtypeStruct((n_pad, h_pad), jnp.float32)),
        grid_spec=pltpu.PrefetchScalarGridSpec(
            num_scalar_prefetch=0, grid=(tiles,),
            in_specs=in_specs, out_specs=out_specs),
        compiler_params=pltpu.CompilerParams(
            dimension_semantics=("parallel",)),   # node tiles are independent
        cost_estimate=cost,
    )(x, s_flat, cc_t, ch_t, pp["e2h_flat"], pp["xw"], pp["xb"],
      pp["hw"], pp["hb"], pp["fhw"], pp["fhb"])


# ---------------------------------------------------------------------------
# Per-level device step (single jitted dispatch per level).
# ---------------------------------------------------------------------------
@jax.jit
def level_step(node_idx, child_idx, child_w, inputs_ext, c_all, h_all, pp):
    h_pad = c_all.shape[-1]
    steps = pp["e2h_flat"].shape[0] // h_pad

    x_lvl = inputs_ext[node_idx]                           # (N_pad, I_pad)
    cc = c_all[child_idx]                                  # (N_pad, MC, H_pad)
    ch = h_all[child_idx]

    # exact one-hot scatter of child h vectors by edge type
    oh = jax.nn.one_hot(child_w, steps, dtype=ch.dtype)    # (N_pad, MC, steps)
    s = jnp.einsum('nks,nkh->nsh', oh, ch,
                   precision=jax.lax.Precision.HIGHEST)    # (N_pad, steps, H)
    s_flat = s.reshape(ch.shape[0], steps * h_pad)

    cc_t = jnp.transpose(cc, (1, 0, 2))                    # (MC, N_pad, H_pad)
    ch_t = jnp.transpose(ch, (1, 0, 2))

    c_lvl, h_lvl = _level_pallas(x_lvl, s_flat, cc_t, ch_t, pp)

    c_all = c_all.at[node_idx].set(c_lvl)
    h_all = h_all.at[node_idx].set(h_lvl)
    return c_all, h_all


# ---------------------------------------------------------------------------
# Host-side tree scheduling (numpy index tables, one set per level).
# ---------------------------------------------------------------------------
class Tree:
    def __init__(self, idx, children=()):
        self.idx = idx
        self.children = list(children)


def build_levels(root, edge_types, num_nodes, steps):
    level_of = {}

    def visit(t):
        if not t.children:
            level_of[id(t)] = 0
        else:
            for ch in t.children:
                visit(ch)
            level_of[id(t)] = 1 + max(level_of[id(ch)] for ch in t.children)

    visit(root)

    by_level = {}

    def collect(t):
        by_level.setdefault(level_of[id(t)], []).append(t)
        for ch in t.children:
            collect(ch)

    collect(root)

    n_levels = max(by_level) + 1
    max_nodes = max(len(v) for v in by_level.values())
    n_pad = _round_up(max(max_nodes, TILE_N), TILE_N)
    dummy_gather = num_nodes        # state row kept at exactly zero forever
    dummy_scatter = num_nodes + 1   # scratch row receiving padded-node writes

    levels = []
    for lvl in range(n_levels):
        node_idx = np.full((n_pad,), dummy_scatter, np.int32)
        child_idx = np.full((n_pad, MAX_CHILDREN), dummy_gather, np.int32)
        child_w = np.zeros((n_pad, MAX_CHILDREN), np.int32)
        for r, t in enumerate(by_level[lvl]):
            assert len(t.children) <= MAX_CHILDREN, "increase MAX_CHILDREN"
            node_idx[r] = t.idx
            for k, ch in enumerate(t.children):
                child_idx[r, k] = ch.idx
                w = int(edge_types[ch.idx])
                assert 0 <= w < steps, "edge type out of range for e2h"
                child_w[r, k] = w
        levels.append((jnp.asarray(node_idx), jnp.asarray(child_idx),
                       jnp.asarray(child_w)))
    return levels


def tree_forward_kernel(root, inputs, edge_types, pp, num_nodes):
    i_pad = pp["xw"].shape[0]
    h_pad = pp["fhw"].shape[0]
    steps = pp["e2h_flat"].shape[0] // h_pad
    levels = build_levels(root, edge_types, num_nodes, steps)

    inputs_ext = jnp.zeros((num_nodes + 2, i_pad), jnp.float32)
    inputs_ext = inputs_ext.at[:num_nodes, :inputs.shape[1]].set(inputs)
    c_all = jnp.zeros((num_nodes + 2, h_pad), jnp.float32)
    h_all = jnp.zeros((num_nodes + 2, h_pad), jnp.float32)

    for node_idx, child_idx, child_w in levels:
        c_all, h_all = level_step(node_idx, child_idx, child_w,
                                  inputs_ext, c_all, h_all, pp)
    return c_all, h_all


# ---------------------------------------------------------------------------
# Pure-JAX reference (unpadded), mirroring FullTreeLSTM.node_forward
# ---------------------------------------------------------------------------
def _sigmoid_ref(x):
    return 1.0 / (1.0 + jnp.exp(-x))


def ref_node_forward(x, child_c, child_h, child_w, p):
    hi = jax.lax.Precision.HIGHEST
    child_h_sum = sum(jnp.dot(child_h[k:k + 1], p["e2h"][child_w[k]], precision=hi)
                      for k in range(child_h.shape[0]))
    iou = (jnp.dot(x, p["ioux_w"], precision=hi) + p["ioux_b"]
           + jnp.dot(child_h_sum, p["iouh_w"], precision=hi) + p["iouh_b"])
    H = p["fh_w"].shape[0]
    i_g = _sigmoid_ref(iou[:, 0 * H:1 * H])
    o_g = _sigmoid_ref(iou[:, 1 * H:2 * H])
    u_g = jnp.tanh(iou[:, 2 * H:3 * H])
    f = _sigmoid_ref(jnp.dot(child_h, p["fh_w"], precision=hi) + p["fh_b"]
                     + jnp.dot(x, p["fx_w"], precision=hi) + p["fx_b"])
    fc = f * child_c
    c = i_g * u_g + jnp.sum(fc, axis=0, keepdims=True)
    h = o_g * jnp.tanh(c)
    return c, h


def tree_forward_ref(tree, inputs, edge_types, p):
    states = [tree_forward_ref(ch, inputs, edge_types, p) for ch in tree.children]
    H = p["fh_w"].shape[0]
    if not tree.children:
        cc = jnp.zeros((1, H), jnp.float32)
        chh = jnp.zeros((1, H), jnp.float32)
        cw = [0]
    else:
        cc = jnp.concatenate([s[0] for s in states], axis=0)
        chh = jnp.concatenate([s[1] for s in states], axis=0)
        cw = [int(edge_types[ch.idx]) for ch in tree.children]
    x = inputs[tree.idx:tree.idx + 1]
    return ref_node_forward(x, cc, chh, cw, p)


# ---------------------------------------------------------------------------
# Parameter construction + padding (weights pre-transposed to (in, out)).
# ---------------------------------------------------------------------------
def make_params(key, input_size, hidden_size, steps):
    ks = jax.random.split(key, 9)
    s = 0.1
    return dict(
        e2h=jax.random.normal(ks[0], (steps, hidden_size, hidden_size)) * s,
        ioux_w=jax.random.normal(ks[1], (input_size, 3 * hidden_size)) * s,
        ioux_b=jax.random.normal(ks[2], (3 * hidden_size,)) * s,
        iouh_w=jax.random.normal(ks[3], (hidden_size, 3 * hidden_size)) * s,
        iouh_b=jax.random.normal(ks[4], (3 * hidden_size,)) * s,
        fx_w=jax.random.normal(ks[5], (input_size, hidden_size)) * s,
        fx_b=jax.random.normal(ks[6], (hidden_size,)) * s,
        fh_w=jax.random.normal(ks[7], (hidden_size, hidden_size)) * s,
        fh_b=jax.random.normal(ks[8], (hidden_size,)) * s,
    )


def pad_params(p, input_size, hidden_size, steps):
    i_pad = _round_up(input_size, LANE)
    h_pad = _round_up(hidden_size, LANE)
    dh = h_pad - hidden_size

    def pad2(a, rows, cols):
        return jnp.pad(a, ((0, rows - a.shape[0]), (0, cols - a.shape[1])))

    # pad each of the [i|o|u] thirds independently so lane slices at h_pad
    # boundaries stay aligned with the original gates.
    ioux_w3 = jnp.pad(p["ioux_w"].reshape(input_size, 3, hidden_size),
                      ((0, i_pad - input_size), (0, 0), (0, dh)))
    iouh_w3 = jnp.pad(p["iouh_w"].reshape(hidden_size, 3, hidden_size),
                      ((0, dh), (0, 0), (0, dh)))
    ioux_b3 = jnp.pad(p["ioux_b"].reshape(3, hidden_size), ((0, 0), (0, dh)))
    iouh_b3 = jnp.pad(p["iouh_b"].reshape(3, hidden_size), ((0, 0), (0, dh)))

    fx_w = pad2(p["fx_w"], i_pad, h_pad)
    fx_b = jnp.pad(p["fx_b"], (0, dh))

    # fused x-side weight/bias: [ i | o | u | f ]  ->  one (I, 4H) matmul
    xw = jnp.concatenate([ioux_w3.reshape(i_pad, 3 * h_pad), fx_w], axis=1)
    xb = jnp.concatenate([ioux_b3.reshape(3 * h_pad), fx_b]).reshape(1, 4 * h_pad)

    hw = iouh_w3.reshape(h_pad, 3 * h_pad)
    hb = iouh_b3.reshape(1, 3 * h_pad)

    e2h = jnp.pad(p["e2h"], ((0, 0), (0, dh), (0, dh)))
    e2h_flat = e2h.reshape(steps * h_pad, h_pad)

    fhw = pad2(p["fh_w"], h_pad, h_pad)
    fhb = jnp.pad(p["fh_b"], (0, dh)).reshape(1, h_pad)

    return dict(xw=xw, xb=xb, hw=hw, hb=hb, e2h_flat=e2h_flat, fhw=fhw, fhb=fhb)


# ---------------------------------------------------------------------------
if __name__ == "__main__":
    input_size, hidden_size, steps = 32, 32, 37   # module defaults scaled down

    key = jax.random.PRNGKey(0)
    k_param, k_inp = jax.random.split(key)
    params = make_params(k_param, input_size, hidden_size, steps)
    pp = pad_params(params, input_size, hidden_size, steps)

    # dependency tree: leaves 0,1,2 ; node 3 = (0,1) ; root 4 = (3,2)
    num_nodes = 5
    inputs = jax.random.normal(k_inp, (num_nodes, input_size), dtype=jnp.float32)
    edge_types = [3, 1, 5, 2, 0]                  # per-node edge/relation type

    n0, n1, n2 = Tree(0), Tree(1), Tree(2)
    n3 = Tree(3, [n0, n1])
    root = Tree(4, [n3, n2])

    c_all, h_all = tree_forward_kernel(root, inputs, edge_types, pp, num_nodes)
    jax.block_until_ready(h_all)

    c_r, h_r = tree_forward_ref(root, inputs, edge_types, params)

    c_k = c_all[root.idx:root.idx + 1, :hidden_size]
    h_k = h_all[root.idx:root.idx + 1, :hidden_size]
    assert jnp.allclose(c_k, c_r, atol=5e-4, rtol=5e-4), "c mismatch vs reference"
    assert jnp.allclose(h_k, h_r, atol=5e-4, rtol=5e-4), "h mismatch vs reference"

    print("KERNEL_OK")
</pallas_src>

<mosaic_0001>
module attributes {stable_mosaic.version = 11 : i64} {
  func.func @level_kernel(%arg0: i32, %arg1: memref<8x128xf32, #tpu.memory_space<vmem>>, %arg2: memref<8x4736xf32, #tpu.memory_space<vmem>>, %arg3: memref<8x8x128xf32, #tpu.memory_space<vmem>>, %arg4: memref<8x8x128xf32, #tpu.memory_space<vmem>>, %arg5: memref<4736x128xf32, #tpu.memory_space<vmem>>, %arg6: memref<128x512xf32, #tpu.memory_space<vmem>>, %arg7: memref<1x512xf32, #tpu.memory_space<vmem>>, %arg8: memref<128x384xf32, #tpu.memory_space<vmem>>, %arg9: memref<1x384xf32, #tpu.memory_space<vmem>>, %arg10: memref<128x128xf32, #tpu.memory_space<vmem>>, %arg11: memref<1x128xf32, #tpu.memory_space<vmem>>, %arg12: memref<8x128xf32, #tpu.memory_space<vmem>>, %arg13: memref<8x128xf32, #tpu.memory_space<vmem>>) attributes {dimension_semantics = [#tpu.dimension_semantics<parallel>], iteration_bounds = array<i64: 1>, scalar_prefetch = 0 : i64, scratch_operands = 0 : i64, tpu.core_type = #tpu.core_type<tc>, window_params = [{transform_indices = @transform_0, window_bounds = array<i64: 8, 128>}, {transform_indices = @transform_1, window_bounds = array<i64: 8, 4736>}, {transform_indices = @transform_2, window_bounds = array<i64: 8, 8, 128>}, {transform_indices = @transform_3, window_bounds = array<i64: 8, 8, 128>}, {pipeline_mode = #tpu.pipeline_mode<synchronous>, transform_indices = @transform_4, window_bounds = array<i64: 4736, 128>}, {pipeline_mode = #tpu.pipeline_mode<synchronous>, transform_indices = @transform_5, window_bounds = array<i64: 128, 512>}, {pipeline_mode = #tpu.pipeline_mode<synchronous>, transform_indices = @transform_6, window_bounds = array<i64: 1, 512>}, {pipeline_mode = #tpu.pipeline_mode<synchronous>, transform_indices = @transform_7, window_bounds = array<i64: 128, 384>}, {pipeline_mode = #tpu.pipeline_mode<synchronous>, transform_indices = @transform_8, window_bounds = array<i64: 1, 384>}, {pipeline_mode = #tpu.pipeline_mode<synchronous>, transform_indices = @transform_9, window_bounds = array<i64: 128, 128>}, {pipeline_mode = #tpu.pipeline_mode<synchronous>, transform_indices = @transform_10, window_bounds = array<i64: 1, 128>}, {transform_indices = @transform_11, window_bounds = array<i64: 8, 128>}, {transform_indices = @transform_12, window_bounds = array<i64: 8, 128>}]} {
    %c0 = arith.constant 0 : index
    %c0_0 = arith.constant 0 : index
    %0 = vector.load %arg2[%c0, %c0_0] : memref<8x4736xf32, #tpu.memory_space<vmem>>, vector<8x4736xf32>
    %c0_1 = arith.constant 0 : index
    %c0_2 = arith.constant 0 : index
    %1 = vector.load %arg5[%c0_1, %c0_2] : memref<4736x128xf32, #tpu.memory_space<vmem>>, vector<4736x128xf32>
    %cst = arith.constant dense<0.000000e+00> : vector<8x128xf32>
    %2 = tpu.matmul %0, %1, %cst {dimension_numbers = #tpu.dot_dimension_numbers<[1], [0], [0], [1], [0, 0, 1, 1], [], []>} : vector<8x4736xf32>, vector<4736x128xf32>, vector<8x128xf32> -> vector<8x128xf32>
    %c0_3 = arith.constant 0 : index
    %c0_4 = arith.constant 0 : index
    %3 = vector.load %arg1[%c0_3, %c0_4] : memref<8x128xf32, #tpu.memory_space<vmem>>, vector<8x128xf32>
    %c0_5 = arith.constant 0 : index
    %c0_6 = arith.constant 0 : index
    %4 = vector.load %arg6[%c0_5, %c0_6] : memref<128x512xf32, #tpu.memory_space<vmem>>, vector<128x512xf32>
    %cst_7 = arith.constant dense<0.000000e+00> : vector<8x512xf32>
    %5 = tpu.matmul %3, %4, %cst_7 {dimension_numbers = #tpu.dot_dimension_numbers<[1], [0], [0], [1], [0, 0, 1, 1], [], []>} : vector<8x128xf32>, vector<128x512xf32>, vector<8x512xf32> -> vector<8x512xf32>
    %c0_8 = arith.constant 0 : index
    %c0_9 = arith.constant 0 : index
    %6 = vector.load %arg7[%c0_8, %c0_9] : memref<1x512xf32, #tpu.memory_space<vmem>>, vector<1x512xf32>
    %7 = vector.broadcast %6 : vector<1x512xf32> to vector<8x512xf32>
    %8 = arith.addf %5, %7 : vector<8x512xf32>
    %9 = vector.extract_strided_slice %8 {offsets = [0, 0], sizes = [8, 384], strides = [1, 1]} : vector<8x512xf32> to vector<8x384xf32>
    %c0_10 = arith.constant 0 : index
    %c0_11 = arith.constant 0 : index
    %10 = vector.load %arg9[%c0_10, %c0_11] : memref<1x384xf32, #tpu.memory_space<vmem>>, vector<1x384xf32>
    %11 = vector.broadcast %10 : vector<1x384xf32> to vector<8x384xf32>
    %12 = arith.addf %9, %11 : vector<8x384xf32>
    %c0_12 = arith.constant 0 : index
    %c0_13 = arith.constant 0 : index
    %13 = vector.load %arg8[%c0_12, %c0_13] : memref<128x384xf32, #tpu.memory_space<vmem>>, vector<128x384xf32>
    %cst_14 = arith.constant dense<0.000000e+00> : vector<8x384xf32>
    %14 = tpu.matmul %2, %13, %cst_14 {dimension_numbers = #tpu.dot_dimension_numbers<[1], [0], [0], [1], [0, 0, 1, 1], [], []>} : vector<8x128xf32>, vector<128x384xf32>, vector<8x384xf32> -> vector<8x384xf32>
    %15 = arith.addf %12, %14 : vector<8x384xf32>
    %16 = vector.extract_strided_slice %15 {offsets = [0, 0], sizes = [8, 128], strides = [1, 1]} : vector<8x384xf32> to vector<8x128xf32>
    %cst_15 = arith.constant 0.000000e+00 : f32
    %17 = vector.broadcast %cst_15 : f32 to vector<8x128xf32>
    %18 = arith.subf %17, %16 : vector<8x128xf32>
    %19 = math.exp %18 : vector<8x128xf32>
    %cst_16 = arith.constant 1.000000e+00 : f32
    %20 = vector.broadcast %cst_16 : f32 to vector<8x128xf32>
    %21 = arith.addf %20, %19 : vector<8x128xf32>
    %22 = tpu.reciprocal %21 : vector<8x128xf32> -> vector<8x128xf32>
    %23 = vector.extract_strided_slice %15 {offsets = [0, 128], sizes = [8, 128], strides = [1, 1]} : vector<8x384xf32> to vector<8x128xf32>
    %cst_17 = arith.constant 0.000000e+00 : f32
    %24 = vector.broadcast %cst_17 : f32 to vector<8x128xf32>
    %25 = arith.subf %24, %23 : vector<8x128xf32>
    %26 = math.exp %25 : vector<8x128xf32>
    %cst_18 = arith.constant 1.000000e+00 : f32
    %27 = vector.broadcast %cst_18 : f32 to vector<8x128xf32>
    %28 = arith.addf %27, %26 : vector<8x128xf32>
    %29 = tpu.reciprocal %28 : vector<8x128xf32> -> vector<8x128xf32>
    %30 = vector.extract_strided_slice %15 {offsets = [0, 256], sizes = [8, 128], strides = [1, 1]} : vector<8x384xf32> to vector<8x128xf32>
    %31 = math.tanh %30 : vector<8x128xf32>
    %32 = vector.extract_strided_slice %8 {offsets = [0, 384], sizes = [8, 128], strides = [1, 1]} : vector<8x512xf32> to vector<8x128xf32>
    %cst_19 = arith.constant 0.000000e+00 : f32
    %33 = vector.broadcast %cst_19 : f32 to vector<8x128xf32>
    %c0_20 = arith.constant 0 : index
    %c0_21 = arith.constant 0 : index
    %c0_22 = arith.constant 0 : index
    %34 = vector.load %arg4[%c0_20, %c0_21, %c0_22] : memref<8x8x128xf32, #tpu.memory_space<vmem>>, vector<1x8x128xf32>
    %35 = vector.shape_cast %34 : vector<1x8x128xf32> to vector<8x128xf32>
    %c0_23 = arith.constant 0 : index
    %c0_24 = arith.constant 0 : index
    %36 = vector.load %arg10[%c0_23, %c0_24] : memref<128x128xf32, #tpu.memory_space<vmem>>, vector<128x128xf32>
    %cst_25 = arith.constant dense<0.000000e+00> : vector<8x128xf32>
    %37 = tpu.matmul %35, %36, %cst_25 {dimension_numbers = #tpu.dot_dimension_numbers<[1], [0], [0], [1], [0, 0, 1, 1], [], []>} : vector<8x128xf32>, vector<128x128xf32>, vector<8x128xf32> -> vector<8x128xf32>
    %c0_26 = arith.constant 0 : index
    %c0_27 = arith.constant 0 : index
    %38 = vector.load %arg11[%c0_26, %c0_27] : memref<1x128xf32, #tpu.memory_space<vmem>>, vector<1x128xf32>
    %39 = vector.broadcast %38 : vector<1x128xf32> to vector<8x128xf32>
    %40 = arith.addf %37, %39 : vector<8x128xf32>
    %41 = arith.addf %40, %32 : vector<8x128xf32>
    %cst_28 = arith.constant 0.000000e+00 : f32
    %42 = vector.broadcast %cst_28 : f32 to vector<8x128xf32>
    %43 = arith.subf %42, %41 : vector<8x128xf32>
    %44 = math.exp %43 : vector<8x128xf32>
    %cst_29 = arith.constant 1.000000e+00 : f32
    %45 = vector.broadcast %cst_29 : f32 to vector<8x128xf32>
    %46 = arith.addf %45, %44 : vector<8x128xf32>
    %47 = tpu.reciprocal %46 : vector<8x128xf32> -> vector<8x128xf32>
    %c0_30 = arith.constant 0 : index
    %c0_31 = arith.constant 0 : index
    %c0_32 = arith.constant 0 : index
    %48 = vector.load %arg3[%c0_30, %c0_31, %c0_32] : memref<8x8x128xf32, #tpu.memory_space<vmem>>, vector<1x8x128xf32>
    %49 = vector.shape_cast %48 : vector<1x8x128xf32> to vector<8x128xf32>
    %50 = arith.mulf %47, %49 : vector<8x128xf32>
    %51 = arith.addf %33, %50 : vector<8x128xf32>
    %c1 = arith.constant 1 : index
    %c0_33 = arith.constant 0 : index
    %c0_34 = arith.constant 0 : index
    %52 = vector.load %arg4[%c1, %c0_33, %c0_34] : memref<8x8x128xf32, #tpu.memory_space<vmem>>, vector<1x8x128xf32>
    %53 = vector.shape_cast %52 : vector<1x8x128xf32> to vector<8x128xf32>
    %c0_35 = arith.constant 0 : index
    %c0_36 = arith.constant 0 : index
    %54 = vector.load %arg10[%c0_35, %c0_36] : memref<128x128xf32, #tpu.memory_space<vmem>>, vector<128x128xf32>
    %cst_37 = arith.constant dense<0.000000e+00> : vector<8x128xf32>
    %55 = tpu.matmul %53, %54, %cst_37 {dimension_numbers = #tpu.dot_dimension_numbers<[1], [0], [0], [1], [0, 0, 1, 1], [], []>} : vector<8x128xf32>, vector<128x128xf32>, vector<8x128xf32> -> vector<8x128xf32>
    %c0_38 = arith.constant 0 : index
    %c0_39 = arith.constant 0 : index
    %56 = vector.load %arg11[%c0_38, %c0_39] : memref<1x128xf32, #tpu.memory_space<vmem>>, vector<1x128xf32>
    %57 = vector.broadcast %56 : vector<1x128xf32> to vector<8x128xf32>
    %58 = arith.addf %55, %57 : vector<8x128xf32>
    %59 = arith.addf %58, %32 : vector<8x128xf32>
    %cst_40 = arith.constant 0.000000e+00 : f32
    %60 = vector.broadcast %cst_40 : f32 to vector<8x128xf32>
    %61 = arith.subf %60, %59 : vector<8x128xf32>
    %62 = math.exp %61 : vector<8x128xf32>
    %cst_41 = arith.constant 1.000000e+00 : f32
    %63 = vector.broadcast %cst_41 : f32 to vector<8x128xf32>
    %64 = arith.addf %63, %62 : vector<8x128xf32>
    %65 = tpu.reciprocal %64 : vector<8x128xf32> -> vector<8x128xf32>
    %c1_42 = arith.constant 1 : index
    %c0_43 = arith.constant 0 : index
    %c0_44 = arith.constant 0 : index
    %66 = vector.load %arg3[%c1_42, %c0_43, %c0_44] : memref<8x8x128xf32, #tpu.memory_space<vmem>>, vector<1x8x128xf32>
    %67 = vector.shape_cast %66 : vector<1x8x128xf32> to vector<8x128xf32>
    %68 = arith.mulf %65, %67 : vector<8x128xf32>
    %69 = arith.addf %51, %68 : vector<8x128xf32>
    %c2 = arith.constant 2 : index
    %c0_45 = arith.constant 0 : index
    %c0_46 = arith.constant 0 : index
    %70 = vector.load %arg4[%c2, %c0_45, %c0_46] : memref<8x8x128xf32, #tpu.memory_space<vmem>>, vector<1x8x128xf32>
    %71 = vector.shape_cast %70 : vector<1x8x128xf32> to vector<8x128xf32>
    %c0_47 = arith.constant 0 : index
    %c0_48 = arith.constant 0 : index
    %72 = vector.load %arg10[%c0_47, %c0_48] : memref<128x128xf32, #tpu.memory_space<vmem>>, vector<128x128xf32>
    %cst_49 = arith.constant dense<0.000000e+00> : vector<8x128xf32>
    %73 = tpu.matmul %71, %72, %cst_49 {dimension_numbers = #tpu.dot_dimension_numbers<[1], [0], [0], [1], [0, 0, 1, 1], [], []>} : vector<8x128xf32>, vector<128x128xf32>, vector<8x128xf32> -> vector<8x128xf32>
    %c0_50 = arith.constant 0 : index
    %c0_51 = arith.constant 0 : index
    %74 = vector.load %arg11[%c0_50, %c0_51] : memref<1x128xf32, #tpu.memory_space<vmem>>, vector<1x128xf32>
    %75 = vector.broadcast %74 : vector<1x128xf32> to vector<8x128xf32>
    %76 = arith.addf %73, %75 : vector<8x128xf32>
    %77 = arith.addf %76, %32 : vector<8x128xf32>
    %cst_52 = arith.constant 0.000000e+00 : f32
    %78 = vector.broadcast %cst_52 : f32 to vector<8x128xf32>
    %79 = arith.subf %78, %77 : vector<8x128xf32>
    %80 = math.exp %79 : vector<8x128xf32>
    %cst_53 = arith.constant 1.000000e+00 : f32
    %81 = vector.broadcast %cst_53 : f32 to vector<8x128xf32>
    %82 = arith.addf %81, %80 : vector<8x128xf32>
    %83 = tpu.reciprocal %82 : vector<8x128xf32> -> vector<8x128xf32>
    %c2_54 = arith.constant 2 : index
    %c0_55 = arith.constant 0 : index
    %c0_56 = arith.constant 0 : index
    %84 = vector.load %arg3[%c2_54, %c0_55, %c0_56] : memref<8x8x128xf32, #tpu.memory_space<vmem>>, vector<1x8x128xf32>
    %85 = vector.shape_cast %84 : vector<1x8x128xf32> to vector<8x128xf32>
    %86 = arith.mulf %83, %85 : vector<8x128xf32>
    %87 = arith.addf %69, %86 : vector<8x128xf32>
    %c3 = arith.constant 3 : index
    %c0_57 = arith.constant 0 : index
    %c0_58 = arith.constant 0 : index
    %88 = vector.load %arg4[%c3, %c0_57, %c0_58] : memref<8x8x128xf32, #tpu.memory_space<vmem>>, vector<1x8x128xf32>
    %89 = vector.shape_cast %88 : vector<1x8x128xf32> to vector<8x128xf32>
    %c0_59 = arith.constant 0 : index
    %c0_60 = arith.constant 0 : index
    %90 = vector.load %arg10[%c0_59, %c0_60] : memref<128x128xf32, #tpu.memory_space<vmem>>, vector<128x128xf32>
    %cst_61 = arith.constant dense<0.000000e+00> : vector<8x128xf32>
    %91 = tpu.matmul %89, %90, %cst_61 {dimension_numbers = #tpu.dot_dimension_numbers<[1], [0], [0], [1], [0, 0, 1, 1], [], []>} : vector<8x128xf32>, vector<128x128xf32>, vector<8x128xf32> -> vector<8x128xf32>
    %c0_62 = arith.constant 0 : index
    %c0_63 = arith.constant 0 : index
    %92 = vector.load %arg11[%c0_62, %c0_63] : memref<1x128xf32, #tpu.memory_space<vmem>>, vector<1x128xf32>
    %93 = vector.broadcast %92 : vector<1x128xf32> to vector<8x128xf32>
    %94 = arith.addf %91, %93 : vector<8x128xf32>
    %95 = arith.addf %94, %32 : vector<8x128xf32>
    %cst_64 = arith.constant 0.000000e+00 : f32
    %96 = vector.broadcast %cst_64 : f32 to vector<8x128xf32>
    %97 = arith.subf %96, %95 : vector<8x128xf32>
    %98 = math.exp %97 : vector<8x128xf32>
    %cst_65 = arith.constant 1.000000e+00 : f32
    %99 = vector.broadcast %cst_65 : f32 to vector<8x128xf32>
    %100 = arith.addf %99, %98 : vector<8x128xf32>
    %101 = tpu.reciprocal %100 : vector<8x128xf32> -> vector<8x128xf32>
    %c3_66 = arith.constant 3 : index
    %c0_67 = arith.constant 0 : index
    %c0_68 = arith.constant 0 : index
    %102 = vector.load %arg3[%c3_66, %c0_67, %c0_68] : memref<8x8x128xf32, #tpu.memory_space<vmem>>, vector<1x8x128xf32>
    %103 = vector.shape_cast %102 : vector<1x8x128xf32> to vector<8x128xf32>
    %104 = arith.mulf %101, %103 : vector<8x128xf32>
    %105 = arith.addf %87, %104 : vector<8x128xf32>
    %c4 = arith.constant 4 : index
    %c0_69 = arith.constant 0 : index
    %c0_70 = arith.constant 0 : index
    %106 = vector.load %arg4[%c4, %c0_69, %c0_70] : memref<8x8x128xf32, #tpu.memory_space<vmem>>, vector<1x8x128xf32>
    %107 = vector.shape_cast %106 : vector<1x8x128xf32> to vector<8x128xf32>
    %c0_71 = arith.constant 0 : index
    %c0_72 = arith.constant 0 : index
    %108 = vector.load %arg10[%c0_71, %c0_72] : memref<128x128xf32, #tpu.memory_space<vmem>>, vector<128x128xf32>
    %cst_73 = arith.constant dense<0.000000e+00> : vector<8x128xf32>
    %109 = tpu.matmul %107, %108, %cst_73 {dimension_numbers = #tpu.dot_dimension_numbers<[1], [0], [0], [1], [0, 0, 1, 1], [], []>} : vector<8x128xf32>, vector<128x128xf32>, vector<8x128xf32> -> vector<8x128xf32>
    %c0_74 = arith.constant 0 : index
    %c0_75 = arith.constant 0 : index
    %110 = vector.load %arg11[%c0_74, %c0_75] : memref<1x128xf32, #tpu.memory_space<vmem>>, vector<1x128xf32>
    %111 = vector.broadcast %110 : vector<1x128xf32> to vector<8x128xf32>
    %112 = arith.addf %109, %111 : vector<8x128xf32>
    %113 = arith.addf %112, %32 : vector<8x128xf32>
    %cst_76 = arith.constant 0.000000e+00 : f32
    %114 = vector.broadcast %cst_76 : f32 to vector<8x128xf32>
    %115 = arith.subf %114, %113 : vector<8x128xf32>
    %116 = math.exp %115 : vector<8x128xf32>
    %cst_77 = arith.constant 1.000000e+00 : f32
    %117 = vector.broadcast %cst_77 : f32 to vector<8x128xf32>
    %118 = arith.addf %117, %116 : vector<8x128xf32>
    %119 = tpu.reciprocal %118 : vector<8x128xf32> -> vector<8x128xf32>
    %c4_78 = arith.constant 4 : index
    %c0_79 = arith.constant 0 : index
    %c0_80 = arith.constant 0 : index
    %120 = vector.load %arg3[%c4_78, %c0_79, %c0_80] : memref<8x8x128xf32, #tpu.memory_space<vmem>>, vector<1x8x128xf32>
    %121 = vector.shape_cast %120 : vector<1x8x128xf32> to vector<8x128xf32>
    %122 = arith.mulf %119, %121 : vector<8x128xf32>
    %123 = arith.addf %105, %122 : vector<8x128xf32>
    %c5 = arith.constant 5 : index
    %c0_81 = arith.constant 0 : index
    %c0_82 = arith.constant 0 : index
    %124 = vector.load %arg4[%c5, %c0_81, %c0_82] : memref<8x8x128xf32, #tpu.memory_space<vmem>>, vector<1x8x128xf32>
    %125 = vector.shape_cast %124 : vector<1x8x128xf32> to vector<8x128xf32>
    %c0_83 = arith.constant 0 : index
    %c0_84 = arith.constant 0 : index
    %126 = vector.load %arg10[%c0_83, %c0_84] : memref<128x128xf32, #tpu.memory_space<vmem>>, vector<128x128xf32>
    %cst_85 = arith.constant dense<0.000000e+00> : vector<8x128xf32>
    %127 = tpu.matmul %125, %126, %cst_85 {dimension_numbers = #tpu.dot_dimension_numbers<[1], [0], [0], [1], [0, 0, 1, 1], [], []>} : vector<8x128xf32>, vector<128x128xf32>, vector<8x128xf32> -> vector<8x128xf32>
    %c0_86 = arith.constant 0 : index
    %c0_87 = arith.constant 0 : index
    %128 = vector.load %arg11[%c0_86, %c0_87] : memref<1x128xf32, #tpu.memory_space<vmem>>, vector<1x128xf32>
    %129 = vector.broadcast %128 : vector<1x128xf32> to vector<8x128xf32>
    %130 = arith.addf %127, %129 : vector<8x128xf32>
    %131 = arith.addf %130, %32 : vector<8x128xf32>
    %cst_88 = arith.constant 0.000000e+00 : f32
    %132 = vector.broadcast %cst_88 : f32 to vector<8x128xf32>
    %133 = arith.subf %132, %131 : vector<8x128xf32>
    %134 = math.exp %133 : vector<8x128xf32>
    %cst_89 = arith.constant 1.000000e+00 : f32
    %135 = vector.broadcast %cst_89 : f32 to vector<8x128xf32>
    %136 = arith.addf %135, %134 : vector<8x128xf32>
    %137 = tpu.reciprocal %136 : vector<8x128xf32> -> vector<8x128xf32>
    %c5_90 = arith.constant 5 : index
    %c0_91 = arith.constant 0 : index
    %c0_92 = arith.constant 0 : index
    %138 = vector.load %arg3[%c5_90, %c0_91, %c0_92] : memref<8x8x128xf32, #tpu.memory_space<vmem>>, vector<1x8x128xf32>
    %139 = vector.shape_cast %138 : vector<1x8x128xf32> to vector<8x128xf32>
    %140 = arith.mulf %137, %139 : vector<8x128xf32>
    %141 = arith.addf %123, %140 : vector<8x128xf32>
    %c6 = arith.constant 6 : index
    %c0_93 = arith.constant 0 : index
    %c0_94 = arith.constant 0 : index
    %142 = vector.load %arg4[%c6, %c0_93, %c0_94] : memref<8x8x128xf32, #tpu.memory_space<vmem>>, vector<1x8x128xf32>
    %143 = vector.shape_cast %142 : vector<1x8x128xf32> to vector<8x128xf32>
    %c0_95 = arith.constant 0 : index
    %c0_96 = arith.constant 0 : index
    %144 = vector.load %arg10[%c0_95, %c0_96] : memref<128x128xf32, #tpu.memory_space<vmem>>, vector<128x128xf32>
    %cst_97 = arith.constant dense<0.000000e+00> : vector<8x128xf32>
    %145 = tpu.matmul %143, %144, %cst_97 {dimension_numbers = #tpu.dot_dimension_numbers<[1], [0], [0], [1], [0, 0, 1, 1], [], []>} : vector<8x128xf32>, vector<128x128xf32>, vector<8x128xf32> -> vector<8x128xf32>
    %c0_98 = arith.constant 0 : index
    %c0_99 = arith.constant 0 : index
    %146 = vector.load %arg11[%c0_98, %c0_99] : memref<1x128xf32, #tpu.memory_space<vmem>>, vector<1x128xf32>
    %147 = vector.broadcast %146 : vector<1x128xf32> to vector<8x128xf32>
    %148 = arith.addf %145, %147 : vector<8x128xf32>
    %149 = arith.addf %148, %32 : vector<8x128xf32>
    %cst_100 = arith.constant 0.000000e+00 : f32
    %150 = vector.broadcast %cst_100 : f32 to vector<8x128xf32>
    %151 = arith.subf %150, %149 : vector<8x128xf32>
    %152 = math.exp %151 : vector<8x128xf32>
    %cst_101 = arith.constant 1.000000e+00 : f32
    %153 = vector.broadcast %cst_101 : f32 to vector<8x128xf32>
    %154 = arith.addf %153, %152 : vector<8x128xf32>
    %155 = tpu.reciprocal %154 : vector<8x128xf32> -> vector<8x128xf32>
    %c6_102 = arith.constant 6 : index
    %c0_103 = arith.constant 0 : index
    %c0_104 = arith.constant 0 : index
    %156 = vector.load %arg3[%c6_102, %c0_103, %c0_104] : memref<8x8x128xf32, #tpu.memory_space<vmem>>, vector<1x8x128xf32>
    %157 = vector.shape_cast %156 : vector<1x8x128xf32> to vector<8x128xf32>
    %158 = arith.mulf %155, %157 : vector<8x128xf32>
    %159 = arith.addf %141, %158 : vector<8x128xf32>
    %c7 = arith.constant 7 : index
    %c0_105 = arith.constant 0 : index
    %c0_106 = arith.constant 0 : index
    %160 = vector.load %arg4[%c7, %c0_105, %c0_106] : memref<8x8x128xf32, #tpu.memory_space<vmem>>, vector<1x8x128xf32>
    %161 = vector.shape_cast %160 : vector<1x8x128xf32> to vector<8x128xf32>
    %c0_107 = arith.constant 0 : index
    %c0_108 = arith.constant 0 : index
    %162 = vector.load %arg10[%c0_107, %c0_108] : memref<128x128xf32, #tpu.memory_space<vmem>>, vector<128x128xf32>
    %cst_109 = arith.constant dense<0.000000e+00> : vector<8x128xf32>
    %163 = tpu.matmul %161, %162, %cst_109 {dimension_numbers = #tpu.dot_dimension_numbers<[1], [0], [0], [1], [0, 0, 1, 1], [], []>} : vector<8x128xf32>, vector<128x128xf32>, vector<8x128xf32> -> vector<8x128xf32>
    %c0_110 = arith.constant 0 : index
    %c0_111 = arith.constant 0 : index
    %164 = vector.load %arg11[%c0_110, %c0_111] : memref<1x128xf32, #tpu.memory_space<vmem>>, vector<1x128xf32>
    %165 = vector.broadcast %164 : vector<1x128xf32> to vector<8x128xf32>
    %166 = arith.addf %163, %165 : vector<8x128xf32>
    %167 = arith.addf %166, %32 : vector<8x128xf32>
    %cst_112 = arith.constant 0.000000e+00 : f32
    %168 = vector.broadcast %cst_112 : f32 to vector<8x128xf32>
    %169 = arith.subf %168, %167 : vector<8x128xf32>
    %170 = math.exp %169 : vector<8x128xf32>
    %cst_113 = arith.constant 1.000000e+00 : f32
    %171 = vector.broadcast %cst_113 : f32 to vector<8x128xf32>
    %172 = arith.addf %171, %170 : vector<8x128xf32>
    %173 = tpu.reciprocal %172 : vector<8x128xf32> -> vector<8x128xf32>
    %c7_114 = arith.constant 7 : index
    %c0_115 = arith.constant 0 : index
    %c0_116 = arith.constant 0 : index
    %174 = vector.load %arg3[%c7_114, %c0_115, %c0_116] : memref<8x8x128xf32, #tpu.memory_space<vmem>>, vector<1x8x128xf32>
    %175 = vector.shape_cast %174 : vector<1x8x128xf32> to vector<8x128xf32>
    %176 = arith.mulf %173, %175 : vector<8x128xf32>
    %177 = arith.addf %159, %176 : vector<8x128xf32>
    %178 = arith.mulf %22, %31 : vector<8x128xf32>
    %179 = arith.addf %178, %177 : vector<8x128xf32>
    %c0_117 = arith.constant 0 : index
    %c0_118 = arith.constant 0 : index
    %180 = vector.load %arg12[%c0_117, %c0_118] : memref<8x128xf32, #tpu.memory_space<vmem>>, vector<8x128xf32>
    tpu.vector_store %arg12[%c0_117, %c0_118], %179 {strides = array<i32>} : memref<8x128xf32, #tpu.memory_space<vmem>>, vector<8x128xf32>,
    %181 = math.tanh %179 : vector<8x128xf32>
    %182 = arith.mulf %29, %181 : vector<8x128xf32>
    %c0_119 = arith.constant 0 : index
    %c0_120 = arith.constant 0 : index
    %183 = vector.load %arg13[%c0_119, %c0_120] : memref<8x128xf32, #tpu.memory_space<vmem>>, vector<8x128xf32>
    tpu.vector_store %arg13[%c0_119, %c0_120], %182 {strides = array<i32>} : memref<8x128xf32, #tpu.memory_space<vmem>>, vector<8x128xf32>,
    return
  }
  func.func @transform_0(%arg0: i32) -> (i32, i32) {
    %c0_i32 = arith.constant 0 : i32
    %c0_i32_0 = arith.constant 0 : i32
    return %arg0, %c0_i32 : i32, i32
  }
  func.func @transform_1(%arg0: i32) -> (i32, i32) {
    %c0_i32 = arith.constant 0 : i32
    %c0_i32_0 = arith.constant 0 : i32
    return %arg0, %c0_i32 : i32, i32
  }
  func.func @transform_2(%arg0: i32) -> (i32, i32, i32) {
    %c0_i32 = arith.constant 0 : i32
    %c0_i32_0 = arith.constant 0 : i32
    %c0_i32_1 = arith.constant 0 : i32
    return %c0_i32, %arg0, %c0_i32_0 : i32, i32, i32
  }
  func.func @transform_3(%arg0: i32) -> (i32, i32, i32) {
    %c0_i32 = arith.constant 0 : i32
    %c0_i32_0 = arith.constant 0 : i32
    %c0_i32_1 = arith.constant 0 : i32
    return %c0_i32, %arg0, %c0_i32_0 : i32, i32, i32
  }
  func.func @transform_4(%arg0: i32) -> (i32, i32) {
    %c0_i32 = arith.constant 0 : i32
    %c0_i32_0 = arith.constant 0 : i32
    %c0_i32_1 = arith.constant 0 : i32
    return %c0_i32, %c0_i32_0 : i32, i32
  }
  func.func @transform_5(%arg0: i32) -> (i32, i32) {
    %c0_i32 = arith.constant 0 : i32
    %c0_i32_0 = arith.constant 0 : i32
    %c0_i32_1 = arith.constant 0 : i32
    return %c0_i32, %c0_i32_0 : i32, i32
  }
  func.func @transform_6(%arg0: i32) -> (i32, i32) {
    %c0_i32 = arith.constant 0 : i32
    %c0_i32_0 = arith.constant 0 : i32
    %c0_i32_1 = arith.constant 0 : i32
    return %c0_i32, %c0_i32_0 : i32, i32
  }
  func.func @transform_7(%arg0: i32) -> (i32, i32) {
    %c0_i32 = arith.constant 0 : i32
    %c0_i32_0 = arith.constant 0 : i32
    %c0_i32_1 = arith.constant 0 : i32
    return %c0_i32, %c0_i32_0 : i32, i32
  }
  func.func @transform_8(%arg0: i32) -> (i32, i32) {
    %c0_i32 = arith.constant 0 : i32
    %c0_i32_0 = arith.constant 0 : i32
    %c0_i32_1 = arith.constant 0 : i32
    return %c0_i32, %c0_i32_0 : i32, i32
  }
  func.func @transform_9(%arg0: i32) -> (i32, i32) {
    %c0_i32 = arith.constant 0 : i32
    %c0_i32_0 = arith.constant 0 : i32
    %c0_i32_1 = arith.constant 0 : i32
    return %c0_i32, %c0_i32_0 : i32, i32
  }
  func.func @transform_10(%arg0: i32) -> (i32, i32) {
    %c0_i32 = arith.constant 0 : i32
    %c0_i32_0 = arith.constant 0 : i32
    %c0_i32_1 = arith.constant 0 : i32
    return %c0_i32, %c0_i32_0 : i32, i32
  }
  func.func @transform_11(%arg0: i32) -> (i32, i32) {
    %c0_i32 = arith.constant 0 : i32
    %c0_i32_0 = arith.constant 0 : i32
    return %arg0, %c0_i32 : i32, i32
  }
  func.func @transform_12(%arg0: i32) -> (i32, i32) {
    %c0_i32 = arith.constant 0 : i32
    %c0_i32_0 = arith.constant 0 : i32
    return %arg0, %c0_i32 : i32, i32
  }
}

</mosaic_0001>

<bundles_post_ra>
// kernel: level_step.1
= control target key start
LH: loop header
LB: loop body
LE: loop exit
PB: predicated region body
PF: predicated region fallthrough
CT: control target
= control target key end

     0   :  { %18 = vsyncpa [#allocation3], 0  ;;  %s6121_s0 = inlined_call_operand.vmem [shape: f32[8,128], index: 0, kind: input, shape index: {}]   ;;  %s6122_s1 = inlined_call_operand.vmem [shape: f32[8,4736], index: 1, kind: input, shape index: {}]   ;;  %s6123_s2 = inlined_call_operand.vmem [shape: f32[8,8,128], index: 2, kind: input, shape index: {}]   ;;  %s6124_s3 = inlined_call_operand.vmem [shape: f32[8,8,128], index: 3, kind: input, shape index: {}]   ;;  %s6125_s4 = inlined_call_operand.hbm [shape: f32[4736,128], index: 4, kind: input, shape index: {}]   ;;  %s6126_s5 = inlined_call_operand.hbm [shape: f32[128,512], index: 5, kind: input, shape index: {}]   ;;  %s6127_s6 = inlined_call_operand.hbm [shape: f32[1,512], index: 6, kind: input, shape index: {}]   ;;  %s6128_s7 = inlined_call_operand.hbm [shape: f32[128,384], index: 7, kind: input, shape index: {}]   ;;  %s6129_s8 = inlined_call_operand.hbm [shape: f32[1,384], index: 8, kind: input, shape index: {}]   ;;  %s6130_s9 = inlined_call_operand.hbm [shape: f32[128,128], index: 9, kind: input, shape index: {}]   ;;  %s6131_s10 = inlined_call_operand.hbm [shape: f32[1,128], index: 10, kind: input, shape index: {}]   ;;  %s6132_s11 = inlined_call_operand.vmem [shape: f32[8,128], index: 11, kind: output, shape index: {0}]   ;;  %s6133_s12 = inlined_call_operand.vmem [shape: f32[8,128], index: 12, kind: output, shape index: {1}]  }
   0x1   :  { %19 = vsyncpa [#allocation5], 0 }
   0x2   :  { %20 = vsyncpa [#allocation8], 0 }
   0x3   :  { %21 = vsyncpa [#allocation11], 0  ;;  %s5540_s21 = smov [#allocation4]   ;;  %s5378_s25 = scalar_lea.hbm %s6126_s5, 8192 }
   0x4   :  { %s47_s22 = sshll.u32 %s5540_s21, 4  ;;  %p5379_p0 = scmp.ne.s32.totalorder %s6126_s5, %s5378_s25  ;;  %s48_s22 = int_to_ptr.vmem [resolvable:$true] %s47_s22 }
   0x5   :  { %p5382_p1 = scmp.lt.u32.totalorder %s5378_s25, %s6126_s5 }
   0x7   :  { %p5384_p2 = pnand %p5382_p1, %p5379_p0 }
   0x9   :  { %5387 = shalt.err (!%p5384_p2)
}
   0xa   :  { %s5388_s30 = scalar_lea.vmem %s48_s22, 8192  ;;  %p5393_p4 = scmp.lt.s32.totalorder %s48_s22, %s48_s22 }
   0xb   :  { %p5389_p3 = scmp.ne.s32.totalorder %s48_s22, %s5388_s30  ;;  %p5394_p5 = scmp.lt.s32.totalorder %s5388_s30, %s5388_s30 }
   0xd   :  { %p5395_p6 = por %p5394_p5, %p5393_p4 }
   0xf   :  { %p5396_p7 = pnand %p5395_p6, %p5389_p3 }
  0x11   :  { %5399 = shalt.err (!%p5396_p7)
}
  0x12   :  { %s5541_s13 = smov 512   ;;  %s5542_s14 = smov 32  }
  0x13   :  { %53 = dma.hbm_to_vmem [thread:$0]  %s6126_s5, 8192, %s48_s22, [#allocation5], %s5541_s13, %s5541_s13, %s5542_s14  }
  0x14   :  { %s5543_s17 = smov [#allocation7]   ;;  %s5400_s21 = scalar_lea.hbm %s6128_s7, 6144 }
  0x15   :  { %s69_s18 = sshll.u32 %s5543_s17, 4  ;;  %p5401_p8 = scmp.ne.s32.totalorder %s6128_s7, %s5400_s21  ;;  %s70_s18 = int_to_ptr.vmem [resolvable:$true] %s69_s18 }
  0x16   :  { %p5404_p9 = scmp.lt.u32.totalorder %s5400_s21, %s6128_s7 }
  0x18   :  { %p5406_p10 = pnand %p5404_p9, %p5401_p8 }
  0x1a   :  { %5409 = shalt.err (!%p5406_p10)
}
  0x1b   :  { %s5410_s27 = scalar_lea.vmem %s70_s18, 6144  ;;  %p5415_p12 = scmp.lt.s32.totalorder %s70_s18, %s70_s18 }
  0x1c   :  { %p5411_p11 = scmp.ne.s32.totalorder %s70_s18, %s5410_s27  ;;  %p5416_p13 = scmp.lt.s32.totalorder %s5410_s27, %s5410_s27 }
  0x1e   :  { %p5417_p0 = por %p5416_p13, %p5415_p12 }
  0x20   :  { %p5418_p1 = pnand %p5417_p0, %p5411_p11 }
  0x22   :  { %5421 = shalt.err (!%p5418_p1)
}
  0x23   :  { %s5544_s5 = smov 384   ;;  %s5545_s22 = smov 24  }
  0x24   :  { %75 = dma.hbm_to_vmem [thread:$0]  %s6128_s7, 6144, %s70_s18, [#allocation8], %s5544_s5, %s5544_s5, %s5545_s22  }
  0x25   :  { %s5546_s30 = smov [#allocation10]   ;;  %s5547_s14 = smov [#allocation2]  }
  0x26   :  { %s91_s13 = sshll.u32 %s5546_s30, 4  ;;  %s35_s15 = sshll.u32 %s5547_s14, 4  ;;  %s92_s13 = int_to_ptr.vmem [resolvable:$true] %s91_s13  ;;  %s5645_s15 = int_to_ptr.vmem [resolvable:$true] %s35_s15 }
  0x27   :  { %s5422_s19 = scalar_lea.hbm %s6130_s9, 2048 }
  0x28   :  { %p5423_p2 = scmp.ne.s32.totalorder %s6130_s9, %s5422_s19  ;;  %p5426_p3 = scmp.lt.u32.totalorder %s5422_s19, %s6130_s9 }
  0x2a   :  { %p5428_p4 = pnand %p5426_p3, %p5423_p2 }
  0x2c   :  { %5431 = shalt.err (!%p5428_p4)
}
  0x2d   :  { %s5432_s7 = scalar_lea.vmem %s92_s13, 2048  ;;  %p5437_p6 = scmp.lt.s32.totalorder %s92_s13, %s92_s13 }
  0x2e   :  { %p5433_p5 = scmp.ne.s32.totalorder %s92_s13, %s5432_s7  ;;  %p5438_p7 = scmp.lt.s32.totalorder %s5432_s7, %s5432_s7 }
  0x30   :  { %p5439_p8 = por %p5438_p7, %p5437_p6 }
  0x32   :  { %p5440_p9 = pnand %p5439_p8, %p5433_p5 }
  0x34   :  { %5443 = shalt.err (!%p5440_p9)
}
  0x35   :  { %s5548_s18 = smov 128   ;;  %s5549_s25 = smov 8  }
  0x36   :  { %97 = dma.hbm_to_vmem [thread:$0]  %s6130_s9, 2048, %s92_s13, [#allocation11], %s5548_s18, %s5548_s18, %s5549_s25  }
  0x37   :  { %s5444_s28 = scalar_lea.hbm %s6125_s4, 75776 }
  0x38   :  { %p5445_p10 = scmp.ne.s32.totalorder %s6125_s4, %s5444_s28  ;;  %p5448_p11 = scmp.lt.u32.totalorder %s5444_s28, %s6125_s4 }
  0x3a   :  { %p5450_p12 = pnand %p5448_p11, %p5445_p10 }
  0x3c   :  { %5453 = shalt.err (!%p5450_p12)
}
  0x3d   :  { %s5454_s17 = scalar_lea.vmem %s5645_s15, 75776  ;;  %p5459_p0 = scmp.lt.s32.totalorder %s5645_s15, %s5645_s15 }
  0x3e   :  { %p5455_p13 = scmp.ne.s32.totalorder %s5645_s15, %s5454_s17  ;;  %p5460_p1 = scmp.lt.s32.totalorder %s5454_s17, %s5454_s17 }
  0x40   :  { %p5461_p2 = por %p5460_p1, %p5459_p0 }
  0x42   :  { %p5462_p3 = pnand %p5461_p2, %p5455_p13 }
  0x44   :  { %5465 = shalt.err (!%p5462_p3)
}
  0x45   :  { %41 = dma.hbm_to_vmem [thread:$0]  %s6125_s4, 75776, %s5645_s15, [#allocation3], %s5548_s18, %s5548_s18, %s5549_s25  }
  0x46   :  { %s5550_s19 = smov [#allocation6]   ;;  %s5551_s21 = smov [#allocation9]  }
  0x47   :  { %s60_s20 = sshll.u32 %s5550_s19, 4  ;;  %s82_s23 = sshll.u32 %s5551_s21, 4  ;;  %s61_s20 = int_to_ptr.vmem [resolvable:$true] %s60_s20  ;;  %s83_s23 = int_to_ptr.vmem [resolvable:$true] %s82_s23 }
  0x48   :  { %s5466_s26 = scalar_lea.hbm %s6127_s6, 64 }
  0x49   :  { %p5467_p4 = scmp.ne.s32.totalorder %s6127_s6, %s5466_s26  ;;  %p5470_p5 = scmp.lt.u32.totalorder %s5466_s26, %s6127_s6 }
  0x4b   :  { %p5472_p6 = pnand %p5470_p5, %p5467_p4 }
  0x4d   :  { %5475 = shalt.err (!%p5472_p6)
}
  0x4e   :  { %s5476_s4 = scalar_lea.vmem %s61_s20, 64  ;;  %p5481_p8 = scmp.lt.s32.totalorder %s61_s20, %s61_s20 }
  0x4f   :  { %p5477_p7 = scmp.ne.s32.totalorder %s61_s20, %s5476_s4  ;;  %p5482_p9 = scmp.lt.s32.totalorder %s5476_s4, %s5476_s4 }
  0x51   :  { %p5483_p10 = por %p5482_p9, %p5481_p8 }
  0x53   :  { %p5484_p11 = pnand %p5483_p10, %p5477_p7 }
  0x55   :  { %5487 = shalt.err (!%p5484_p11)
}
  0x56   :  { %63 = dma.hbm_to_vmem [thread:$0]  %s6127_s6, 64, %s61_s20, [#allocation5]  }
  0x57   :  { %s5488_s30 = scalar_lea.hbm %s6129_s8, 48 }
  0x58   :  { %p5489_p12 = scmp.ne.s32.totalorder %s6129_s8, %s5488_s30  ;;  %p5492_p13 = scmp.lt.u32.totalorder %s5488_s30, %s6129_s8 }
  0x5a   :  { %p5494_p0 = pnand %p5492_p13, %p5489_p12 }
  0x5c   :  { %5497 = shalt.err (!%p5494_p0)
}
  0x5d   :  { %s5498_s13 = scalar_lea.vmem %s83_s23, 48  ;;  %s5502_s19 = scalar_lea.vmem %s83_s23, 64 }
  0x5e   :  { %p5499_p1 = scmp.ne.s32.totalorder %s83_s23, %s5498_s13  ;;  %p5503_p2 = scmp.lt.s32.totalorder %s83_s23, %s83_s23 }
  0x5f   :  { %p5504_p3 = scmp.lt.s32.totalorder %s5502_s19, %s5498_s13 }
  0x61   :  { %p5505_p4 = por %p5504_p3, %p5503_p2 }
  0x63   :  { %p5506_p5 = pnand %p5505_p4, %p5499_p1 }
  0x65   :  { %5509 = shalt.err (!%p5506_p5)
}
  0x66   :  { %85 = dma.hbm_to_vmem [thread:$0]  %s6129_s8, 48, %s83_s23, [#allocation8]  }
  0x67   :  { %s5552_s21 = smov [#allocation12]   ;;  %s5510_s27 = scalar_lea.hbm %s6131_s10, 16 }
  0x68   :  { %s104_s24 = sshll.u32 %s5552_s21, 4  ;;  %p5511_p6 = scmp.ne.s32.totalorder %s6131_s10, %s5510_s27  ;;  %s105_s24 = int_to_ptr.vmem [resolvable:$true] %s104_s24 }
  0x69   :  { %p5514_p7 = scmp.lt.u32.totalorder %s5510_s27, %s6131_s10 }
  0x6b   :  { %p5516_p8 = pnand %p5514_p7, %p5511_p6 }
  0x6d   :  { %5519 = shalt.err (!%p5516_p8)
}
  0x6e   :  { %s5520_s15 = scalar_lea.vmem %s105_s24, 16  ;;  %s5524_s8 = scalar_lea.vmem %s105_s24, 32 }
  0x6f   :  { %p5521_p9 = scmp.ne.s32.totalorder %s105_s24, %s5520_s15  ;;  %p5525_p10 = scmp.lt.s32.totalorder %s105_s24, %s105_s24 }
  0x70   :  { %p5526_p11 = scmp.lt.s32.totalorder %s5524_s8, %s5520_s15 }
  0x72   :  { %p5527_p12 = por %p5526_p11, %p5525_p10 }
  0x74   :  { %p5528_p13 = pnand %p5527_p12, %p5521_p9 }
  0x76   :  { %5531 = shalt.err (!%p5528_p13)
}
  0x77   :  { %107 = dma.hbm_to_vmem [thread:$0]  %s6131_s10, 16, %s105_s24, [#allocation11]  }
  0x78   :  { %5532 = dma.done.wait [#allocation3], 75776  }
  0x79   :  { %5533 = vsyncadd [#allocation3], 4294891520 }
  0x7a   :  { %5534 = dma.done.wait [#allocation5], 8256  }
  0x7b   :  { %5535 = vsyncadd [#allocation5], 4294959040 }
  0x7c   :  { %5536 = dma.done.wait [#allocation8], 6192  }
  0x7d   :  { %5537 = vsyncadd [#allocation8], 4294961104 }
  0x7e   :  { %5538 = dma.done.wait [#allocation11], 2064  }
  0x7f   :  { %5539 = vsyncadd [#allocation11], 4294965232  ;;  %v182_v0 = vld [vmem:[#allocation2 + $0x80] sm:$0xff]  ;;  %v183_v1 = vld [vmem:[#allocation2 + $0x88] sm:$0xff]  ;;  %vm5554_vm0 = vmmov 0  }
  0x80   :  { %v214_v2 = vld [vmem:[#allocation2 + $0x180] sm:$0xff]  ;;  %v4400_v3 = vpack.c.bf16 %v183_v1, %v182_v0  ;;  %v215_v4 = vld [vmem:[#allocation2 + $0x188] sm:$0xff]  ;;  %v184_v11 = vld [vmem:[#allocation2 + $0x90] sm:$0xff] }
  0x81   :  { %v166_v5 = vld [vmem:[#allocation2] sm:$0xff]  ;;  %v167_v6 = vld [vmem:[#allocation2 + $0x8] sm:$0xff]  ;;  %v4432_v7 = vpack.c.bf16 %v215_v4, %v214_v2  ;;  %v185_v13 = vld [vmem:[#allocation2 + $0x98] sm:$0xff] }
  0x82   :  { %v4402_v8 = vpack.c.bf16 %v167_v6, %v166_v5  ;;  %v198_v9 = vld [vmem:[#allocation2 + $0x100] sm:$0xff]  ;;  %v199_v10 = vld [vmem:[#allocation2 + $0x108] sm:$0xff]  ;;  %4401 = vmatprep.subr.bf16.mxu0 %v4400_v3  ;;  %v216_v14 = vld [vmem:[#allocation2 + $0x190] sm:$0xff]  ;;  %v4404_v16 = vpack.c.bf16 %v185_v13, %v184_v11 }
  0x83   :  { %v4434_v12 = vpack.c.bf16 %v199_v10, %v198_v9  ;;  %v217_v15 = vld [vmem:[#allocation2 + $0x198] sm:$0xff]  ;;  %4433 = vmatprep.subr.bf16.mxu1 %v4432_v7  ;;  %v168_v18 = vld [vmem:[#allocation2 + $0x10] sm:$0xff]  ;;  %v186_v23 = vld [vmem:[#allocation2 + $0xa0] sm:$0xff] }
  0x84   :  { %4403 = vmatpush3.bf16.msra.mxu0 %v4402_v8  ;;  %v4436_v17 = vpack.c.bf16 %v217_v15, %v216_v14  ;;  %v169_v19 = vld [vmem:[#allocation2 + $0x18] sm:$0xff]  ;;  %v200_v20 = vld [vmem:[#allocation2 + $0x110] sm:$0xff]  ;;  %v187_v24 = vld [vmem:[#allocation2 + $0xa8] sm:$0xff] }
  0x85   :  { %4435 = vmatpush3.bf16.msra.mxu1 %v4434_v12  ;;  %v4406_v21 = vpack.c.bf16 %v169_v19, %v168_v18  ;;  %v201_v22 = vld [vmem:[#allocation2 + $0x118] sm:$0xff]  ;;  %4405 = vmatprep.subr.bf16.mxu0 %v4404_v16  ;;  %v4408_v26 = vpack.c.bf16 %v187_v24, %v186_v23  ;;  %v218_v27 = vld [vmem:[#allocation2 + $0x1a0] sm:$0xff]  ;;  %v219_v28 = vld [vmem:[#allocation2 + $0x1a8] sm:$0xff] }
  0x86   :  { %4437 = vmatprep.subr.bf16.mxu1 %v4436_v17  ;;  %v4438_v25 = vpack.c.bf16 %v201_v22, %v200_v20  ;;  %v170_v29 = vld [vmem:[#allocation2 + $0x20] sm:$0xff]  ;;  %v4440_v30 = vpack.c.bf16 %v219_v28, %v218_v27  ;;  %v171_v31 = vld [vmem:[#allocation2 + $0x28] sm:$0xff]  ;;  %v188_v35 = vld [vmem:[#allocation2 + $0xb0] sm:$0xff] }
  0x87   :  { %v202_v32 = vld [vmem:[#allocation2 + $0x120] sm:$0xff]  ;;  %v203_v33 = vld [vmem:[#allocation2 + $0x128] sm:$0xff]  ;;  %v4410_v34 = vpack.c.bf16 %v171_v31, %v170_v29  ;;  %v189_v36 = vld [vmem:[#allocation2 + $0xb8] sm:$0xff] }
  0x88   :  { %4407 = vmatpush3.bf16.msra.mxu0 %v4406_v21  ;;  %v220_v37 = vld [vmem:[#allocation2 + $0x1b0] sm:$0xff]  ;;  %v4442_v38 = vpack.c.bf16 %v203_v33, %v202_v32  ;;  %v4412_v39 = vpack.c.bf16 %v189_v36, %v188_v35  ;;  %v221_v40 = vld [vmem:[#allocation2 + $0x1b8] sm:$0xff]  ;;  %v190_v46 = vld [vmem:[#allocation2 + $0xc0] sm:$0xff] }
  0x89   :  { %4439 = vmatpush3.bf16.msra.mxu1 %v4438_v25  ;;  %4409 = vmatprep.subr.bf16.mxu0 %v4408_v26  ;;  %v172_v41 = vld [vmem:[#allocation2 + $0x30] sm:$0xff]  ;;  %v173_v42 = vld [vmem:[#allocation2 + $0x38] sm:$0xff]  ;;  %v4444_v43 = vpack.c.bf16 %v221_v40, %v220_v37  ;;  %v191_v47 = vld [vmem:[#allocation2 + $0xc8] sm:$0xff] }
  0x8a   :  { %4441 = vmatprep.subr.bf16.mxu1 %v4440_v30  ;;  %v204_v44 = vld [vmem:[#allocation2 + $0x130] sm:$0xff]  ;;  %v205_v45 = vld [vmem:[#allocation2 + $0x138] sm:$0xff]  ;;  %v222_v48 = vld [vmem:[#allocation2 + $0x1c0] sm:$0xff]  ;;  %v4414_v50 = vpack.c.bf16 %v173_v42, %v172_v41  ;;  %v4416_v52 = vpack.c.bf16 %v191_v47, %v190_v46 }
  0x8b   :  { %v223_v49 = vld [vmem:[#allocation2 + $0x1c8] sm:$0xff]  ;;  %v4446_v51 = vpack.c.bf16 %v205_v45, %v204_v44  ;;  %v174_v53 = vld [vmem:[#allocation2 + $0x40] sm:$0xff]  ;;  %v192_v58 = vld [vmem:[#allocation2 + $0xd0] sm:$0xff] }
  0x8c   :  { %4411 = vmatpush3.bf16.msra.mxu0 %v4410_v34  ;;  %v175_v54 = vld [vmem:[#allocation2 + $0x48] sm:$0xff]  ;;  %v206_v55 = vld [vmem:[#allocation2 + $0x140] sm:$0xff]  ;;  %v4448_v56 = vpack.c.bf16 %v223_v49, %v222_v48  ;;  %v193_v59 = vld [vmem:[#allocation2 + $0xd8] sm:$0xff] }
  0x8d   :  { %4443 = vmatpush3.bf16.msra.mxu1 %v4442_v38  ;;  %4413 = vmatprep.subr.bf16.mxu0 %v4412_v39  ;;  %v207_v57 = vld [vmem:[#allocation2 + $0x148] sm:$0xff]  ;;  %v224_v60 = vld [vmem:[#allocation2 + $0x1d0] sm:$0xff]  ;;  %v225_v61 = vld [vmem:[#allocation2 + $0x1d8] sm:$0xff]  ;;  %v4418_v62 = vpack.c.bf16 %v175_v54, %v174_v53  ;;  %v4420_v0 = vpack.c.bf16 %v193_v59, %v192_v58 }
  0x8e   :  { %4445 = vmatprep.subr.bf16.mxu1 %v4444_v43  ;;  %v4450_v63 = vpack.c.bf16 %v207_v57, %v206_v55  ;;  %v176_v1 = vld [vmem:[#allocation2 + $0x50] sm:$0xff]  ;;  %v177_v2 = vld [vmem:[#allocation2 + $0x58] sm:$0xff]  ;;  %v4452_v4 = vpack.c.bf16 %v225_v61, %v224_v60  ;;  %v194_v6 = vld [vmem:[#allocation2 + $0xe0] sm:$0xff] }
  0x8f   :  { %v208_v3 = vld [vmem:[#allocation2 + $0x150] sm:$0xff]  ;;  %v209_v5 = vld [vmem:[#allocation2 + $0x158] sm:$0xff]  ;;  %v195_v7 = vld [vmem:[#allocation2 + $0xe8] sm:$0xff]  ;;  %v4422_v10 = vpack.c.bf16 %v177_v2, %v176_v1 }
  0x90   :  { %4415 = vmatpush3.bf16.msra.mxu0 %v4414_v50  ;;  %v226_v8 = vld [vmem:[#allocation2 + $0x1e0] sm:$0xff]  ;;  %v227_v9 = vld [vmem:[#allocation2 + $0x1e8] sm:$0xff]  ;;  %v4454_v13 = vpack.c.bf16 %v209_v5, %v208_v3  ;;  %v4424_v14 = vpack.c.bf16 %v195_v7, %v194_v6  ;;  %v132_v17 = vld [vmem:[%s6122_s1 + $0x18] sm:$0xff] }
  0x91   :  { %4447 = vmatpush3.bf16.msra.mxu1 %v4446_v51  ;;  %4417 = vmatprep.subr.bf16.mxu0 %v4416_v52  ;;  %v178_v11 = vld [vmem:[#allocation2 + $0x60] sm:$0xff]  ;;  %v179_v12 = vld [vmem:[#allocation2 + $0x68] sm:$0xff]  ;;  %v4456_v18 = vpack.c.bf16 %v227_v9, %v226_v8  ;;  %v196_v20 = vld [vmem:[#allocation2 + $0xf0] sm:$0xff] }
  0x92   :  { %4449 = vmatprep.subr.bf16.mxu1 %v4448_v56  ;;  %v210_v15 = vld [vmem:[#allocation2 + $0x160] sm:$0xff]  ;;  %v130_v16 = vld [vmem:[%s6122_s1 + $0x8] sm:$0xff]  ;;  %v197_v21 = vld [vmem:[#allocation2 + $0xf8] sm:$0xff]  ;;  %892 = vmatprep.mubr.f32.mxu1 %v132_v17  ;;  %v4426_v24 = vpack.c.bf16 %v179_v12, %v178_v11 }
  0x93   :  { %v211_v19 = vld [vmem:[#allocation2 + $0x168] sm:$0xff]  ;;  %822 = vmatprep.mubr.f32.mxu0 %v130_v16  ;;  %v228_v22 = vld [vmem:[#allocation2 + $0x1f0] sm:$0xff]  ;;  %v229_v23 = vld [vmem:[#allocation2 + $0x1f8] sm:$0xff]  ;;  %v4428_v26 = vpack.c.bf16 %v197_v21, %v196_v20 }
  0x94   :  { %4419 = vmatpush3.bf16.msra.mxu0 %v4418_v62  ;;  %v4458_v25 = vpack.c.bf16 %v211_v19, %v210_v15  ;;  %v180_v27 = vld [vmem:[#allocation2 + $0x70] sm:$0xff]  ;;  %v181_v28 = vld [vmem:[#allocation2 + $0x78] sm:$0xff]  ;;  %v4460_v30 = vpack.c.bf16 %v229_v23, %v228_v22  ;;  %v246_v32 = vld [vmem:[#allocation2 + $0x280] sm:$0xff] }
  0x95   :  { %4451 = vmatpush3.bf16.msra.mxu1 %v4450_v63  ;;  %4421 = vmatprep.subr.bf16.mxu0 %v4420_v0  ;;  %v212_v29 = vld [vmem:[#allocation2 + $0x170] sm:$0xff]  ;;  %v213_v31 = vld [vmem:[#allocation2 + $0x178] sm:$0xff]  ;;  %v247_v33 = vld [vmem:[#allocation2 + $0x288] sm:$0xff]  ;;  %v4430_v36 = vpack.c.bf16 %v181_v28, %v180_v27 }
  0x96   :  { %4453 = vmatprep.subr.bf16.mxu1 %v4452_v4  ;;  %v278_v34 = vld [vmem:[#allocation2 + $0x380] sm:$0xff]  ;;  %v279_v35 = vld [vmem:[#allocation2 + $0x388] sm:$0xff]  ;;  %v4462_v37 = vpack.c.bf16 %v213_v31, %v212_v29  ;;  %v4464_v38 = vpack.c.bf16 %v247_v33, %v246_v32  ;;  %v248_v44 = vld [vmem:[#allocation2 + $0x290] sm:$0xff] }
  0x97   :  { %v230_v39 = vld [vmem:[#allocation2 + $0x200] sm:$0xff]  ;;  %v231_v40 = vld [vmem:[#allocation2 + $0x208] sm:$0xff]  ;;  %v4496_v42 = vpack.c.bf16 %v279_v35, %v278_v34  ;;  %v249_v45 = vld [vmem:[#allocation2 + $0x298] sm:$0xff] }
  0x98   :  { %4423 = vmatpush3.bf16.msra.mxu0 %v4422_v10  ;;  %v262_v41 = vld [vmem:[#allocation2 + $0x300] sm:$0xff]  ;;  %v263_v43 = vld [vmem:[#allocation2 + $0x308] sm:$0xff]  ;;  %v280_v46 = vld [vmem:[#allocation2 + $0x390] sm:$0xff]  ;;  %v4466_v50 = vpack.c.bf16 %v231_v40, %v230_v39  ;;  %v4468_v52 = vpack.c.bf16 %v249_v45, %v248_v44 }
  0x99   :  { %4455 = vmatpush3.bf16.msra.mxu1 %v4454_v13  ;;  %4425 = vmatprep.subr.bf16.mxu0 %v4424_v14  ;;  %v281_v47 = vld [vmem:[#allocation2 + $0x398] sm:$0xff]  ;;  %v129_v48 = vld [vmem:[%s6122_s1] sm:$0xff]  ;;  %v131_v49 = vld [vmem:[%s6122_s1 + $0x10] sm:$0xff]  ;;  %v4498_v51 = vpack.c.bf16 %v263_v43, %v262_v41 }
  0x9a   :  { %4457 = vmatprep.subr.bf16.mxu1 %v4456_v18  ;;  %v232_v53 = vld [vmem:[#allocation2 + $0x210] sm:$0xff]  ;;  %v233_v54 = vld [vmem:[#allocation2 + $0x218] sm:$0xff]  ;;  %v4500_v56 = vpack.c.bf16 %v281_v47, %v280_v46  ;;  %v250_v58 = vld [vmem:[#allocation2 + $0x2a0] sm:$0xff] }
  0x9b   :  { %v264_v55 = vld [vmem:[#allocation2 + $0x310] sm:$0xff]  ;;  %v265_v57 = vld [vmem:[#allocation2 + $0x318] sm:$0xff]  ;;  %v251_v59 = vld [vmem:[#allocation2 + $0x2a8] sm:$0xff]  ;;  %v4470_v62 = vpack.c.bf16 %v233_v54, %v232_v53 }
  0x9c   :  { %4427 = vmatpush3.bf16.msra.mxu0 %v4426_v24  ;;  %v282_v60 = vld [vmem:[#allocation2 + $0x3a0] sm:$0xff]  ;;  %v283_v61 = vld [vmem:[#allocation2 + $0x3a8] sm:$0xff]  ;;  %v4502_v63 = vpack.c.bf16 %v265_v57, %v264_v55  ;;  %v4472_v0 = vpack.c.bf16 %v251_v59, %v250_v58  ;;  %v252_v6 = vld [vmem:[#allocation2 + $0x2b0] sm:$0xff] }
  0x9d   :  { %4459 = vmatpush3.bf16.msra.mxu1 %v4458_v25  ;;  %4429 = vmatprep.subr.bf16.mxu0 %v4428_v26  ;;  %v234_v1 = vld [vmem:[#allocation2 + $0x220] sm:$0xff]  ;;  %v235_v2 = vld [vmem:[#allocation2 + $0x228] sm:$0xff]  ;;  %v4504_v4 = vpack.c.bf16 %v283_v61, %v282_v60  ;;  %v253_v7 = vld [vmem:[#allocation2 + $0x2b8] sm:$0xff] }
  0x9e   :  { %4461 = vmatprep.subr.bf16.mxu1 %v4460_v30  ;;  %v266_v3 = vld [vmem:[#allocation2 + $0x320] sm:$0xff]  ;;  %v267_v5 = vld [vmem:[#allocation2 + $0x328] sm:$0xff]  ;;  %v284_v8 = vld [vmem:[#allocation2 + $0x3b0] sm:$0xff]  ;;  %v4474_v10 = vpack.c.bf16 %v235_v2, %v234_v1  ;;  %v4476_v12 = vpack.c.bf16 %v253_v7, %v252_v6 }
  0x9f   :  { %v285_v9 = vld [vmem:[#allocation2 + $0x3b8] sm:$0xff]  ;;  %v4506_v11 = vpack.c.bf16 %v267_v5, %v266_v3  ;;  %v236_v13 = vld [vmem:[#allocation2 + $0x230] sm:$0xff]  ;;  %v254_v18 = vld [vmem:[#allocation2 + $0x2c0] sm:$0xff] }
  0xa0   :  { %4431 = vmatpush3.bf16.msra.mxu0 %v4430_v36  ;;  %v237_v14 = vld [vmem:[#allocation2 + $0x238] sm:$0xff]  ;;  %v268_v15 = vld [vmem:[#allocation2 + $0x330] sm:$0xff]  ;;  %v4508_v16 = vpack.c.bf16 %v285_v9, %v284_v8  ;;  %v255_v19 = vld [vmem:[#allocation2 + $0x2c8] sm:$0xff] }
  0xa1   :  { %4463 = vmatpush3.bf16.msra.mxu1 %v4462_v37  ;;  %4465 = vmatprep.subr.bf16.mxu0 %v4464_v38  ;;  %v269_v17 = vld [vmem:[#allocation2 + $0x338] sm:$0xff]  ;;  %v286_v20 = vld [vmem:[#allocation2 + $0x3c0] sm:$0xff]  ;;  %v287_v21 = vld [vmem:[#allocation2 + $0x3c8] sm:$0xff]  ;;  %v4478_v23 = vpack.c.bf16 %v237_v14, %v236_v13  ;;  %v4480_v26 = vpack.c.bf16 %v255_v19, %v254_v18 }
  0xa2   :  { %4497 = vmatprep.subr.bf16.mxu1 %v4496_v42  ;;  %v134_v22 = vld [vmem:[%s6122_s1 + $0x28] sm:$0xff]  ;;  %v238_v24 = vld [vmem:[#allocation2 + $0x240] sm:$0xff]  ;;  %v4510_v25 = vpack.c.bf16 %v269_v17, %v268_v15  ;;  %v136_v29 = vld [vmem:[%s6122_s1 + $0x38] sm:$0xff]  ;;  %v4512_v30 = vpack.c.bf16 %v287_v21, %v286_v20 }
  0xa3   :  { %823 = vmatmul.mubr.f32.vlgmr.msra.gmra.mrb[0].mxu0 %v129_v48  ;;  %v239_v27 = vld [vmem:[#allocation2 + $0x248] sm:$0xff]  ;;  %v270_v28 = vld [vmem:[#allocation2 + $0x340] sm:$0xff]  ;;  %v256_v32 = vld [vmem:[#allocation2 + $0x2d0] sm:$0xff] }
  0xa4   :  { %893 = vmatmul.mubr.f32.vlgmr.msra.gmra.mrb[0].mxu1 %v131_v49  ;;  %4467 = vmatpush3.bf16.msra.mxu0 %v4466_v50  ;;  %v271_v31 = vld [vmem:[#allocation2 + $0x348] sm:$0xff]  ;;  %v257_v33 = vld [vmem:[#allocation2 + $0x2d8] sm:$0xff]  ;;  %v288_v34 = vld [vmem:[#allocation2 + $0x3d0] sm:$0xff]  ;;  %v4482_v36 = vpack.c.bf16 %v239_v27, %v238_v24 }
  0xa5   :  { %4499 = vmatpush3.bf16.msra.mxu1 %v4498_v51  ;;  %4469 = vmatprep.subr.bf16.mxu0 %v4468_v52  ;;  %v289_v35 = vld [vmem:[#allocation2 + $0x3d8] sm:$0xff]  ;;  %v4514_v37 = vpack.c.bf16 %v271_v31, %v270_v28  ;;  %v4484_v38 = vpack.c.bf16 %v257_v33, %v256_v32  ;;  %v240_v39 = vld [vmem:[#allocation2 + $0x250] sm:$0xff]  ;;  %v258_v44 = vld [vmem:[#allocation2 + $0x2e0] sm:$0xff] }
  0xa6   :  { %4501 = vmatprep.subr.bf16.mxu1 %v4500_v56  ;;  %962 = vmatprep.mubr.f32.mxu0 %v134_v22  ;;  %v241_v40 = vld [vmem:[#allocation2 + $0x258] sm:$0xff]  ;;  %v272_v41 = vld [vmem:[#allocation2 + $0x350] sm:$0xff]  ;;  %v4516_v42 = vpack.c.bf16 %v289_v35, %v288_v34  ;;  %v259_v45 = vld [vmem:[#allocation2 + $0x2e8] sm:$0xff] }
  0xa7   :  { %1032 = vmatprep.mubr.f32.mxu1 %v136_v29  ;;  %v273_v43 = vld [vmem:[#allocation2 + $0x358] sm:$0xff]  ;;  %v290_v46 = vld [vmem:[#allocation2 + $0x3e0] sm:$0xff]  ;;  %v291_v47 = vld [vmem:[#allocation2 + $0x3e8] sm:$0xff]  ;;  %v4486_v48 = vpack.c.bf16 %v241_v40, %v240_v39  ;;  %v4488_v50 = vpack.c.bf16 %v259_v45, %v258_v44 }
  0xa8   :  { %4471 = vmatpush3.bf16.msra.mxu0 %v4470_v62  ;;  %v4518_v49 = vpack.c.bf16 %v273_v43, %v272_v41  ;;  %v242_v51 = vld [vmem:[#allocation2 + $0x260] sm:$0xff]  ;;  %v243_v52 = vld [vmem:[#allocation2 + $0x268] sm:$0xff]  ;;  %v4520_v54 = vpack.c.bf16 %v291_v47, %v290_v46  ;;  %v260_v56 = vld [vmem:[#allocation2 + $0x2f0] sm:$0xff] }
  0xa9   :  { %4503 = vmatpush3.bf16.msra.mxu1 %v4502_v63  ;;  %4473 = vmatprep.subr.bf16.mxu0 %v4472_v0  ;;  %v274_v53 = vld [vmem:[#allocation2 + $0x360] sm:$0xff]  ;;  %v275_v55 = vld [vmem:[#allocation2 + $0x368] sm:$0xff]  ;;  %v261_v57 = vld [vmem:[#allocation2 + $0x2f8] sm:$0xff]  ;;  %v4490_v60 = vpack.c.bf16 %v243_v52, %v242_v51 }
  0xaa   :  { %4505 = vmatprep.subr.bf16.mxu1 %v4504_v4  ;;  %v292_v58 = vld [vmem:[#allocation2 + $0x3f0] sm:$0xff]  ;;  %v293_v59 = vld [vmem:[#allocation2 + $0x3f8] sm:$0xff]  ;;  %v4522_v61 = vpack.c.bf16 %v275_v55, %v274_v53  ;;  %v4492_v62 = vpack.c.bf16 %v261_v57, %v260_v56  ;;  %v310_v4 = vld [vmem:[#allocation2 + $0x480] sm:$0xff] }
  0xab   :  { %v244_v63 = vld [vmem:[#allocation2 + $0x270] sm:$0xff]  ;;  %v245_v0 = vld [vmem:[#allocation2 + $0x278] sm:$0xff]  ;;  %v4524_v2 = vpack.c.bf16 %v293_v59, %v292_v58  ;;  %v311_v5 = vld [vmem:[#allocation2 + $0x488] sm:$0xff] }
  0xac   :  { %4475 = vmatpush3.bf16.msra.mxu0 %v4474_v10  ;;  %v276_v1 = vld [vmem:[#allocation2 + $0x370] sm:$0xff]  ;;  %v277_v3 = vld [vmem:[#allocation2 + $0x378] sm:$0xff]  ;;  %v342_v6 = vld [vmem:[#allocation2 + $0x580] sm:$0xff]  ;;  %v4494_v8 = vpack.c.bf16 %v245_v0, %v244_v63  ;;  %v4528_v10 = vpack.c.bf16 %v311_v5, %v310_v4 }
  0xad   :  { %4507 = vmatpush3.bf16.msra.mxu1 %v4506_v11  ;;  %4477 = vmatprep.subr.bf16.mxu0 %v4476_v12  ;;  %v343_v7 = vld [vmem:[#allocation2 + $0x588] sm:$0xff]  ;;  %v4526_v9 = vpack.c.bf16 %v277_v3, %v276_v1  ;;  %v294_v11 = vld [vmem:[#allocation2 + $0x400] sm:$0xff]  ;;  %v313_v17 = vld [vmem:[#allocation2 + $0x498] sm:$0xff] }
  0xae   :  { %4509 = vmatprep.subr.bf16.mxu1 %v4508_v16  ;;  %v295_v12 = vld [vmem:[#allocation2 + $0x408] sm:$0xff]  ;;  %v326_v13 = vld [vmem:[#allocation2 + $0x500] sm:$0xff]  ;;  %v4560_v14 = vpack.c.bf16 %v343_v7, %v342_v6  ;;  %v312_v16 = vld [vmem:[#allocation2 + $0x490] sm:$0xff] }
  0xaf   :  { %v327_v15 = vld [vmem:[#allocation2 + $0x508] sm:$0xff]  ;;  %v344_v18 = vld [vmem:[#allocation2 + $0x590] sm:$0xff]  ;;  %v345_v19 = vld [vmem:[#allocation2 + $0x598] sm:$0xff]  ;;  %v4530_v21 = vpack.c.bf16 %v295_v12, %v294_v11  ;;  %v4532_v24 = vpack.c.bf16 %v313_v17, %v312_v16 }
  0xb0   :  { %4479 = vmatpush3.bf16.msra.mxu0 %v4478_v23  ;;  %v133_v20 = vld [vmem:[%s6122_s1 + $0x20] sm:$0xff]  ;;  %v135_v22 = vld [vmem:[%s6122_s1 + $0x30] sm:$0xff]  ;;  %v4562_v23 = vpack.c.bf16 %v327_v15, %v326_v13  ;;  %v4564_v28 = vpack.c.bf16 %v345_v19, %v344_v18  ;;  %v329_v29 = vld [vmem:[#allocation2 + $0x518] sm:$0xff] }
  0xb1   :  { %4511 = vmatpush3.bf16.msra.mxu1 %v4510_v25  ;;  %4481 = vmatprep.subr.bf16.mxu0 %v4480_v26  ;;  %v296_v25 = vld [vmem:[#allocation2 + $0x410] sm:$0xff]  ;;  %v297_v26 = vld [vmem:[#allocation2 + $0x418] sm:$0xff]  ;;  %v315_v31 = vld [vmem:[#allocation2 + $0x4a8] sm:$0xff] }
  0xb2   :  { %4513 = vmatprep.subr.bf16.mxu1 %v4512_v30  ;;  %v328_v27 = vld [vmem:[#allocation2 + $0x510] sm:$0xff]  ;;  %v314_v30 = vld [vmem:[#allocation2 + $0x4a0] sm:$0xff]  ;;  %v347_v33 = vld [vmem:[#allocation2 + $0x5a8] sm:$0xff]  ;;  %v4534_v35 = vpack.c.bf16 %v297_v26, %v296_v25 }
  0xb3   :  { %v346_v32 = vld [vmem:[#allocation2 + $0x5a0] sm:$0xff]  ;;  %v138_v34 = vld [vmem:[%s6122_s1 + $0x48] sm:$0xff]  ;;  %v316_v44 = vld [vmem:[#allocation2 + $0x4b0] sm:$0xff] }
  0xb4   :  { %4483 = vmatpush3.bf16.msra.mxu0 %v4482_v36  ;;  %v140_v36 = vld [vmem:[%s6122_s1 + $0x58] sm:$0xff]  ;;  %v298_v39 = vld [vmem:[#allocation2 + $0x420] sm:$0xff]  ;;  %v299_v40 = vld [vmem:[#allocation2 + $0x428] sm:$0xff] }
  0xb5   :  { %4515 = vmatpush3.bf16.msra.mxu1 %v4514_v37  ;;  %4485 = vmatprep.subr.bf16.mxu0 %v4484_v38  ;;  %v4566_v37 = vpack.c.bf16 %v329_v29, %v328_v27  ;;  %v4536_v38 = vpack.c.bf16 %v315_v31, %v314_v30  ;;  %v330_v41 = vld [vmem:[#allocation2 + $0x520] sm:$0xff]  ;;  %v331_v43 = vld [vmem:[#allocation2 + $0x528] sm:$0xff]  ;;  %v317_v45 = vld [vmem:[#allocation2 + $0x4b8] sm:$0xff] }
  0xb6   :  { %4517 = vmatprep.subr.bf16.mxu1 %v4516_v42  ;;  %v4568_v42 = vpack.c.bf16 %v347_v33, %v346_v32  ;;  %v348_v46 = vld [vmem:[#allocation2 + $0x5b0] sm:$0xff]  ;;  %v349_v47 = vld [vmem:[#allocation2 + $0x5b8] sm:$0xff]  ;;  %v318_v56 = vld [vmem:[#allocation2 + $0x4c0] sm:$0xff] }
  0xb7   :  { %v300_v51 = vld [vmem:[#allocation2 + $0x430] sm:$0xff]  ;;  %v301_v52 = vld [vmem:[#allocation2 + $0x438] sm:$0xff]  ;;  %v319_v57 = vld [vmem:[#allocation2 + $0x4c8] sm:$0xff] }
  0xb8   :  { %4487 = vmatpush3.bf16.msra.mxu0 %v4486_v48  ;;  %v4538_v48 = vpack.c.bf16 %v299_v40, %v298_v39  ;;  %v332_v53 = vld [vmem:[#allocation2 + $0x530] sm:$0xff]  ;;  %v333_v55 = vld [vmem:[#allocation2 + $0x538] sm:$0xff]  ;;  %v350_v58 = vld [vmem:[#allocation2 + $0x5c0] sm:$0xff] }
  0xb9   :  { %4519 = vmatpush3.bf16.msra.mxu1 %v4518_v49  ;;  %4489 = vmatprep.subr.bf16.mxu0 %v4488_v50  ;;  %v4570_v49 = vpack.c.bf16 %v331_v43, %v330_v41  ;;  %v4540_v50 = vpack.c.bf16 %v317_v45, %v316_v44  ;;  %v351_v59 = vld [vmem:[#allocation2 + $0x5c8] sm:$0xff]  ;;  %v302_v63 = vld [vmem:[#allocation2 + $0x440] sm:$0xff]  ;;  %v320_v4 = vld [vmem:[#allocation2 + $0x4d0] sm:$0xff] }
  0xba   :  { %4521 = vmatprep.subr.bf16.mxu1 %v4520_v54  ;;  %v4572_v54 = vpack.c.bf16 %v349_v47, %v348_v46  ;;  %v303_v0 = vld [vmem:[#allocation2 + $0x448] sm:$0xff]  ;;  %v334_v1 = vld [vmem:[#allocation2 + $0x540] sm:$0xff]  ;;  %v321_v5 = vld [vmem:[#allocation2 + $0x4d8] sm:$0xff] }
  0xbb   :  { %v335_v3 = vld [vmem:[#allocation2 + $0x548] sm:$0xff]  ;;  %v352_v6 = vld [vmem:[#allocation2 + $0x5d0] sm:$0xff]  ;;  %v353_v7 = vld [vmem:[#allocation2 + $0x5d8] sm:$0xff] }
  0xbc   :  { %4491 = vmatpush3.bf16.msra.mxu0 %v4490_v60  ;;  %v4542_v60 = vpack.c.bf16 %v301_v52, %v300_v51  ;;  %v304_v11 = vld [vmem:[#allocation2 + $0x450] sm:$0xff]  ;;  %v305_v12 = vld [vmem:[#allocation2 + $0x458] sm:$0xff]  ;;  %v322_v16 = vld [vmem:[#allocation2 + $0x4e0] sm:$0xff] }
  0xbd   :  { %4523 = vmatpush3.bf16.msra.mxu1 %v4522_v61  ;;  %4493 = vmatprep.subr.bf16.mxu0 %v4492_v62  ;;  %v4574_v61 = vpack.c.bf16 %v333_v55, %v332_v53  ;;  %v4544_v62 = vpack.c.bf16 %v319_v57, %v318_v56  ;;  %v336_v13 = vld [vmem:[#allocation2 + $0x550] sm:$0xff]  ;;  %v337_v15 = vld [vmem:[#allocation2 + $0x558] sm:$0xff]  ;;  %v323_v17 = vld [vmem:[#allocation2 + $0x4e8] sm:$0xff] }
  0xbe   :  { %4525 = vmatprep.subr.bf16.mxu1 %v4524_v2  ;;  %v4576_v2 = vpack.c.bf16 %v351_v59, %v350_v58  ;;  %v354_v18 = vld [vmem:[#allocation2 + $0x5e0] sm:$0xff]  ;;  %v355_v19 = vld [vmem:[#allocation2 + $0x5e8] sm:$0xff]  ;;  %v325_v29 = vld [vmem:[#allocation2 + $0x4f8] sm:$0xff] }
  0xbf   :  { %v338_v25 = vld [vmem:[#allocation2 + $0x560] sm:$0xff]  ;;  %v4584_v26 = vpack.c.bf16 %v355_v19, %v354_v18  ;;  %v339_v27 = vld [vmem:[#allocation2 + $0x568] sm:$0xff]  ;;  %v356_v30 = vld [vmem:[#allocation2 + $0x5f0] sm:$0xff] }
  0xc0   :  { %4495 = vmatpush3.bf16.msra.mxu0 %v4494_v8  ;;  %v4546_v8 = vpack.c.bf16 %v303_v0, %v302_v63  ;;  %v357_v31 = vld [vmem:[#allocation2 + $0x5f8] sm:$0xff]  ;;  %v4586_v33 = vpack.c.bf16 %v339_v27, %v338_v25  ;;  %v374_v40 = vld [vmem:[#allocation2 + $0x680] sm:$0xff]  ;;  %v375_v41 = vld [vmem:[#allocation2 + $0x688] sm:$0xff] }
  0xc1   :  { %4527 = vmatpush3.bf16.msra.mxu1 %v4526_v9  ;;  %4529 = vmatprep.subr.bf16.mxu0 %v4528_v10  ;;  %v4578_v9 = vpack.c.bf16 %v335_v3, %v334_v1  ;;  %v4548_v10 = vpack.c.bf16 %v321_v5, %v320_v4  ;;  %v341_v39 = vld [vmem:[#allocation2 + $0x578] sm:$0xff]  ;;  %v407_v43 = vld [vmem:[#allocation2 + $0x788] sm:$0xff]  ;;  %v4592_v46 = vpack.c.bf16 %v375_v41, %v374_v40  ;;  %v358_v47 = vld [vmem:[#allocation2 + $0x600] sm:$0xff] }
  0xc2   :  { %4561 = vmatprep.subr.bf16.mxu1 %v4560_v14  ;;  %v4580_v14 = vpack.c.bf16 %v353_v7, %v352_v6  ;;  %v391_v51 = vld [vmem:[#allocation2 + $0x708] sm:$0xff]  ;;  %v376_v52 = vld [vmem:[#allocation2 + $0x690] sm:$0xff]  ;;  %v377_v53 = vld [vmem:[#allocation2 + $0x698] sm:$0xff] }
  0xc3   :  { %963 = vmatmul.mubr.f32.vlgmr.msra.gmra.mrb[2].mxu0 %v133_v20  ;;  %v4550_v20 = vpack.c.bf16 %v305_v12, %v304_v11  ;;  %v409_v55 = vld [vmem:[#allocation2 + $0x798] sm:$0xff]  ;;  %v137_v56 = vld [vmem:[%s6122_s1 + $0x40] sm:$0xff]  ;;  %v139_v58 = vld [vmem:[%s6122_s1 + $0x50] sm:$0xff] }
  0xc4   :  { %4531 = vmatpush3.bf16.msra.mxu0 %v4530_v21  ;;  %1033 = vmatmul.mubr.f32.vlgmr.msra.gmra.mrb[2].mxu1 %v135_v22  ;;  %v4582_v21 = vpack.c.bf16 %v337_v15, %v336_v13  ;;  %v4552_v22 = vpack.c.bf16 %v323_v17, %v322_v16  ;;  %v392_v63 = vld [vmem:[#allocation2 + $0x710] sm:$0xff]  ;;  %v393_v1 = vld [vmem:[#allocation2 + $0x718] sm:$0xff]  ;;  %v379_v3 = vld [vmem:[#allocation2 + $0x6a8] sm:$0xff] }
  0xc5   :  { %4563 = vmatpush3.bf16.msra.mxu1 %v4562_v23  ;;  %4533 = vmatprep.subr.bf16.mxu0 %v4532_v24  ;;  %v306_v23 = vld [vmem:[#allocation2 + $0x460] sm:$0xff]  ;;  %v307_v24 = vld [vmem:[#allocation2 + $0x468] sm:$0xff]  ;;  %v380_v16 = vld [vmem:[#allocation2 + $0x6b0] sm:$0xff] }
  0xc6   :  { %4565 = vmatprep.subr.bf16.mxu1 %v4564_v28  ;;  %1102 = vmatprep.mubr.f32.mxu0 %v138_v34  ;;  %v324_v28 = vld [vmem:[#allocation2 + $0x4f0] sm:$0xff]  ;;  %v4554_v32 = vpack.c.bf16 %v307_v24, %v306_v23  ;;  %v410_v4 = vld [vmem:[#allocation2 + $0x7a0] sm:$0xff]  ;;  %v411_v5 = vld [vmem:[#allocation2 + $0x7a8] sm:$0xff] }
  0xc7   :  { %1172 = vmatprep.mubr.f32.mxu1 %v140_v36  ;;  %v4556_v34 = vpack.c.bf16 %v325_v29, %v324_v28  ;;  %v309_v36 = vld [vmem:[#allocation2 + $0x478] sm:$0xff]  ;;  %v142_v6 = vld [vmem:[%s6122_s1 + $0x68] sm:$0xff]  ;;  %v362_v11 = vld [vmem:[#allocation2 + $0x620] sm:$0xff] }
  0xc8   :  { %4535 = vmatpush3.bf16.msra.mxu0 %v4534_v35  ;;  %v308_v35 = vld [vmem:[#allocation2 + $0x470] sm:$0xff]  ;;  %v363_v12 = vld [vmem:[#allocation2 + $0x628] sm:$0xff]  ;;  %v394_v13 = vld [vmem:[#allocation2 + $0x720] sm:$0xff] }
  0xc9   :  { %4567 = vmatpush3.bf16.msra.mxu1 %v4566_v37  ;;  %4537 = vmatprep.subr.bf16.mxu0 %v4536_v38  ;;  %v340_v37 = vld [vmem:[#allocation2 + $0x570] sm:$0xff]  ;;  %v4588_v38 = vpack.c.bf16 %v357_v31, %v356_v30  ;;  %v4558_v44 = vpack.c.bf16 %v309_v36, %v308_v35  ;;  %v395_v15 = vld [vmem:[#allocation2 + $0x728] sm:$0xff]  ;;  %v381_v17 = vld [vmem:[#allocation2 + $0x6b8] sm:$0xff] }
  0xca   :  { %4569 = vmatprep.subr.bf16.mxu1 %v4568_v42  ;;  %v406_v42 = vld [vmem:[#allocation2 + $0x780] sm:$0xff]  ;;  %v4590_v45 = vpack.c.bf16 %v341_v39, %v340_v37  ;;  %v412_v18 = vld [vmem:[#allocation2 + $0x7b0] sm:$0xff]  ;;  %v413_v19 = vld [vmem:[#allocation2 + $0x7b8] sm:$0xff] }
  0xcb   :  { %v364_v23 = vld [vmem:[#allocation2 + $0x630] sm:$0xff]  ;;  %v365_v24 = vld [vmem:[#allocation2 + $0x638] sm:$0xff]  ;;  %v382_v28 = vld [vmem:[#allocation2 + $0x6c0] sm:$0xff] }
  0xcc   :  { %4539 = vmatpush3.bf16.msra.mxu0 %v4538_v48  ;;  %v359_v48 = vld [vmem:[#allocation2 + $0x608] sm:$0xff]  ;;  %v396_v25 = vld [vmem:[#allocation2 + $0x730] sm:$0xff]  ;;  %v397_v27 = vld [vmem:[#allocation2 + $0x738] sm:$0xff] }
  0xcd   :  { %4571 = vmatpush3.bf16.msra.mxu1 %v4570_v49  ;;  %4541 = vmatprep.subr.bf16.mxu0 %v4540_v50  ;;  %v390_v49 = vld [vmem:[#allocation2 + $0x700] sm:$0xff]  ;;  %v4624_v50 = vpack.c.bf16 %v407_v43, %v406_v42  ;;  %v4594_v57 = vpack.c.bf16 %v359_v48, %v358_v47  ;;  %v383_v29 = vld [vmem:[#allocation2 + $0x6c8] sm:$0xff]  ;;  %v384_v40 = vld [vmem:[#allocation2 + $0x6d0] sm:$0xff] }
  0xce   :  { %4573 = vmatprep.subr.bf16.mxu1 %v4572_v54  ;;  %v408_v54 = vld [vmem:[#allocation2 + $0x790] sm:$0xff]  ;;  %v4626_v59 = vpack.c.bf16 %v391_v51, %v390_v49  ;;  %v414_v30 = vld [vmem:[#allocation2 + $0x7c0] sm:$0xff]  ;;  %v415_v31 = vld [vmem:[#allocation2 + $0x7c8] sm:$0xff] }
  0xcf   :  { %v4628_v0 = vpack.c.bf16 %v409_v55, %v408_v54  ;;  %v366_v35 = vld [vmem:[#allocation2 + $0x640] sm:$0xff]  ;;  %v367_v36 = vld [vmem:[#allocation2 + $0x648] sm:$0xff]  ;;  %v385_v41 = vld [vmem:[#allocation2 + $0x6d8] sm:$0xff] }
  0xd0   :  { %4543 = vmatpush3.bf16.msra.mxu0 %v4542_v60  ;;  %v4596_v60 = vpack.c.bf16 %v377_v53, %v376_v52  ;;  %v398_v37 = vld [vmem:[#allocation2 + $0x740] sm:$0xff]  ;;  %v399_v39 = vld [vmem:[#allocation2 + $0x748] sm:$0xff]  ;;  %v416_v42 = vld [vmem:[#allocation2 + $0x7d0] sm:$0xff] }
  0xd1   :  { %4575 = vmatpush3.bf16.msra.mxu1 %v4574_v61  ;;  %4545 = vmatprep.subr.bf16.mxu0 %v4544_v62  ;;  %v360_v61 = vld [vmem:[#allocation2 + $0x610] sm:$0xff]  ;;  %v361_v62 = vld [vmem:[#allocation2 + $0x618] sm:$0xff]  ;;  %v386_v52 = vld [vmem:[#allocation2 + $0x6e0] sm:$0xff] }
  0xd2   :  { %4577 = vmatprep.subr.bf16.mxu1 %v4576_v2  ;;  %v378_v2 = vld [vmem:[#allocation2 + $0x6a0] sm:$0xff]  ;;  %v4598_v7 = vpack.c.bf16 %v361_v62, %v360_v61  ;;  %v417_v43 = vld [vmem:[#allocation2 + $0x7d8] sm:$0xff]  ;;  %v368_v47 = vld [vmem:[#allocation2 + $0x650] sm:$0xff] }
  0xd3   :  { %v369_v48 = vld [vmem:[#allocation2 + $0x658] sm:$0xff]  ;;  %v400_v49 = vld [vmem:[#allocation2 + $0x750] sm:$0xff]  ;;  %v387_v53 = vld [vmem:[#allocation2 + $0x6e8] sm:$0xff] }
  0xd4   :  { %4547 = vmatpush3.bf16.msra.mxu0 %v4546_v8  ;;  %v144_v8 = vld [vmem:[%s6122_s1 + $0x78] sm:$0xff]  ;;  %v418_v54 = vld [vmem:[#allocation2 + $0x7e0] sm:$0xff]  ;;  %v419_v55 = vld [vmem:[#allocation2 + $0x7e8] sm:$0xff] }
  0xd5   :  { %4579 = vmatpush3.bf16.msra.mxu1 %v4578_v9  ;;  %4549 = vmatprep.subr.bf16.mxu0 %v4548_v10  ;;  %v4630_v9 = vpack.c.bf16 %v393_v1, %v392_v63  ;;  %v4600_v10 = vpack.c.bf16 %v379_v3, %v378_v2  ;;  %v401_v51 = vld [vmem:[#allocation2 + $0x758] sm:$0xff]  ;;  %v402_v61 = vld [vmem:[#allocation2 + $0x760] sm:$0xff]  ;;  %v4648_v62 = vpack.c.bf16 %v419_v55, %v418_v54  ;;  %v403_v63 = vld [vmem:[#allocation2 + $0x768] sm:$0xff] }
  0xd6   :  { %4581 = vmatprep.subr.bf16.mxu1 %v4580_v14  ;;  %v4632_v14 = vpack.c.bf16 %v411_v5, %v410_v4  ;;  %v389_v1 = vld [vmem:[#allocation2 + $0x6f8] sm:$0xff]  ;;  %v420_v2 = vld [vmem:[#allocation2 + $0x7f0] sm:$0xff]  ;;  %v4650_v5 = vpack.c.bf16 %v403_v63, %v402_v61 }
  0xd7   :  { %v421_v3 = vld [vmem:[#allocation2 + $0x7f8] sm:$0xff]  ;;  %v476_v54 = vld [vmem:[#allocation2 + $0x9b0] sm:$0xff] }
  0xd8   :  { %4551 = vmatpush3.bf16.msra.mxu0 %v4550_v20  ;;  %v4602_v20 = vpack.c.bf16 %v363_v12, %v362_v11  ;;  %v405_v11 = vld [vmem:[#allocation2 + $0x778] sm:$0xff]  ;;  %v438_v12 = vld [vmem:[#allocation2 + $0x880] sm:$0xff]  ;;  %v460_v61 = vld [vmem:[#allocation2 + $0x930] sm:$0xff] }
  0xd9   :  { %4583 = vmatpush3.bf16.msra.mxu1 %v4582_v21  ;;  %4553 = vmatprep.subr.bf16.mxu0 %v4552_v22  ;;  %v4634_v21 = vpack.c.bf16 %v395_v15, %v394_v13  ;;  %v4604_v22 = vpack.c.bf16 %v381_v17, %v380_v16  ;;  %v439_v13 = vld [vmem:[#allocation2 + $0x888] sm:$0xff]  ;;  %v477_v55 = vld [vmem:[#allocation2 + $0x9b8] sm:$0xff] }
  0xda   :  { %4585 = vmatprep.subr.bf16.mxu1 %v4584_v26  ;;  %v4636_v26 = vpack.c.bf16 %v413_v19, %v412_v18  ;;  %v471_v15 = vld [vmem:[#allocation2 + $0x988] sm:$0xff]  ;;  %v4656_v18 = vpack.c.bf16 %v439_v13, %v438_v12  ;;  %v422_v19 = vld [vmem:[#allocation2 + $0x800] sm:$0xff]  ;;  %v461_v63 = vld [vmem:[#allocation2 + $0x938] sm:$0xff] }
  0xdb   :  { %v448_v12 = vld [vmem:[#allocation2 + $0x8d0] sm:$0xff]  ;;  %v449_v13 = vld [vmem:[#allocation2 + $0x8d8] sm:$0xff] }
  0xdc   :  { %4555 = vmatpush3.bf16.msra.mxu0 %v4554_v32  ;;  %v4606_v32 = vpack.c.bf16 %v365_v24, %v364_v23  ;;  %v455_v23 = vld [vmem:[#allocation2 + $0x908] sm:$0xff]  ;;  %v440_v24 = vld [vmem:[#allocation2 + $0x890] sm:$0xff] }
  0xdd   :  { %4587 = vmatpush3.bf16.msra.mxu1 %v4586_v33  ;;  %4557 = vmatprep.subr.bf16.mxu0 %v4556_v34  ;;  %v4638_v33 = vpack.c.bf16 %v397_v27, %v396_v25  ;;  %v4608_v34 = vpack.c.bf16 %v383_v29, %v382_v28  ;;  %v441_v25 = vld [vmem:[#allocation2 + $0x898] sm:$0xff]  ;;  %v141_v28 = vld [vmem:[%s6122_s1 + $0x60] sm:$0xff] }
  0xde   :  { %4589 = vmatprep.subr.bf16.mxu1 %v4588_v38  ;;  %v4640_v38 = vpack.c.bf16 %v415_v31, %v414_v30  ;;  %v473_v27 = vld [vmem:[#allocation2 + $0x998] sm:$0xff]  ;;  %v143_v30 = vld [vmem:[%s6122_s1 + $0x70] sm:$0xff] }
  0xe0   :  { %4559 = vmatpush3.bf16.msra.mxu0 %v4558_v44  ;;  %v4610_v44 = vpack.c.bf16 %v367_v36, %v366_v35  ;;  %v456_v35 = vld [vmem:[#allocation2 + $0x910] sm:$0xff] }
  0xe1   :  { %4591 = vmatpush3.bf16.msra.mxu1 %v4590_v45  ;;  %4593 = vmatprep.subr.bf16.mxu0 %v4592_v46  ;;  %v4642_v45 = vpack.c.bf16 %v399_v39, %v398_v37  ;;  %v4612_v46 = vpack.c.bf16 %v385_v41, %v384_v40  ;;  %v457_v37 = vld [vmem:[#allocation2 + $0x918] sm:$0xff]  ;;  %v443_v39 = vld [vmem:[#allocation2 + $0x8a8] sm:$0xff]  ;;  %v474_v40 = vld [vmem:[#allocation2 + $0x9a0] sm:$0xff] }
  0xe2   :  { %4625 = vmatprep.subr.bf16.mxu1 %v4624_v50  ;;  %v4644_v50 = vpack.c.bf16 %v417_v43, %v416_v42  ;;  %v475_v41 = vld [vmem:[#allocation2 + $0x9a8] sm:$0xff] }
  0xe3   :  { %1103 = vmatmul.mubr.f32.vlgmr.msra.gmra.mrb[4].mxu0 %v137_v56  ;;  %v4614_v56 = vpack.c.bf16 %v369_v48, %v368_v47  ;;  %v146_v42 = vld [vmem:[%s6122_s1 + $0x88] sm:$0xff]  ;;  %v426_v47 = vld [vmem:[#allocation2 + $0x820] sm:$0xff] }
  0xe4   :  { %4595 = vmatpush3.bf16.msra.mxu0 %v4594_v57  ;;  %1173 = vmatmul.mubr.f32.vlgmr.msra.gmra.mrb[4].mxu1 %v139_v58  ;;  %v4646_v57 = vpack.c.bf16 %v401_v51, %v400_v49  ;;  %v4616_v58 = vpack.c.bf16 %v387_v53, %v386_v52  ;;  %v427_v48 = vld [vmem:[#allocation2 + $0x828] sm:$0xff]  ;;  %v458_v49 = vld [vmem:[#allocation2 + $0x920] sm:$0xff]  ;;  %v444_v52 = vld [vmem:[#allocation2 + $0x8b0] sm:$0xff] }
  0xe5   :  { %4627 = vmatpush3.bf16.msra.mxu1 %v4626_v59  ;;  %4597 = vmatprep.subr.bf16.mxu0 %v4596_v60  ;;  %v370_v59 = vld [vmem:[#allocation2 + $0x660] sm:$0xff]  ;;  %v371_v60 = vld [vmem:[#allocation2 + $0x668] sm:$0xff]  ;;  %v445_v53 = vld [vmem:[#allocation2 + $0x8b8] sm:$0xff] }
  0xe6   :  { %4629 = vmatprep.subr.bf16.mxu1 %v4628_v0  ;;  %1242 = vmatprep.mubr.f32.mxu0 %v142_v6  ;;  %v388_v0 = vld [vmem:[#allocation2 + $0x6f0] sm:$0xff]  ;;  %v4618_v4 = vpack.c.bf16 %v371_v60, %v370_v59  ;;  %v459_v51 = vld [vmem:[#allocation2 + $0x928] sm:$0xff]  ;;  %v429_v60 = vld [vmem:[#allocation2 + $0x838] sm:$0xff] }
  0xe7   :  { %1312 = vmatprep.mubr.f32.mxu1 %v144_v8  ;;  %v4620_v6 = vpack.c.bf16 %v389_v1, %v388_v0  ;;  %v373_v8 = vld [vmem:[#allocation2 + $0x678] sm:$0xff]  ;;  %v428_v59 = vld [vmem:[#allocation2 + $0x830] sm:$0xff]  ;;  %v446_v0 = vld [vmem:[#allocation2 + $0x8c0] sm:$0xff] }
  0xe8   :  { %4599 = vmatpush3.bf16.msra.mxu0 %v4598_v7  ;;  %v372_v7 = vld [vmem:[#allocation2 + $0x670] sm:$0xff]  ;;  %v447_v1 = vld [vmem:[#allocation2 + $0x8c8] sm:$0xff] }
  0xe9   :  { %4631 = vmatpush3.bf16.msra.mxu1 %v4630_v9  ;;  %4601 = vmatprep.subr.bf16.mxu0 %v4600_v10  ;;  %v404_v9 = vld [vmem:[#allocation2 + $0x770] sm:$0xff]  ;;  %v4652_v10 = vpack.c.bf16 %v421_v3, %v420_v2  ;;  %v4622_v16 = vpack.c.bf16 %v373_v8, %v372_v7  ;;  %v478_v2 = vld [vmem:[#allocation2 + $0x9c0] sm:$0xff]  ;;  %v479_v3 = vld [vmem:[#allocation2 + $0x9c8] sm:$0xff] }
  0xea   :  { %4633 = vmatprep.subr.bf16.mxu1 %v4632_v14  ;;  %v470_v14 = vld [vmem:[#allocation2 + $0x980] sm:$0xff]  ;;  %v4654_v17 = vpack.c.bf16 %v405_v11, %v404_v9  ;;  %v431_v8 = vld [vmem:[#allocation2 + $0x848] sm:$0xff] }
  0xeb   :  { %v430_v7 = vld [vmem:[#allocation2 + $0x840] sm:$0xff]  ;;  %v463_v11 = vld [vmem:[#allocation2 + $0x948] sm:$0xff] }
  0xec   :  { %4603 = vmatpush3.bf16.msra.mxu0 %v4602_v20  ;;  %v423_v20 = vld [vmem:[#allocation2 + $0x808] sm:$0xff]  ;;  %v462_v9 = vld [vmem:[#allocation2 + $0x940] sm:$0xff] }
  0xed   :  { %4635 = vmatpush3.bf16.msra.mxu1 %v4634_v21  ;;  %4605 = vmatprep.subr.bf16.mxu0 %v4604_v22  ;;  %v454_v21 = vld [vmem:[#allocation2 + $0x900] sm:$0xff]  ;;  %v4688_v22 = vpack.c.bf16 %v471_v15, %v470_v14  ;;  %v4658_v29 = vpack.c.bf16 %v423_v20, %v422_v19  ;;  %v480_v14 = vld [vmem:[#allocation2 + $0x9d0] sm:$0xff]  ;;  %v481_v15 = vld [vmem:[#allocation2 + $0x9d8] sm:$0xff] }
  0xee   :  { %4637 = vmatprep.subr.bf16.mxu1 %v4636_v26  ;;  %v472_v26 = vld [vmem:[#allocation2 + $0x990] sm:$0xff]  ;;  %v4690_v31 = vpack.c.bf16 %v455_v23, %v454_v21  ;;  %v433_v20 = vld [vmem:[#allocation2 + $0x858] sm:$0xff] }
  0xef   :  { %v4692_v36 = vpack.c.bf16 %v473_v27, %v472_v26  ;;  %v432_v19 = vld [vmem:[#allocation2 + $0x850] sm:$0xff]  ;;  %v465_v23 = vld [vmem:[#allocation2 + $0x958] sm:$0xff]  ;;  %v482_v26 = vld [vmem:[#allocation2 + $0x9e0] sm:$0xff] }
  0xf0   :  { %4607 = vmatpush3.bf16.msra.mxu0 %v4606_v32  ;;  %v4660_v32 = vpack.c.bf16 %v441_v25, %v440_v24  ;;  %v464_v21 = vld [vmem:[#allocation2 + $0x950] sm:$0xff]  ;;  %v450_v24 = vld [vmem:[#allocation2 + $0x8e0] sm:$0xff]  ;;  %v451_v25 = vld [vmem:[#allocation2 + $0x8e8] sm:$0xff] }
  0xf1   :  { %4639 = vmatpush3.bf16.msra.mxu1 %v4638_v33  ;;  %4609 = vmatprep.subr.bf16.mxu0 %v4608_v34  ;;  %v424_v33 = vld [vmem:[#allocation2 + $0x810] sm:$0xff]  ;;  %v425_v34 = vld [vmem:[#allocation2 + $0x818] sm:$0xff]  ;;  %v483_v27 = vld [vmem:[#allocation2 + $0x9e8] sm:$0xff] }
  0xf2   :  { %4641 = vmatprep.subr.bf16.mxu1 %v4640_v38  ;;  %v442_v38 = vld [vmem:[#allocation2 + $0x8a0] sm:$0xff]  ;;  %v4662_v43 = vpack.c.bf16 %v425_v34, %v424_v33  ;;  %v4712_v34 = vpack.c.bf16 %v483_v27, %v482_v26  ;;  %v540_v26 = vld [vmem:[#allocation2 + $0xbb0] sm:$0xff]  ;;  %v541_v27 = vld [vmem:[#allocation2 + $0xbb8] sm:$0xff] }
  0xf3   :  { %v466_v33 = vld [vmem:[#allocation2 + $0x960] sm:$0xff] }
  0xf4   :  { %4611 = vmatpush3.bf16.msra.mxu0 %v4610_v44  ;;  %v148_v44 = vld [vmem:[%s6122_s1 + $0x98] sm:$0xff] }
  0xf5   :  { %4643 = vmatpush3.bf16.msra.mxu1 %v4642_v45  ;;  %4613 = vmatprep.subr.bf16.mxu0 %v4612_v46  ;;  %v4694_v45 = vpack.c.bf16 %v457_v37, %v456_v35  ;;  %v4664_v46 = vpack.c.bf16 %v443_v39, %v442_v38  ;;  %v467_v35 = vld [vmem:[#allocation2 + $0x968] sm:$0xff]  ;;  %v453_v37 = vld [vmem:[#allocation2 + $0x8f8] sm:$0xff]  ;;  %v484_v38 = vld [vmem:[#allocation2 + $0x9f0] sm:$0xff] }
  0xf6   :  { %4645 = vmatprep.subr.bf16.mxu1 %v4644_v50  ;;  %v4696_v50 = vpack.c.bf16 %v475_v41, %v474_v40  ;;  %v485_v39 = vld [vmem:[#allocation2 + $0x9f8] sm:$0xff]  ;;  %v4714_v41 = vpack.c.bf16 %v467_v35, %v466_v33  ;;  %v524_v33 = vld [vmem:[#allocation2 + $0xb30] sm:$0xff] }
  0xf7   :  { %v525_v35 = vld [vmem:[#allocation2 + $0xb38] sm:$0xff] }
  0xf8   :  { %4615 = vmatpush3.bf16.msra.mxu0 %v4614_v56  ;;  %v4666_v56 = vpack.c.bf16 %v427_v48, %v426_v47  ;;  %v469_v47 = vld [vmem:[#allocation2 + $0x978] sm:$0xff]  ;;  %v502_v48 = vld [vmem:[#allocation2 + $0xa80] sm:$0xff] }
  0xf9   :  { %4647 = vmatpush3.bf16.msra.mxu1 %v4646_v57  ;;  %4617 = vmatprep.subr.bf16.mxu0 %v4616_v58  ;;  %v4698_v57 = vpack.c.bf16 %v459_v51, %v458_v49  ;;  %v4668_v58 = vpack.c.bf16 %v445_v53, %v444_v52  ;;  %v503_v49 = vld [vmem:[#allocation2 + $0xa88] sm:$0xff] }
  0xfa   :  { %4649 = vmatprep.subr.bf16.mxu1 %v4648_v62  ;;  %v4700_v62 = vpack.c.bf16 %v477_v55, %v476_v54  ;;  %v535_v51 = vld [vmem:[#allocation2 + $0xb88] sm:$0xff]  ;;  %v4720_v54 = vpack.c.bf16 %v503_v49, %v502_v48  ;;  %v486_v55 = vld [vmem:[#allocation2 + $0xa00] sm:$0xff]  ;;  %v512_v48 = vld [vmem:[#allocation2 + $0xad0] sm:$0xff] }
  0xfb   :  { %v513_v49 = vld [vmem:[#allocation2 + $0xad8] sm:$0xff] }
  0xfc   :  { %4619 = vmatpush3.bf16.msra.mxu0 %v4618_v4  ;;  %v4670_v4 = vpack.c.bf16 %v429_v60, %v428_v59  ;;  %v519_v59 = vld [vmem:[#allocation2 + $0xb08] sm:$0xff]  ;;  %v504_v60 = vld [vmem:[#allocation2 + $0xa90] sm:$0xff] }
  0xfd   :  { %4651 = vmatpush3.bf16.msra.mxu1 %v4650_v5  ;;  %4621 = vmatprep.subr.bf16.mxu0 %v4620_v6  ;;  %v4702_v5 = vpack.c.bf16 %v461_v63, %v460_v61  ;;  %v4672_v6 = vpack.c.bf16 %v447_v1, %v446_v0  ;;  %v505_v61 = vld [vmem:[#allocation2 + $0xa98] sm:$0xff]  ;;  %v145_v0 = vld [vmem:[%s6122_s1 + $0x80] sm:$0xff] }
  0xfe   :  { %4653 = vmatprep.subr.bf16.mxu1 %v4652_v10  ;;  %v4704_v10 = vpack.c.bf16 %v479_v3, %v478_v2  ;;  %v537_v63 = vld [vmem:[#allocation2 + $0xb98] sm:$0xff]  ;;  %v147_v2 = vld [vmem:[%s6122_s1 + $0x90] sm:$0xff] }
 0x100   :  { %4623 = vmatpush3.bf16.msra.mxu0 %v4622_v16  ;;  %v4674_v16 = vpack.c.bf16 %v431_v8, %v430_v7  ;;  %v520_v7 = vld [vmem:[#allocation2 + $0xb10] sm:$0xff] }
 0x101   :  { %4655 = vmatpush3.bf16.msra.mxu1 %v4654_v17  ;;  %4657 = vmatprep.subr.bf16.mxu0 %v4656_v18  ;;  %v4706_v17 = vpack.c.bf16 %v463_v11, %v462_v9  ;;  %v4676_v18 = vpack.c.bf16 %v449_v13, %v448_v12  ;;  %v521_v9 = vld [vmem:[#allocation2 + $0xb18] sm:$0xff]  ;;  %v507_v11 = vld [vmem:[#allocation2 + $0xaa8] sm:$0xff]  ;;  %v538_v12 = vld [vmem:[#allocation2 + $0xba0] sm:$0xff] }
 0x102   :  { %4689 = vmatprep.subr.bf16.mxu1 %v4688_v22  ;;  %v4708_v22 = vpack.c.bf16 %v481_v15, %v480_v14  ;;  %v539_v13 = vld [vmem:[#allocation2 + $0xba8] sm:$0xff] }
 0x103   :  { %1243 = vmatmul.mubr.f32.vlgmr.msra.gmra.mrb[6].mxu0 %v141_v28  ;;  %v4678_v28 = vpack.c.bf16 %v433_v20, %v432_v19  ;;  %v150_v14 = vld [vmem:[%s6122_s1 + $0xa8] sm:$0xff]  ;;  %v490_v19 = vld [vmem:[#allocation2 + $0xa20] sm:$0xff] }
 0x104   :  { %4659 = vmatpush3.bf16.msra.mxu0 %v4658_v29  ;;  %1313 = vmatmul.mubr.f32.vlgmr.msra.gmra.mrb[6].mxu1 %v143_v30  ;;  %v4710_v29 = vpack.c.bf16 %v465_v23, %v464_v21  ;;  %v4680_v30 = vpack.c.bf16 %v451_v25, %v450_v24  ;;  %v491_v20 = vld [vmem:[#allocation2 + $0xa28] sm:$0xff]  ;;  %v522_v21 = vld [vmem:[#allocation2 + $0xb20] sm:$0xff]  ;;  %v508_v24 = vld [vmem:[#allocation2 + $0xab0] sm:$0xff] }
 0x105   :  { %4691 = vmatpush3.bf16.msra.mxu1 %v4690_v31  ;;  %4661 = vmatprep.subr.bf16.mxu0 %v4660_v32  ;;  %v434_v31 = vld [vmem:[#allocation2 + $0x860] sm:$0xff]  ;;  %v435_v32 = vld [vmem:[#allocation2 + $0x868] sm:$0xff]  ;;  %v509_v25 = vld [vmem:[#allocation2 + $0xab8] sm:$0xff] }
 0x106   :  { %4693 = vmatprep.subr.bf16.mxu1 %v4692_v36  ;;  %1382 = vmatprep.mubr.f32.mxu0 %v146_v42  ;;  %v452_v36 = vld [vmem:[#allocation2 + $0x8f0] sm:$0xff]  ;;  %v4682_v40 = vpack.c.bf16 %v435_v32, %v434_v31  ;;  %v523_v23 = vld [vmem:[#allocation2 + $0xb28] sm:$0xff]  ;;  %v493_v32 = vld [vmem:[#allocation2 + $0xa38] sm:$0xff] }
 0x107   :  { %1452 = vmatprep.mubr.f32.mxu1 %v148_v44  ;;  %v4684_v42 = vpack.c.bf16 %v453_v37, %v452_v36  ;;  %v437_v44 = vld [vmem:[#allocation2 + $0x878] sm:$0xff]  ;;  %v492_v31 = vld [vmem:[#allocation2 + $0xa30] sm:$0xff]  ;;  %v510_v36 = vld [vmem:[#allocation2 + $0xac0] sm:$0xff] }
 0x108   :  { %4663 = vmatpush3.bf16.msra.mxu0 %v4662_v43  ;;  %v436_v43 = vld [vmem:[#allocation2 + $0x870] sm:$0xff]  ;;  %v511_v37 = vld [vmem:[#allocation2 + $0xac8] sm:$0xff] }
 0x109   :  { %4695 = vmatpush3.bf16.msra.mxu1 %v4694_v45  ;;  %4665 = vmatprep.subr.bf16.mxu0 %v4664_v46  ;;  %v468_v45 = vld [vmem:[#allocation2 + $0x970] sm:$0xff]  ;;  %v4716_v46 = vpack.c.bf16 %v485_v39, %v484_v38  ;;  %v4686_v52 = vpack.c.bf16 %v437_v44, %v436_v43  ;;  %v542_v38 = vld [vmem:[#allocation2 + $0xbc0] sm:$0xff]  ;;  %v543_v39 = vld [vmem:[#allocation2 + $0xbc8] sm:$0xff] }
 0x10a   :  { %4697 = vmatprep.subr.bf16.mxu1 %v4696_v50  ;;  %v534_v50 = vld [vmem:[#allocation2 + $0xb80] sm:$0xff]  ;;  %v4718_v53 = vpack.c.bf16 %v469_v47, %v468_v45  ;;  %v495_v44 = vld [vmem:[#allocation2 + $0xa48] sm:$0xff] }
 0x10b   :  { %v494_v43 = vld [vmem:[#allocation2 + $0xa40] sm:$0xff]  ;;  %v527_v47 = vld [vmem:[#allocation2 + $0xb48] sm:$0xff] }
 0x10c   :  { %4667 = vmatpush3.bf16.msra.mxu0 %v4666_v56  ;;  %v487_v56 = vld [vmem:[#allocation2 + $0xa08] sm:$0xff]  ;;  %v526_v45 = vld [vmem:[#allocation2 + $0xb40] sm:$0xff] }
 0x10d   :  { %4699 = vmatpush3.bf16.msra.mxu1 %v4698_v57  ;;  %4669 = vmatprep.subr.bf16.mxu0 %v4668_v58  ;;  %v518_v57 = vld [vmem:[#allocation2 + $0xb00] sm:$0xff]  ;;  %v4752_v58 = vpack.c.bf16 %v535_v51, %v534_v50  ;;  %v4722_v1 = vpack.c.bf16 %v487_v56, %v486_v55  ;;  %v544_v50 = vld [vmem:[#allocation2 + $0xbd0] sm:$0xff]  ;;  %v545_v51 = vld [vmem:[#allocation2 + $0xbd8] sm:$0xff] }
 0x10e   :  { %4701 = vmatprep.subr.bf16.mxu1 %v4700_v62  ;;  %v536_v62 = vld [vmem:[#allocation2 + $0xb90] sm:$0xff]  ;;  %v4754_v3 = vpack.c.bf16 %v519_v59, %v518_v57  ;;  %v497_v56 = vld [vmem:[#allocation2 + $0xa58] sm:$0xff] }
 0x10f   :  { %v4756_v8 = vpack.c.bf16 %v537_v63, %v536_v62  ;;  %v496_v55 = vld [vmem:[#allocation2 + $0xa50] sm:$0xff]  ;;  %v529_v59 = vld [vmem:[#allocation2 + $0xb58] sm:$0xff]  ;;  %v546_v62 = vld [vmem:[#allocation2 + $0xbe0] sm:$0xff] }
 0x110   :  { %4671 = vmatpush3.bf16.msra.mxu0 %v4670_v4  ;;  %v4724_v4 = vpack.c.bf16 %v505_v61, %v504_v60  ;;  %v528_v57 = vld [vmem:[#allocation2 + $0xb50] sm:$0xff]  ;;  %v514_v60 = vld [vmem:[#allocation2 + $0xae0] sm:$0xff]  ;;  %v515_v61 = vld [vmem:[#allocation2 + $0xae8] sm:$0xff] }
 0x111   :  { %4703 = vmatpush3.bf16.msra.mxu1 %v4702_v5  ;;  %4673 = vmatprep.subr.bf16.mxu0 %v4672_v6  ;;  %v488_v5 = vld [vmem:[#allocation2 + $0xa10] sm:$0xff]  ;;  %v489_v6 = vld [vmem:[#allocation2 + $0xa18] sm:$0xff]  ;;  %v547_v63 = vld [vmem:[#allocation2 + $0xbe8] sm:$0xff] }
 0x112   :  { %4705 = vmatprep.subr.bf16.mxu1 %v4704_v10  ;;  %v506_v10 = vld [vmem:[#allocation2 + $0xaa0] sm:$0xff]  ;;  %v4726_v15 = vpack.c.bf16 %v489_v6, %v488_v5  ;;  %v4776_v6 = vpack.c.bf16 %v547_v63, %v546_v62  ;;  %v604_v62 = vld [vmem:[#allocation2 + $0xdb0] sm:$0xff]  ;;  %v605_v63 = vld [vmem:[#allocation2 + $0xdb8] sm:$0xff] }
 0x113   :  { %v530_v5 = vld [vmem:[#allocation2 + $0xb60] sm:$0xff] }
 0x114   :  { %4675 = vmatpush3.bf16.msra.mxu0 %v4674_v16  ;;  %v152_v16 = vld [vmem:[%s6122_s1 + $0xb8] sm:$0xff] }
 0x115   :  { %4707 = vmatpush3.bf16.msra.mxu1 %v4706_v17  ;;  %4677 = vmatprep.subr.bf16.mxu0 %v4676_v18  ;;  %v4758_v17 = vpack.c.bf16 %v521_v9, %v520_v7  ;;  %v4728_v18 = vpack.c.bf16 %v507_v11, %v506_v10  ;;  %v531_v7 = vld [vmem:[#allocation2 + $0xb68] sm:$0xff]  ;;  %v517_v9 = vld [vmem:[#allocation2 + $0xaf8] sm:$0xff]  ;;  %v548_v10 = vld [vmem:[#allocation2 + $0xbf0] sm:$0xff] }
 0x116   :  { %4709 = vmatprep.subr.bf16.mxu1 %v4708_v22  ;;  %v4760_v22 = vpack.c.bf16 %v539_v13, %v538_v12  ;;  %v549_v11 = vld [vmem:[#allocation2 + $0xbf8] sm:$0xff]  ;;  %v4778_v13 = vpack.c.bf16 %v531_v7, %v530_v5  ;;  %v588_v5 = vld [vmem:[#allocation2 + $0xd30] sm:$0xff] }
 0x117   :  { %v589_v7 = vld [vmem:[#allocation2 + $0xd38] sm:$0xff] }
 0x118   :  { %4679 = vmatpush3.bf16.msra.mxu0 %v4678_v28  ;;  %v4730_v28 = vpack.c.bf16 %v491_v20, %v490_v19  ;;  %v533_v19 = vld [vmem:[#allocation2 + $0xb78] sm:$0xff]  ;;  %v566_v20 = vld [vmem:[#allocation2 + $0xc80] sm:$0xff] }
 0x119   :  { %4711 = vmatpush3.bf16.msra.mxu1 %v4710_v29  ;;  %4681 = vmatprep.subr.bf16.mxu0 %v4680_v30  ;;  %v4762_v29 = vpack.c.bf16 %v523_v23, %v522_v21  ;;  %v4732_v30 = vpack.c.bf16 %v509_v25, %v508_v24  ;;  %v567_v21 = vld [vmem:[#allocation2 + $0xc88] sm:$0xff] }
 0x11a   :  { %4713 = vmatprep.subr.bf16.mxu1 %v4712_v34  ;;  %v4764_v34 = vpack.c.bf16 %v541_v27, %v540_v26  ;;  %v599_v23 = vld [vmem:[#allocation2 + $0xd88] sm:$0xff]  ;;  %v4784_v26 = vpack.c.bf16 %v567_v21, %v566_v20  ;;  %v550_v27 = vld [vmem:[#allocation2 + $0xc00] sm:$0xff]  ;;  %v576_v20 = vld [vmem:[#allocation2 + $0xcd0] sm:$0xff] }
 0x11b   :  { %v577_v21 = vld [vmem:[#allocation2 + $0xcd8] sm:$0xff] }
 0x11c   :  { %4683 = vmatpush3.bf16.msra.mxu0 %v4682_v40  ;;  %v4734_v40 = vpack.c.bf16 %v493_v32, %v492_v31  ;;  %v583_v31 = vld [vmem:[#allocation2 + $0xd08] sm:$0xff]  ;;  %v568_v32 = vld [vmem:[#allocation2 + $0xc90] sm:$0xff] }
 0x11d   :  { %4715 = vmatpush3.bf16.msra.mxu1 %v4714_v41  ;;  %4685 = vmatprep.subr.bf16.mxu0 %v4684_v42  ;;  %v4766_v41 = vpack.c.bf16 %v525_v35, %v524_v33  ;;  %v4736_v42 = vpack.c.bf16 %v511_v37, %v510_v36  ;;  %v569_v33 = vld [vmem:[#allocation2 + $0xc98] sm:$0xff]  ;;  %v149_v36 = vld [vmem:[%s6122_s1 + $0xa0] sm:$0xff] }
 0x11e   :  { %4717 = vmatprep.subr.bf16.mxu1 %v4716_v46  ;;  %v4768_v46 = vpack.c.bf16 %v543_v39, %v542_v38  ;;  %v601_v35 = vld [vmem:[#allocation2 + $0xd98] sm:$0xff]  ;;  %v151_v38 = vld [vmem:[%s6122_s1 + $0xb0] sm:$0xff] }
 0x120   :  { %4687 = vmatpush3.bf16.msra.mxu0 %v4686_v52  ;;  %v4738_v52 = vpack.c.bf16 %v495_v44, %v494_v43  ;;  %v584_v43 = vld [vmem:[#allocation2 + $0xd10] sm:$0xff] }
 0x121   :  { %4719 = vmatpush3.bf16.msra.mxu1 %v4718_v53  ;;  %4721 = vmatprep.subr.bf16.mxu0 %v4720_v54  ;;  %v4770_v53 = vpack.c.bf16 %v527_v47, %v526_v45  ;;  %v4740_v54 = vpack.c.bf16 %v513_v49, %v512_v48  ;;  %v585_v45 = vld [vmem:[#allocation2 + $0xd18] sm:$0xff]  ;;  %v571_v47 = vld [vmem:[#allocation2 + $0xca8] sm:$0xff]  ;;  %v602_v48 = vld [vmem:[#allocation2 + $0xda0] sm:$0xff] }
 0x122   :  { %4753 = vmatprep.subr.bf16.mxu1 %v4752_v58  ;;  %v4772_v58 = vpack.c.bf16 %v545_v51, %v544_v50  ;;  %v603_v49 = vld [vmem:[#allocation2 + $0xda8] sm:$0xff] }
 0x123   :  { %1383 = vmatmul.mubr.f32.vlgmr.msra.gmra.mrb[8].mxu0 %v145_v0  ;;  %v4742_v0 = vpack.c.bf16 %v497_v56, %v496_v55  ;;  %v154_v50 = vld [vmem:[%s6122_s1 + $0xc8] sm:$0xff]  ;;  %v554_v55 = vld [vmem:[#allocation2 + $0xc20] sm:$0xff] }
 0x124   :  { %4723 = vmatpush3.bf16.msra.mxu0 %v4722_v1  ;;  %1453 = vmatmul.mubr.f32.vlgmr.msra.gmra.mrb[8].mxu1 %v147_v2  ;;  %v4774_v1 = vpack.c.bf16 %v529_v59, %v528_v57  ;;  %v4744_v2 = vpack.c.bf16 %v515_v61, %v514_v60  ;;  %v555_v56 = vld [vmem:[#allocation2 + $0xc28] sm:$0xff]  ;;  %v586_v57 = vld [vmem:[#allocation2 + $0xd20] sm:$0xff]  ;;  %v572_v60 = vld [vmem:[#allocation2 + $0xcb0] sm:$0xff] }
 0x125   :  { %4755 = vmatpush3.bf16.msra.mxu1 %v4754_v3  ;;  %4725 = vmatprep.subr.bf16.mxu0 %v4724_v4  ;;  %v498_v3 = vld [vmem:[#allocation2 + $0xa60] sm:$0xff]  ;;  %v499_v4 = vld [vmem:[#allocation2 + $0xa68] sm:$0xff]  ;;  %v573_v61 = vld [vmem:[#allocation2 + $0xcb8] sm:$0xff] }
 0x126   :  { %4757 = vmatprep.subr.bf16.mxu1 %v4756_v8  ;;  %1522 = vmatprep.mubr.f32.mxu0 %v150_v14  ;;  %v516_v8 = vld [vmem:[#allocation2 + $0xaf0] sm:$0xff]  ;;  %v4746_v12 = vpack.c.bf16 %v499_v4, %v498_v3  ;;  %v587_v59 = vld [vmem:[#allocation2 + $0xd28] sm:$0xff]  ;;  %v557_v4 = vld [vmem:[#allocation2 + $0xc38] sm:$0xff] }
 0x127   :  { %1592 = vmatprep.mubr.f32.mxu1 %v152_v16  ;;  %v4748_v14 = vpack.c.bf16 %v517_v9, %v516_v8  ;;  %v501_v16 = vld [vmem:[#allocation2 + $0xa78] sm:$0xff]  ;;  %v556_v3 = vld [vmem:[#allocation2 + $0xc30] sm:$0xff]  ;;  %v574_v8 = vld [vmem:[#allocation2 + $0xcc0] sm:$0xff] }
 0x128   :  { %4727 = vmatpush3.bf16.msra.mxu0 %v4726_v15  ;;  %v500_v15 = vld [vmem:[#allocation2 + $0xa70] sm:$0xff]  ;;  %v575_v9 = vld [vmem:[#allocation2 + $0xcc8] sm:$0xff] }
 0x129   :  { %4759 = vmatpush3.bf16.msra.mxu1 %v4758_v17  ;;  %4729 = vmatprep.subr.bf16.mxu0 %v4728_v18  ;;  %v532_v17 = vld [vmem:[#allocation2 + $0xb70] sm:$0xff]  ;;  %v4780_v18 = vpack.c.bf16 %v549_v11, %v548_v10  ;;  %v4750_v24 = vpack.c.bf16 %v501_v16, %v500_v15  ;;  %v606_v10 = vld [vmem:[#allocation2 + $0xdc0] sm:$0xff]  ;;  %v607_v11 = vld [vmem:[#allocation2 + $0xdc8] sm:$0xff] }
 0x12a   :  { %4761 = vmatprep.subr.bf16.mxu1 %v4760_v22  ;;  %v598_v22 = vld [vmem:[#allocation2 + $0xd80] sm:$0xff]  ;;  %v4782_v25 = vpack.c.bf16 %v533_v19, %v532_v17  ;;  %v559_v16 = vld [vmem:[#allocation2 + $0xc48] sm:$0xff] }
 0x12b   :  { %v558_v15 = vld [vmem:[#allocation2 + $0xc40] sm:$0xff]  ;;  %v591_v19 = vld [vmem:[#allocation2 + $0xd48] sm:$0xff] }
 0x12c   :  { %4731 = vmatpush3.bf16.msra.mxu0 %v4730_v28  ;;  %v551_v28 = vld [vmem:[#allocation2 + $0xc08] sm:$0xff]  ;;  %v590_v17 = vld [vmem:[#allocation2 + $0xd40] sm:$0xff] }
 0x12d   :  { %4763 = vmatpush3.bf16.msra.mxu1 %v4762_v29  ;;  %4733 = vmatprep.subr.bf16.mxu0 %v4732_v30  ;;  %v582_v29 = vld [vmem:[#allocation2 + $0xd00] sm:$0xff]  ;;  %v4816_v30 = vpack.c.bf16 %v599_v23, %v598_v22  ;;  %v4786_v37 = vpack.c.bf16 %v551_v28, %v550_v27  ;;  %v608_v22 = vld [vmem:[#allocation2 + $0xdd0] sm:$0xff]  ;;  %v609_v23 = vld [vmem:[#allocation2 + $0xdd8] sm:$0xff] }
 0x12e   :  { %4765 = vmatprep.subr.bf16.mxu1 %v4764_v34  ;;  %v600_v34 = vld [vmem:[#allocation2 + $0xd90] sm:$0xff]  ;;  %v4818_v39 = vpack.c.bf16 %v583_v31, %v582_v29  ;;  %v561_v28 = vld [vmem:[#allocation2 + $0xc58] sm:$0xff] }
 0x12f   :  { %v4820_v44 = vpack.c.bf16 %v601_v35, %v600_v34  ;;  %v560_v27 = vld [vmem:[#allocation2 + $0xc50] sm:$0xff]  ;;  %v593_v31 = vld [vmem:[#allocation2 + $0xd58] sm:$0xff]  ;;  %v610_v34 = vld [vmem:[#allocation2 + $0xde0] sm:$0xff] }
 0x130   :  { %4735 = vmatpush3.bf16.msra.mxu0 %v4734_v40  ;;  %v4788_v40 = vpack.c.bf16 %v569_v33, %v568_v32  ;;  %v592_v29 = vld [vmem:[#allocation2 + $0xd50] sm:$0xff]  ;;  %v578_v32 = vld [vmem:[#allocation2 + $0xce0] sm:$0xff]  ;;  %v579_v33 = vld [vmem:[#allocation2 + $0xce8] sm:$0xff] }
 0x131   :  { %4767 = vmatpush3.bf16.msra.mxu1 %v4766_v41  ;;  %4737 = vmatprep.subr.bf16.mxu0 %v4736_v42  ;;  %v552_v41 = vld [vmem:[#allocation2 + $0xc10] sm:$0xff]  ;;  %v553_v42 = vld [vmem:[#allocation2 + $0xc18] sm:$0xff]  ;;  %v611_v35 = vld [vmem:[#allocation2 + $0xde8] sm:$0xff] }
 0x132   :  { %4769 = vmatprep.subr.bf16.mxu1 %v4768_v46  ;;  %v570_v46 = vld [vmem:[#allocation2 + $0xca0] sm:$0xff]  ;;  %v4790_v51 = vpack.c.bf16 %v553_v42, %v552_v41  ;;  %v4840_v42 = vpack.c.bf16 %v611_v35, %v610_v34  ;;  %v668_v34 = vld [vmem:[#allocation2 + $0xfb0] sm:$0xff]  ;;  %v669_v35 = vld [vmem:[#allocation2 + $0xfb8] sm:$0xff] }
 0x133   :  { %v594_v41 = vld [vmem:[#allocation2 + $0xd60] sm:$0xff] }
 0x134   :  { %4739 = vmatpush3.bf16.msra.mxu0 %v4738_v52  ;;  %v156_v52 = vld [vmem:[%s6122_s1 + $0xd8] sm:$0xff] }
 0x135   :  { %4771 = vmatpush3.bf16.msra.mxu1 %v4770_v53  ;;  %4741 = vmatprep.subr.bf16.mxu0 %v4740_v54  ;;  %v4822_v53 = vpack.c.bf16 %v585_v45, %v584_v43  ;;  %v4792_v54 = vpack.c.bf16 %v571_v47, %v570_v46  ;;  %v595_v43 = vld [vmem:[#allocation2 + $0xd68] sm:$0xff]  ;;  %v581_v45 = vld [vmem:[#allocation2 + $0xcf8] sm:$0xff]  ;;  %v612_v46 = vld [vmem:[#allocation2 + $0xdf0] sm:$0xff] }
 0x136   :  { %4773 = vmatprep.subr.bf16.mxu1 %v4772_v58  ;;  %v4824_v58 = vpack.c.bf16 %v603_v49, %v602_v48  ;;  %v613_v47 = vld [vmem:[#allocation2 + $0xdf8] sm:$0xff]  ;;  %v4842_v49 = vpack.c.bf16 %v595_v43, %v594_v41  ;;  %v652_v41 = vld [vmem:[#allocation2 + $0xf30] sm:$0xff] }
 0x137   :  { %v653_v43 = vld [vmem:[#allocation2 + $0xf38] sm:$0xff] }
 0x138   :  { %4743 = vmatpush3.bf16.msra.mxu0 %v4742_v0  ;;  %v4794_v0 = vpack.c.bf16 %v555_v56, %v554_v55  ;;  %v597_v55 = vld [vmem:[#allocation2 + $0xd78] sm:$0xff]  ;;  %v630_v56 = vld [vmem:[#allocation2 + $0xe80] sm:$0xff] }
 0x139   :  { %4775 = vmatpush3.bf16.msra.mxu1 %v4774_v1  ;;  %4745 = vmatprep.subr.bf16.mxu0 %v4744_v2  ;;  %v4826_v1 = vpack.c.bf16 %v587_v59, %v586_v57  ;;  %v4796_v2 = vpack.c.bf16 %v573_v61, %v572_v60  ;;  %v631_v57 = vld [vmem:[#allocation2 + $0xe88] sm:$0xff] }
 0x13a   :  { %4777 = vmatprep.subr.bf16.mxu1 %v4776_v6  ;;  %v4828_v6 = vpack.c.bf16 %v605_v63, %v604_v62  ;;  %v663_v59 = vld [vmem:[#allocation2 + $0xf88] sm:$0xff]  ;;  %v4848_v62 = vpack.c.bf16 %v631_v57, %v630_v56  ;;  %v614_v63 = vld [vmem:[#allocation2 + $0xe00] sm:$0xff]  ;;  %v640_v56 = vld [vmem:[#allocation2 + $0xed0] sm:$0xff] }
 0x13b   :  { %v641_v57 = vld [vmem:[#allocation2 + $0xed8] sm:$0xff] }
 0x13c   :  { %4747 = vmatpush3.bf16.msra.mxu0 %v4746_v12  ;;  %v4798_v12 = vpack.c.bf16 %v557_v4, %v556_v3  ;;  %v647_v3 = vld [vmem:[#allocation2 + $0xf08] sm:$0xff]  ;;  %v632_v4 = vld [vmem:[#allocation2 + $0xe90] sm:$0xff] }
 0x13d   :  { %4779 = vmatpush3.bf16.msra.mxu1 %v4778_v13  ;;  %4749 = vmatprep.subr.bf16.mxu0 %v4748_v14  ;;  %v4830_v13 = vpack.c.bf16 %v589_v7, %v588_v5  ;;  %v4800_v14 = vpack.c.bf16 %v575_v9, %v574_v8  ;;  %v633_v5 = vld [vmem:[#allocation2 + $0xe98] sm:$0xff]  ;;  %v153_v8 = vld [vmem:[%s6122_s1 + $0xc0] sm:$0xff] }
 0x13e   :  { %4781 = vmatprep.subr.bf16.mxu1 %v4780_v18  ;;  %v4832_v18 = vpack.c.bf16 %v607_v11, %v606_v10  ;;  %v665_v7 = vld [vmem:[#allocation2 + $0xf98] sm:$0xff]  ;;  %v155_v10 = vld [vmem:[%s6122_s1 + $0xd0] sm:$0xff] }
 0x140   :  { %4751 = vmatpush3.bf16.msra.mxu0 %v4750_v24  ;;  %v4802_v24 = vpack.c.bf16 %v559_v16, %v558_v15  ;;  %v648_v15 = vld [vmem:[#allocation2 + $0xf10] sm:$0xff] }
 0x141   :  { %4783 = vmatpush3.bf16.msra.mxu1 %v4782_v25  ;;  %4785 = vmatprep.subr.bf16.mxu0 %v4784_v26  ;;  %v4834_v25 = vpack.c.bf16 %v591_v19, %v590_v17  ;;  %v4804_v26 = vpack.c.bf16 %v577_v21, %v576_v20  ;;  %v649_v17 = vld [vmem:[#allocation2 + $0xf18] sm:$0xff]  ;;  %v635_v19 = vld [vmem:[#allocation2 + $0xea8] sm:$0xff]  ;;  %v666_v20 = vld [vmem:[#allocation2 + $0xfa0] sm:$0xff] }
 0x142   :  { %4817 = vmatprep.subr.bf16.mxu1 %v4816_v30  ;;  %v4836_v30 = vpack.c.bf16 %v609_v23, %v608_v22  ;;  %v667_v21 = vld [vmem:[#allocation2 + $0xfa8] sm:$0xff] }
 0x143   :  { %1523 = vmatmul.mubr.f32.vlgmr.msra.gmra.mrb[10].mxu0 %v149_v36  ;;  %v4806_v36 = vpack.c.bf16 %v561_v28, %v560_v27  ;;  %v158_v22 = vld [vmem:[%s6122_s1 + $0xe8] sm:$0xff]  ;;  %v618_v27 = vld [vmem:[#allocation2 + $0xe20] sm:$0xff] }
 0x144   :  { %4787 = vmatpush3.bf16.msra.mxu0 %v4786_v37  ;;  %1593 = vmatmul.mubr.f32.vlgmr.msra.gmra.mrb[10].mxu1 %v151_v38  ;;  %v4838_v37 = vpack.c.bf16 %v593_v31, %v592_v29  ;;  %v4808_v38 = vpack.c.bf16 %v579_v33, %v578_v32  ;;  %v619_v28 = vld [vmem:[#allocation2 + $0xe28] sm:$0xff]  ;;  %v650_v29 = vld [vmem:[#allocation2 + $0xf20] sm:$0xff]  ;;  %v636_v32 = vld [vmem:[#allocation2 + $0xeb0] sm:$0xff] }
 0x145   :  { %4819 = vmatpush3.bf16.msra.mxu1 %v4818_v39  ;;  %4789 = vmatprep.subr.bf16.mxu0 %v4788_v40  ;;  %v562_v39 = vld [vmem:[#allocation2 + $0xc60] sm:$0xff]  ;;  %v563_v40 = vld [vmem:[#allocation2 + $0xc68] sm:$0xff]  ;;  %v637_v33 = vld [vmem:[#allocation2 + $0xeb8] sm:$0xff] }
 0x146   :  { %4821 = vmatprep.subr.bf16.mxu1 %v4820_v44  ;;  %1662 = vmatprep.mubr.f32.mxu0 %v154_v50  ;;  %v580_v44 = vld [vmem:[#allocation2 + $0xcf0] sm:$0xff]  ;;  %v4810_v48 = vpack.c.bf16 %v563_v40, %v562_v39  ;;  %v651_v31 = vld [vmem:[#allocation2 + $0xf28] sm:$0xff]  ;;  %v621_v40 = vld [vmem:[#allocation2 + $0xe38] sm:$0xff] }
 0x147   :  { %1732 = vmatprep.mubr.f32.mxu1 %v156_v52  ;;  %v4812_v50 = vpack.c.bf16 %v581_v45, %v580_v44  ;;  %v565_v52 = vld [vmem:[#allocation2 + $0xc78] sm:$0xff]  ;;  %v620_v39 = vld [vmem:[#allocation2 + $0xe30] sm:$0xff]  ;;  %v638_v44 = vld [vmem:[#allocation2 + $0xec0] sm:$0xff] }
 0x148   :  { %4791 = vmatpush3.bf16.msra.mxu0 %v4790_v51  ;;  %v564_v51 = vld [vmem:[#allocation2 + $0xc70] sm:$0xff]  ;;  %v639_v45 = vld [vmem:[#allocation2 + $0xec8] sm:$0xff] }
 0x149   :  { %4823 = vmatpush3.bf16.msra.mxu1 %v4822_v53  ;;  %4793 = vmatprep.subr.bf16.mxu0 %v4792_v54  ;;  %v596_v53 = vld [vmem:[#allocation2 + $0xd70] sm:$0xff]  ;;  %v4844_v54 = vpack.c.bf16 %v613_v47, %v612_v46  ;;  %v4814_v60 = vpack.c.bf16 %v565_v52, %v564_v51  ;;  %v670_v46 = vld [vmem:[#allocation2 + $0xfc0] sm:$0xff]  ;;  %v671_v47 = vld [vmem:[#allocation2 + $0xfc8] sm:$0xff] }
 0x14a   :  { %4825 = vmatprep.subr.bf16.mxu1 %v4824_v58  ;;  %v662_v58 = vld [vmem:[#allocation2 + $0xf80] sm:$0xff]  ;;  %v4846_v61 = vpack.c.bf16 %v597_v55, %v596_v53  ;;  %v623_v52 = vld [vmem:[#allocation2 + $0xe48] sm:$0xff] }
 0x14b   :  { %v622_v51 = vld [vmem:[#allocation2 + $0xe40] sm:$0xff]  ;;  %v655_v55 = vld [vmem:[#allocation2 + $0xf48] sm:$0xff] }
 0x14c   :  { %4795 = vmatpush3.bf16.msra.mxu0 %v4794_v0  ;;  %v615_v0 = vld [vmem:[#allocation2 + $0xe08] sm:$0xff]  ;;  %v654_v53 = vld [vmem:[#allocation2 + $0xf40] sm:$0xff] }
 0x14d   :  { %4827 = vmatpush3.bf16.msra.mxu1 %v4826_v1  ;;  %4797 = vmatprep.subr.bf16.mxu0 %v4796_v2  ;;  %v646_v1 = vld [vmem:[#allocation2 + $0xf00] sm:$0xff]  ;;  %v4880_v2 = vpack.c.bf16 %v663_v59, %v662_v58  ;;  %v4850_v9 = vpack.c.bf16 %v615_v0, %v614_v63  ;;  %v672_v58 = vld [vmem:[#allocation2 + $0xfd0] sm:$0xff]  ;;  %v673_v59 = vld [vmem:[#allocation2 + $0xfd8] sm:$0xff] }
 0x14e   :  { %4829 = vmatprep.subr.bf16.mxu1 %v4828_v6  ;;  %v664_v6 = vld [vmem:[#allocation2 + $0xf90] sm:$0xff]  ;;  %v4882_v11 = vpack.c.bf16 %v647_v3, %v646_v1  ;;  %v625_v0 = vld [vmem:[#allocation2 + $0xe58] sm:$0xff] }
 0x14f   :  { %v4884_v16 = vpack.c.bf16 %v665_v7, %v664_v6  ;;  %v624_v63 = vld [vmem:[#allocation2 + $0xe50] sm:$0xff]  ;;  %v657_v3 = vld [vmem:[#allocation2 + $0xf58] sm:$0xff]  ;;  %v674_v6 = vld [vmem:[#allocation2 + $0xfe0] sm:$0xff] }
 0x150   :  { %4799 = vmatpush3.bf16.msra.mxu0 %v4798_v12  ;;  %v4852_v12 = vpack.c.bf16 %v633_v5, %v632_v4  ;;  %v656_v1 = vld [vmem:[#allocation2 + $0xf50] sm:$0xff]  ;;  %v642_v4 = vld [vmem:[#allocation2 + $0xee0] sm:$0xff]  ;;  %v643_v5 = vld [vmem:[#allocation2 + $0xee8] sm:$0xff] }
 0x151   :  { %4831 = vmatpush3.bf16.msra.mxu1 %v4830_v13  ;;  %4801 = vmatprep.subr.bf16.mxu0 %v4800_v14  ;;  %v616_v13 = vld [vmem:[#allocation2 + $0xe10] sm:$0xff]  ;;  %v617_v14 = vld [vmem:[#allocation2 + $0xe18] sm:$0xff]  ;;  %v675_v7 = vld [vmem:[#allocation2 + $0xfe8] sm:$0xff] }
 0x152   :  { %4833 = vmatprep.subr.bf16.mxu1 %v4832_v18  ;;  %v634_v18 = vld [vmem:[#allocation2 + $0xea0] sm:$0xff]  ;;  %v4854_v23 = vpack.c.bf16 %v617_v14, %v616_v13 }
 0x153   :  { %v658_v13 = vld [vmem:[#allocation2 + $0xf60] sm:$0xff] }
 0x154   :  { %4803 = vmatpush3.bf16.msra.mxu0 %v4802_v24  ;;  %v160_v24 = vld [vmem:[%s6122_s1 + $0xf8] sm:$0xff] }
 0x155   :  { %4835 = vmatpush3.bf16.msra.mxu1 %v4834_v25  ;;  %4805 = vmatprep.subr.bf16.mxu0 %v4804_v26  ;;  %v4886_v25 = vpack.c.bf16 %v649_v17, %v648_v15  ;;  %v4856_v26 = vpack.c.bf16 %v635_v19, %v634_v18  ;;  %v4904_v15 = vpack.c.bf16 %v675_v7, %v674_v6  ;;  %v644_v17 = vld [vmem:[#allocation2 + $0xef0] sm:$0xff]  ;;  %v645_v18 = vld [vmem:[#allocation2 + $0xef8] sm:$0xff]  ;;  %v682_v6 = vld [vmem:[#allocation2 + $0x1020] sm:$0xff] }
 0x156   :  { %4837 = vmatprep.subr.bf16.mxu1 %v4836_v30  ;;  %v4888_v30 = vpack.c.bf16 %v667_v21, %v666_v20  ;;  %v676_v21 = vld [vmem:[#allocation2 + $0xff0] sm:$0xff]  ;;  %v683_v7 = vld [vmem:[#allocation2 + $0x1028] sm:$0xff] }
 0x158   :  { %4807 = vmatpush3.bf16.msra.mxu0 %v4806_v36  ;;  %v4858_v36 = vpack.c.bf16 %v619_v28, %v618_v27  ;;  %v4876_v28 = vpack.c.bf16 %v645_v18, %v644_v17  ;;  %v684_v18 = vld [vmem:[#allocation2 + $0x1030] sm:$0xff] }
 0x159   :  { %4839 = vmatpush3.bf16.msra.mxu1 %v4838_v37  ;;  %4809 = vmatprep.subr.bf16.mxu0 %v4808_v38  ;;  %v4890_v37 = vpack.c.bf16 %v651_v31, %v650_v29  ;;  %v4860_v38 = vpack.c.bf16 %v637_v33, %v636_v32  ;;  %v628_v29 = vld [vmem:[#allocation2 + $0xe70] sm:$0xff]  ;;  %v661_v33 = vld [vmem:[#allocation2 + $0xf78] sm:$0xff] }
 0x15a   :  { %4841 = vmatprep.subr.bf16.mxu1 %v4840_v42  ;;  %v4892_v42 = vpack.c.bf16 %v669_v35, %v668_v34  ;;  %v660_v31 = vld [vmem:[#allocation2 + $0xf70] sm:$0xff]  ;;  %v694_v34 = vld [vmem:[#allocation2 + $0x1080] sm:$0xff]  ;;  %v695_v35 = vld [vmem:[#allocation2 + $0x1088] sm:$0xff] }
 0x15c   :  { %4811 = vmatpush3.bf16.msra.mxu0 %v4810_v48  ;;  %v4862_v48 = vpack.c.bf16 %v621_v40, %v620_v39  ;;  %v4910_v40 = vpack.c.bf16 %v661_v33, %v660_v31  ;;  %v687_v31 = vld [vmem:[#allocation2 + $0x1048] sm:$0xff] }
 0x15d   :  { %4843 = vmatpush3.bf16.msra.mxu1 %v4842_v49  ;;  %4813 = vmatprep.subr.bf16.mxu0 %v4812_v50  ;;  %v4894_v49 = vpack.c.bf16 %v653_v43, %v652_v41  ;;  %v4864_v50 = vpack.c.bf16 %v639_v45, %v638_v44  ;;  %v4912_v41 = vpack.c.bf16 %v695_v35, %v694_v34  ;;  %v679_v43 = vld [vmem:[#allocation2 + $0x1008] sm:$0xff]  ;;  %v710_v44 = vld [vmem:[#allocation2 + $0x1100] sm:$0xff]  ;;  %v704_v35 = vld [vmem:[#allocation2 + $0x10d0] sm:$0xff] }
 0x15e   :  { %4845 = vmatprep.subr.bf16.mxu1 %v4844_v54  ;;  %v4896_v54 = vpack.c.bf16 %v671_v47, %v670_v46  ;;  %v711_v46 = vld [vmem:[#allocation2 + $0x1108] sm:$0xff]  ;;  %v696_v47 = vld [vmem:[#allocation2 + $0x1090] sm:$0xff] }
 0x15f   :  { %v719_v34 = vld [vmem:[#allocation2 + $0x1148] sm:$0xff] }
 0x160   :  { %4815 = vmatpush3.bf16.msra.mxu0 %v4814_v60  ;;  %v4866_v60 = vpack.c.bf16 %v623_v52, %v622_v51  ;;  %v157_v51 = vld [vmem:[%s6122_s1 + $0xe0] sm:$0xff] }
 0x161   :  { %4847 = vmatpush3.bf16.msra.mxu1 %v4846_v61  ;;  %4849 = vmatprep.subr.bf16.mxu0 %v4848_v62  ;;  %v4898_v61 = vpack.c.bf16 %v655_v55, %v654_v53  ;;  %v4868_v62 = vpack.c.bf16 %v641_v57, %v640_v56  ;;  %v159_v53 = vld [vmem:[%s6122_s1 + $0xf0] sm:$0xff]  ;;  %v681_v57 = vld [vmem:[#allocation2 + $0x1018] sm:$0xff] }
 0x162   :  { %4881 = vmatprep.subr.bf16.mxu1 %v4880_v2  ;;  %v4900_v2 = vpack.c.bf16 %v673_v59, %v672_v58  ;;  %v680_v56 = vld [vmem:[#allocation2 + $0x1010] sm:$0xff] }
 0x163   :  { %1663 = vmatmul.mubr.f32.vlgmr.msra.gmra.mrb[12].mxu0 %v153_v8  ;;  %v4870_v8 = vpack.c.bf16 %v625_v0, %v624_v63  ;;  %v712_v58 = vld [vmem:[#allocation2 + $0x1110] sm:$0xff]  ;;  %v730_v63 = vld [vmem:[#allocation2 + $0x11a0] sm:$0xff]  ;;  %v731_v0 = vld [vmem:[#allocation2 + $0x11a8] sm:$0xff] }
 0x164   :  { %4851 = vmatpush3.bf16.msra.mxu0 %v4850_v9  ;;  %1733 = vmatmul.mubr.f32.vlgmr.msra.gmra.mrb[12].mxu1 %v155_v10  ;;  %v4902_v9 = vpack.c.bf16 %v657_v3, %v656_v1  ;;  %v4872_v10 = vpack.c.bf16 %v643_v5, %v642_v4  ;;  %v162_v1 = vld [vmem:[%s6122_s1 + $0x108] sm:$0xff]  ;;  %v164_v3 = vld [vmem:[%s6122_s1 + $0x118] sm:$0xff] }
 0x165   :  { %4883 = vmatpush3.bf16.msra.mxu1 %v4882_v11  ;;  %4853 = vmatprep.subr.bf16.mxu0 %v4852_v12  ;;  %v626_v11 = vld [vmem:[#allocation2 + $0xe60] sm:$0xff]  ;;  %v627_v12 = vld [vmem:[#allocation2 + $0xe68] sm:$0xff] }
 0x166   :  { %4885 = vmatprep.subr.bf16.mxu1 %v4884_v16  ;;  %1802 = vmatprep.mubr.f32.mxu0 %v158_v22  ;;  %v659_v16 = vld [vmem:[#allocation2 + $0xf68] sm:$0xff]  ;;  %v677_v22 = vld [vmem:[#allocation2 + $0xff8] sm:$0xff] }
 0x167   :  { %1872 = vmatprep.mubr.f32.mxu1 %v160_v24  ;;  %v4906_v27 = vpack.c.bf16 %v659_v16, %v658_v13  ;;  %v4908_v32 = vpack.c.bf16 %v677_v22, %v676_v21  ;;  %v732_v13 = vld [vmem:[#allocation2 + $0x11b0] sm:$0xff]  ;;  %v717_v22 = vld [vmem:[#allocation2 + $0x1138] sm:$0xff] }
 0x168   :  { %4855 = vmatpush3.bf16.msra.mxu0 %v4854_v23 }
 0x169   :  { %4887 = vmatpush3.bf16.msra.mxu1 %v4886_v25  ;;  %4857 = vmatprep.subr.bf16.mxu0 %v4856_v26  ;;  %v4874_v25 = vpack.c.bf16 %v627_v12, %v626_v11  ;;  %v700_v11 = vld [vmem:[#allocation2 + $0x10b0] sm:$0xff]  ;;  %v701_v12 = vld [vmem:[#allocation2 + $0x10b8] sm:$0xff] }
 0x16a   :  { %4889 = vmatprep.subr.bf16.mxu1 %v4888_v30  ;;  %v629_v30 = vld [vmem:[#allocation2 + $0xe78] sm:$0xff]  ;;  %v4924_v17 = vpack.c.bf16 %v701_v12, %v700_v11 }
 0x16b   :  { %v4878_v39 = vpack.c.bf16 %v629_v30, %v628_v29  ;;  %v686_v30 = vld [vmem:[#allocation2 + $0x1040] sm:$0xff] }
 0x16c   :  { %4859 = vmatpush3.bf16.msra.mxu0 %v4858_v36 }
 0x16d   :  { %4891 = vmatpush3.bf16.msra.mxu1 %v4890_v37  ;;  %4861 = vmatprep.subr.bf16.mxu0 %v4860_v38  ;;  %v726_v37 = vld [vmem:[#allocation2 + $0x1180] sm:$0xff]  ;;  %v727_v38 = vld [vmem:[#allocation2 + $0x1188] sm:$0xff] }
 0x16e   :  { %4893 = vmatprep.subr.bf16.mxu1 %v4892_v42  ;;  %v678_v42 = vld [vmem:[#allocation2 + $0x1000] sm:$0xff]  ;;  %v4944_v45 = vpack.c.bf16 %v727_v38, %v726_v37  ;;  %v705_v37 = vld [vmem:[#allocation2 + $0x10d8] sm:$0xff]  ;;  %v736_v38 = vld [vmem:[#allocation2 + $0x11d0] sm:$0xff] }
 0x16f   :  { %v4914_v52 = vpack.c.bf16 %v679_v43, %v678_v42  ;;  %v4932_v42 = vpack.c.bf16 %v705_v37, %v704_v35  ;;  %v688_v43 = vld [vmem:[#allocation2 + $0x1050] sm:$0xff] }
 0x170   :  { %4863 = vmatpush3.bf16.msra.mxu0 %v4862_v48  ;;  %v697_v48 = vld [vmem:[#allocation2 + $0x1098] sm:$0xff]  ;;  %v752_v37 = vld [vmem:[#allocation2 + $0x1250] sm:$0xff] }
 0x171   :  { %4895 = vmatpush3.bf16.msra.mxu1 %v4894_v49  ;;  %4865 = vmatprep.subr.bf16.mxu0 %v4864_v50  ;;  %v728_v49 = vld [vmem:[#allocation2 + $0x1190] sm:$0xff]  ;;  %v729_v50 = vld [vmem:[#allocation2 + $0x1198] sm:$0xff]  ;;  %v4916_v55 = vpack.c.bf16 %v697_v48, %v696_v47  ;;  %v706_v48 = vld [vmem:[#allocation2 + $0x10e0] sm:$0xff] }
 0x172   :  { %4897 = vmatprep.subr.bf16.mxu1 %v4896_v54  ;;  %v4946_v54 = vpack.c.bf16 %v711_v46, %v710_v44  ;;  %v4948_v59 = vpack.c.bf16 %v729_v50, %v728_v49  ;;  %v689_v44 = vld [vmem:[#allocation2 + $0x1058] sm:$0xff]  ;;  %v707_v49 = vld [vmem:[#allocation2 + $0x10e8] sm:$0xff]  ;;  %v738_v50 = vld [vmem:[#allocation2 + $0x11e0] sm:$0xff] }
 0x173   :  { %v721_v47 = vld [vmem:[#allocation2 + $0x1158] sm:$0xff] }
 0x174   :  { %4867 = vmatpush3.bf16.msra.mxu0 %v4866_v60  ;;  %v713_v60 = vld [vmem:[#allocation2 + $0x1118] sm:$0xff] }
 0x175   :  { %4899 = vmatpush3.bf16.msra.mxu1 %v4898_v61  ;;  %4869 = vmatprep.subr.bf16.mxu0 %v4868_v62  ;;  %v698_v61 = vld [vmem:[#allocation2 + $0x10a0] sm:$0xff]  ;;  %v699_v62 = vld [vmem:[#allocation2 + $0x10a8] sm:$0xff]  ;;  %v4950_v4 = vpack.c.bf16 %v713_v60, %v712_v58 }
 0x176   :  { %v3282_v14 = vpop.f32.mrb[0].mxu0  ;;  %4901 = vmatprep.subr.bf16.mxu1 %v4900_v2  ;;  %v4918_v2 = vpack.c.bf16 %v681_v57, %v680_v56  ;;  %v4920_v5 = vpack.c.bf16 %v699_v62, %v698_v61  ;;  %v691_v56 = vld [vmem:[#allocation2 + $0x1068] sm:$0xff]  ;;  %v722_v57 = vld [vmem:[#allocation2 + $0x1160] sm:$0xff]  ;;  %v708_v61 = vld [vmem:[#allocation2 + $0x10f0] sm:$0xff] }
 0x177   :  { %v3317_v19 = vpop.f32.mrb[0].mxu1  ;;  %v3283_v20 = vpop.f32.mrb[1].mxu0  ;;  %v723_v60 = vld [vmem:[#allocation2 + $0x1168] sm:$0xff]  ;;  %v709_v62 = vld [vmem:[#allocation2 + $0x10f8] sm:$0xff] }
 0x178   :  { %v3284_v23 = vadd.f32 %v3283_v20, %v3282_v14  ;;  %v3318_v24 = vpop.f32.mrb[1].mxu1  ;;  %4871 = vmatpush3.bf16.msra.mxu0 %v4870_v8  ;;  %v714_v8 = vld [vmem:[#allocation2 + $0x1120] sm:$0xff]  ;;  %v733_v14 = vld [vmem:[#allocation2 + $0x11b8] sm:$0xff]  ;;  %v716_v20 = vld [vmem:[#allocation2 + $0x1130] sm:$0xff] }
 0x179   :  { %v3319_v26 = vadd.f32 %v3318_v24, %v3317_v19  ;;  %4903 = vmatpush3.bf16.msra.mxu1 %v4902_v9  ;;  %4873 = vmatprep.subr.bf16.mxu0 %v4872_v10  ;;  %v4952_v9 = vpack.c.bf16 %v731_v0, %v730_v63  ;;  %v715_v10 = vld [vmem:[#allocation2 + $0x1128] sm:$0xff]  ;;  %v685_v19 = vld [vmem:[#allocation2 + $0x1038] sm:$0xff]  ;;  %v4956_v21 = vpack.c.bf16 %v733_v14, %v732_v13  ;;  %v724_v13 = vld [vmem:[#allocation2 + $0x1170] sm:$0xff] }
 0x17a   :  { %4905 = vmatprep.subr.bf16.mxu1 %v4904_v15  ;;  %v4922_v15 = vpack.c.bf16 %v683_v7, %v682_v6  ;;  %v4954_v16 = vpack.c.bf16 %v715_v10, %v714_v8  ;;  %v703_v24 = vld [vmem:[#allocation2 + $0x10c8] sm:$0xff]  ;;  %v4970_v7 = vpack.c.bf16 %v723_v60, %v722_v57  ;;  %v4940_v8 = vpack.c.bf16 %v709_v62, %v708_v61  ;;  %v693_v10 = vld [vmem:[#allocation2 + $0x1078] sm:$0xff] }
 0x17b   :  { %v5802_v36 = vadd.f32 %v3319_v26, %v3284_v23  ;;  %v702_v23 = vld [vmem:[#allocation2 + $0x10c0] sm:$0xff]  ;;  %v735_v26 = vld [vmem:[#allocation2 + $0x11c8] sm:$0xff]  ;;  %v725_v14 = vld [vmem:[#allocation2 + $0x1178] sm:$0xff] }
 0x17c   :  { %4875 = vmatpush3.bf16.msra.mxu0 %v4874_v25  ;;  %v734_v25 = vld [vmem:[#allocation2 + $0x11c0] sm:$0xff]  ;;  %v4928_v29 = vpack.c.bf16 %v703_v24, %v702_v23  ;;  %v744_v23 = vld [vmem:[#allocation2 + $0x1210] sm:$0xff]  ;;  %v745_v24 = vld [vmem:[#allocation2 + $0x1218] sm:$0xff] }
 0x17d   :  { %4907 = vmatpush3.bf16.msra.mxu1 %v4906_v27  ;;  %4877 = vmatprep.subr.bf16.mxu0 %v4876_v28  ;;  %v4926_v27 = vpack.c.bf16 %v685_v19, %v684_v18  ;;  %v4958_v28 = vpack.c.bf16 %v717_v22, %v716_v20  ;;  %v4960_v33 = vpack.c.bf16 %v735_v26, %v734_v25  ;;  %v742_v18 = vld [vmem:[#allocation2 + $0x1200] sm:$0xff]  ;;  %v743_v19 = vld [vmem:[#allocation2 + $0x1208] sm:$0xff]  ;;  %v163_v22 = vld [vmem:[%s6122_s1 + $0x110] sm:$0xff] }
 0x17e   :  { %4909 = vmatprep.subr.bf16.mxu1 %v4908_v32  ;;  %v718_v32 = vld [vmem:[#allocation2 + $0x1140] sm:$0xff]  ;;  %v4980_v25 = vpack.c.bf16 %v745_v24, %v744_v23  ;;  %v2094_v57 = vld [vmem:[#allocation4 + $0x28] sm:$0xff]  ;;  %v2096_v62 = vld [vmem:[#allocation4 + $0x38] sm:$0xff] }
 0x17f   :  { %v161_v20 = vld [vmem:[%s6122_s1 + $0x100] sm:$0xff]  ;;  %v2110_v24 = vld [vmem:[#allocation4 + $0xa8] sm:$0xff] }
 0x180   :  { %4879 = vmatpush3.bf16.msra.mxu0 %v4878_v39  ;;  %v737_v39 = vld [vmem:[#allocation2 + $0x11d8] sm:$0xff]  ;;  %v746_v26 = vld [vmem:[#allocation2 + $0x1220] sm:$0xff] }
 0x181   :  { %4911 = vmatpush3.bf16.msra.mxu1 %v4910_v40  ;;  %4913 = vmatprep.subr.bf16.mxu0 %v4912_v41  ;;  %v4930_v40 = vpack.c.bf16 %v687_v31, %v686_v30  ;;  %v4962_v41 = vpack.c.bf16 %v719_v34, %v718_v32  ;;  %v4964_v46 = vpack.c.bf16 %v737_v39, %v736_v38  ;;  %v748_v30 = vld [vmem:[#allocation2 + $0x1230] sm:$0xff]  ;;  %v749_v31 = vld [vmem:[#allocation2 + $0x1238] sm:$0xff]  ;;  %v751_v34 = vld [vmem:[#allocation2 + $0x1248] sm:$0xff] }
 0x182   :  { %4945 = vmatprep.subr.bf16.mxu1 %v4944_v45  ;;  %v720_v45 = vld [vmem:[#allocation2 + $0x1150] sm:$0xff]  ;;  %v4986_v32 = vpack.c.bf16 %v749_v31, %v748_v30  ;;  %v753_v38 = vld [vmem:[#allocation2 + $0x1258] sm:$0xff]  ;;  %v2105_v30 = vld [vmem:[#allocation4 + $0x80] sm:$0xff] }
 0x183   :  { %1803 = vmatmul.mubr.f32.vlgmr.msra.gmra.mrb[14].mxu0 %v157_v51  ;;  %v739_v51 = vld [vmem:[#allocation2 + $0x11e8] sm:$0xff]  ;;  %v4992_v39 = vpack.c.bf16 %v753_v38, %v752_v37  ;;  %v2109_v31 = vld [vmem:[#allocation4 + $0xa0] sm:$0xff] }
 0x184   :  { %4915 = vmatpush3.bf16.msra.mxu0 %v4914_v52  ;;  %1873 = vmatmul.mubr.f32.vlgmr.msra.gmra.mrb[14].mxu1 %v159_v53  ;;  %v4934_v52 = vpack.c.bf16 %v689_v44, %v688_v43  ;;  %v4966_v53 = vpack.c.bf16 %v721_v47, %v720_v45  ;;  %v2118_v37 = vld [vmem:[#allocation4 + $0xe8] sm:$0xff] }
 0x185   :  { %4947 = vmatpush3.bf16.msra.mxu1 %v4946_v54  ;;  %4917 = vmatprep.subr.bf16.mxu0 %v4916_v55  ;;  %v4936_v54 = vpack.c.bf16 %v707_v49, %v706_v48  ;;  %v690_v55 = vld [vmem:[#allocation2 + $0x1060] sm:$0xff]  ;;  %v756_v49 = vld [vmem:[#allocation2 + $0x1270] sm:$0xff] }
 0x186   :  { %4949 = vmatprep.subr.bf16.mxu1 %v4948_v59  ;;  %1942 = vmatprep.mubr.f32.mxu0 %v162_v1  ;;  %v4968_v59 = vpack.c.bf16 %v739_v51, %v738_v50  ;;  %v740_v1 = vld [vmem:[#allocation2 + $0x11f0] sm:$0xff]  ;;  %v757_v50 = vld [vmem:[#allocation2 + $0x1278] sm:$0xff] }
 0x187   :  { %2012 = vmatprep.mubr.f32.mxu1 %v164_v3 }
 0x188   :  { %4919 = vmatpush3.bf16.msra.mxu0 %v4918_v2  ;;  %v741_v2 = vld [vmem:[#allocation2 + $0x11f8] sm:$0xff] }
 0x189   :  { %4951 = vmatpush3.bf16.msra.mxu1 %v4950_v4  ;;  %4921 = vmatprep.subr.bf16.mxu0 %v4920_v5  ;;  %v4938_v5 = vpack.c.bf16 %v691_v56, %v690_v55  ;;  %v4972_v12 = vpack.c.bf16 %v741_v2, %v740_v1  ;;  %v2090_v56 = vld [vmem:[#allocation4 + $0x8] sm:$0xff] }
 0x18a   :  { %4953 = vmatprep.subr.bf16.mxu1 %v4952_v9  ;;  %v692_v9 = vld [vmem:[#allocation2 + $0x1070] sm:$0xff]  ;;  %v5000_v61 = vpack.c.bf16 %v2094_v57, %v2090_v56 }
 0x18b   :  { %v2123_v57 = vld [vmem:[#allocation4 + $0x110] sm:$0xff] }
 0x18c   :  { %4923 = vmatpush3.bf16.msra.mxu0 %v4922_v15 }
 0x18d   :  { %4955 = vmatpush3.bf16.msra.mxu1 %v4954_v16  ;;  %4925 = vmatprep.subr.bf16.mxu0 %v4924_v17  ;;  %v4942_v16 = vpack.c.bf16 %v693_v10, %v692_v9  ;;  %v4974_v17 = vpack.c.bf16 %v725_v14, %v724_v13  ;;  %v2098_v10 = vld [vmem:[#allocation4 + $0x48] sm:$0xff]  ;;  %v2104_v14 = vld [vmem:[#allocation4 + $0x78] sm:$0xff] }
 0x18e   :  { %4957 = vmatprep.subr.bf16.mxu1 %v4956_v21  ;;  %v4977_v21 = vpack.c.bf16 %v743_v19, %v742_v18 }
 0x190   :  { %4927 = vmatpush3.bf16.msra.mxu0 %v4926_v27  ;;  %v747_v27 = vld [vmem:[#allocation2 + $0x1228] sm:$0xff] }
 0x191   :  { %4959 = vmatpush3.bf16.msra.mxu1 %v4958_v28  ;;  %4929 = vmatprep.subr.bf16.mxu0 %v4928_v29  ;;  %v5555_v28 = vmov 0.0   ;;  %v4983_v29 = vpack.c.bf16 %v747_v27, %v746_v26  ;;  %v2112_v26 = vld [vmem:[#allocation4 + $0xb8] sm:$0xff] }
 0x192   :  { %4961 = vmatprep.subr.bf16.mxu1 %v4960_v33  ;;  %v750_v33 = vld [vmem:[#allocation2 + $0x1240] sm:$0xff] }
 0x193   :  { %v4989_v35 = vpack.c.bf16 %v751_v34, %v750_v33  ;;  %v5010_v33 = vpack.c.bf16 %v2109_v31, %v2105_v30  ;;  %v2111_v34 = vld [vmem:[#allocation4 + $0xb0] sm:$0xff] }
 0x194   :  { %4931 = vmatpush3.bf16.msra.mxu0 %v4930_v40  ;;  %v754_v40 = vld [vmem:[#allocation2 + $0x1260] sm:$0xff]  ;;  %v2147_v31 = vld [vmem:[#allocation4 + $0x1d0] sm:$0xff] }
 0x195   :  { %4963 = vmatpush3.bf16.msra.mxu1 %v4962_v41  ;;  %4933 = vmatprep.subr.bf16.mxu0 %v4932_v42  ;;  %v755_v41 = vld [vmem:[#allocation2 + $0x1268] sm:$0xff] }
 0x196   :  { %v3352_v58 = vpop.f32.mrb[2].mxu0  ;;  %4965 = vmatprep.subr.bf16.mxu1 %v4964_v46  ;;  %v4995_v47 = vpack.c.bf16 %v755_v41, %v754_v40  ;;  %v2116_v40 = vld [vmem:[#allocation4 + $0xd8] sm:$0xff] }
 0x197   :  { %v3353_v63 = vpop.f32.mrb[3].mxu0  ;;  %v3387_v0 = vpop.f32.mrb[2].mxu1  ;;  %v2120_v41 = vld [vmem:[#allocation4 + $0xf8] sm:$0xff] }
 0x198   :  { %v3354_v3 = vadd.f32 %v3353_v63, %v3352_v58  ;;  %4935 = vmatpush3.bf16.msra.mxu0 %v4934_v52  ;;  %v3388_v4 = vpop.f32.mrb[3].mxu1  ;;  %v2092_v58 = vld [vmem:[#allocation4 + $0x18] sm:$0xff]  ;;  %v2089_v63 = vld [vmem:[#allocation4] sm:$0xff] }
 0x199   :  { %v3389_v6 = vadd.f32 %v3388_v4, %v3387_v0  ;;  %4967 = vmatpush3.bf16.msra.mxu1 %v4966_v53  ;;  %4937 = vmatprep.subr.bf16.mxu0 %v4936_v54  ;;  %v4998_v53 = vpack.c.bf16 %v757_v50, %v756_v49  ;;  %v165_v54 = vld [vmem:[%s6122_s1 + $0x120] sm:$0xff]  ;;  %v2126_v49 = vld [vmem:[#allocation4 + $0x128] sm:$0xff]  ;;  %v2124_v50 = vld [vmem:[#allocation4 + $0x118] sm:$0xff] }
 0x19a   :  { %v965_v11 = vadd.f32 %v3354_v3, %v5802_v36  ;;  %4969 = vmatprep.subr.bf16.mxu1 %v4968_v59  ;;  %v5553_v36 = vmov 0.0|0.0   ;;  %v2093_v0 = vld [vmem:[#allocation4 + $0x20] sm:$0xff]  ;;  %v5032_v3 = vpack.c.bf16 %v2096_v62, %v2092_v58  ;;  %v2127_v58 = vld [vmem:[#allocation4 + $0x130] sm:$0xff]  ;;  %v2136_v62 = vld [vmem:[#allocation4 + $0x178] sm:$0xff] }
 0x19b   :  { %v5002_v4 = vpack.c.bf16 %v2093_v0, %v2089_v63  ;;  %v5050_v0 = vpack.c.bf16 %v2127_v58, %v2123_v57  ;;  %v2346_v57 = vld [vmem:[#allocation7 + $0x48] sm:$0xff]  ;;  %v2345_v58 = vld [vmem:[#allocation7 + $0x40] sm:$0xff] }
 0x19c   :  { %v1035_v15 = vadd.f32 %v3389_v6, %v965_v11  ;;  %4939 = vmatpush3.bf16.msra.mxu0 %v4938_v5  ;;  %v2091_v5 = vld [vmem:[#allocation4 + $0x10] sm:$0xff]  ;;  %v2102_v11 = vld [vmem:[#allocation4 + $0x68] sm:$0xff] }
 0x19d   :  { %4971 = vmatpush3.bf16.msra.mxu1 %v4970_v7  ;;  %4941 = vmatprep.subr.bf16.mxu0 %v4940_v8  ;;  %v2095_v6 = vld [vmem:[#allocation4 + $0x30] sm:$0xff]  ;;  %v5004_v13 = vpack.c.bf16 %v2102_v11, %v2098_v10  ;;  %v2144_v10 = vld [vmem:[#allocation4 + $0x1b8] sm:$0xff] }
 0x19e   :  { %4973 = vmatprep.subr.bf16.mxu1 %v4972_v12  ;;  %v5034_v8 = vpack.c.bf16 %v2095_v6, %v2091_v5  ;;  %v2100_v12 = vld [vmem:[#allocation4 + $0x58] sm:$0xff]  ;;  %v2135_v6 = vld [vmem:[#allocation4 + $0x170] sm:$0xff] }
 0x19f   :  { %v5036_v18 = vpack.c.bf16 %v2104_v14, %v2100_v12  ;;  %v2137_v14 = vld [vmem:[#allocation4 + $0x180] sm:$0xff] }
 0x1a0   :  { %4943 = vmatpush3.bf16.msra.mxu0 %v4942_v16  ;;  %v2101_v16 = vld [vmem:[#allocation4 + $0x60] sm:$0xff] }
 0x1a1   :  { %4975 = vmatpush3.bf16.msra.mxu1 %v4974_v17  ;;  %4976 = vmatprep.subr.bf16.mxu0 %v5553_v36 }
 0x1a2   :  { %5001 = vmatprep.subr.bf16.mxu1 %v5000_v61  ;;  %v2132_v61 = vld [vmem:[#allocation4 + $0x158] sm:$0xff] }
 0x1a3   :  { %1943 = vmatmul.mubr.f32.vlgmr.msra.gmra.mrb[16].mxu0 %v161_v20  ;;  %v2099_v20 = vld [vmem:[#allocation4 + $0x50] sm:$0xff]  ;;  %v5052_v5 = vpack.c.bf16 %v2136_v62, %v2132_v61 }
 0x1a4   :  { %4978 = vmatpush3.bf16.msra.mxu0 %v4977_v21  ;;  %2013 = vmatmul.mubr.f32.vlgmr.msra.gmra.mrb[16].mxu1 %v163_v22  ;;  %v2103_v21 = vld [vmem:[#allocation4 + $0x70] sm:$0xff]  ;;  %v2106_v22 = vld [vmem:[#allocation4 + $0x88] sm:$0xff] }
 0x1a5   :  { %4979 = vmatprep.subr.bf16.mxu0 %v5553_v36  ;;  %4082 = vmatprep.mubr.msk.f32.mxu0 %vm5554_vm0, %v5555_v28  ;;  %v5038_v23 = vpack.c.bf16 %v2103_v21, %v2099_v20  ;;  %v5008_v27 = vpack.c.bf16 %v2110_v24, %v2106_v22  ;;  %v2146_v20 = vld [vmem:[#allocation4 + $0x1c8] sm:$0xff]  ;;  %v2148_v22 = vld [vmem:[#allocation4 + $0x1d8] sm:$0xff] }
 0x1a6   :  { %2239 = vmatprep.mubr.f32.mxu1 %v5555_v28  ;;  %5003 = vmatpush1.bf16.msra.mxu1 %v5002_v4  ;;  %v2131_v4 = vld [vmem:[#allocation4 + $0x150] sm:$0xff]  ;;  %v2150_v21 = vld [vmem:[#allocation4 + $0x1e8] sm:$0xff] }
 0x1a7   :  { %5005 = vmatprep.subr.bf16.mxu1 %v5004_v13  ;;  %v5054_v12 = vpack.c.bf16 %v2135_v6, %v2131_v4  ;;  %v2354_v4 = vld [vmem:[#allocation7 + $0x88] sm:$0xff]  ;;  %v2359_v6 = vld [vmem:[#allocation7 + $0xb0] sm:$0xff] }
 0x1a8   :  { %4981 = vmatpush3.bf16.msra.mxu0 %v4980_v25  ;;  %v2108_v25 = vld [vmem:[#allocation4 + $0x98] sm:$0xff] }
 0x1a9   :  { %4982 = vmatprep.subr.bf16.mxu0 %v5553_v36 }
 0x1ac   :  { %4984 = vmatpush3.bf16.msra.mxu0 %v4983_v29  ;;  %v5040_v29 = vpack.c.bf16 %v2112_v26, %v2108_v25  ;;  %v5028_v26 = vpack.c.bf16 %v2150_v21, %v2146_v20  ;;  %v2364_v21 = vld [vmem:[#allocation7 + $0xd8] sm:$0xff] }
 0x1ad   :  { %4985 = vmatprep.subr.bf16.mxu0 %v5553_v36 }
 0x1b0   :  { %4987 = vmatpush3.bf16.msra.mxu0 %v4986_v32  ;;  %v2107_v32 = vld [vmem:[#allocation4 + $0x90] sm:$0xff] }
 0x1b1   :  { %4988 = vmatprep.subr.bf16.mxu0 %v5553_v36  ;;  %v5042_v38 = vpack.c.bf16 %v2111_v34, %v2107_v32  ;;  %v2151_v32 = vld [vmem:[#allocation4 + $0x1f0] sm:$0xff] }
 0x1b2   :  { %v5062_v34 = vpack.c.bf16 %v2151_v32, %v2147_v31  ;;  %v2370_v31 = vld [vmem:[#allocation7 + $0x108] sm:$0xff]  ;;  %v2369_v32 = vld [vmem:[#allocation7 + $0x100] sm:$0xff] }
 0x1b4   :  { %4990 = vmatpush3.bf16.msra.mxu0 %v4989_v35  ;;  %v2114_v35 = vld [vmem:[#allocation4 + $0xc8] sm:$0xff] }
 0x1b5   :  { %4991 = vmatprep.subr.bf16.mxu0 %v5553_v36 }
 0x1b6   :  { %v3422_v42 = vpop.f32.mrb[4].mxu0 }
 0x1b7   :  { %v3423_v43 = vpop.f32.mrb[5].mxu0  ;;  %v3457_v44 = vpop.f32.mrb[4].mxu1 }
 0x1b8   :  { %v3424_v45 = vadd.f32 %v3423_v43, %v3422_v42  ;;  %4993 = vmatpush3.bf16.msra.mxu0 %v4992_v39  ;;  %v3458_v46 = vpop.f32.mrb[5].mxu1  ;;  %v5012_v39 = vpack.c.bf16 %v2118_v37, %v2114_v35  ;;  %v2113_v42 = vld [vmem:[#allocation4 + $0xc0] sm:$0xff]  ;;  %v5044_v43 = vpack.c.bf16 %v2120_v41, %v2116_v40  ;;  %v2338_v37 = vld [vmem:[#allocation7 + $0x8] sm:$0xff] }
 0x1b9   :  { %v3459_v48 = vadd.f32 %v3458_v46, %v3457_v44  ;;  %4994 = vmatprep.subr.bf16.mxu0 %v5553_v36  ;;  %v2117_v44 = vld [vmem:[#allocation4 + $0xe0] sm:$0xff]  ;;  %v2119_v46 = vld [vmem:[#allocation4 + $0xf0] sm:$0xff] }
 0x1ba   :  { %v1105_v51 = vadd.f32 %v3424_v45, %v1035_v15  ;;  %v2097_v15 = vld [vmem:[#allocation4 + $0x40] sm:$0xff]  ;;  %v2115_v45 = vld [vmem:[#allocation4 + $0xd0] sm:$0xff] }
 0x1bb   :  { %v5006_v19 = vpack.c.bf16 %v2101_v16, %v2097_v15  ;;  %v2141_v15 = vld [vmem:[#allocation4 + $0x1a0] sm:$0xff]  ;;  %v2139_v16 = vld [vmem:[#allocation4 + $0x190] sm:$0xff] }
 0x1bc   :  { %v1175_v52 = vadd.f32 %v3459_v48, %v1105_v51  ;;  %4996 = vmatpush3.bf16.msra.mxu0 %v4995_v47  ;;  %v5014_v47 = vpack.c.bf16 %v2117_v44, %v2113_v42  ;;  %v2122_v48 = vld [vmem:[#allocation4 + $0x108] sm:$0xff]  ;;  %v5046_v51 = vpack.c.bf16 %v2119_v46, %v2115_v45  ;;  %v5026_v24 = vpack.c.bf16 %v2141_v15, %v2137_v14  ;;  %v2339_v44 = vld [vmem:[#allocation7 + $0x10] sm:$0xff] }
 0x1bd   :  { %4997 = vmatprep.subr.bf16.mxu0 %v5553_v36  ;;  %5007 = vmatpush1.bf16.msra.mxu1 %v5006_v19  ;;  %v2143_v19 = vld [vmem:[#allocation4 + $0x1b0] sm:$0xff]  ;;  %v2337_v42 = vld [vmem:[#allocation7] sm:$0xff] }
 0x1be   :  { %5009 = vmatprep.subr.bf16.mxu1 %v5008_v27  ;;  %v5058_v25 = vpack.c.bf16 %v2143_v19, %v2139_v16  ;;  %v2145_v27 = vld [vmem:[#allocation4 + $0x1c0] sm:$0xff]  ;;  %v2362_v14 = vld [vmem:[#allocation7 + $0xc8] sm:$0xff] }
 0x1bf   :  { %v2365_v15 = vld [vmem:[#allocation7 + $0xe0] sm:$0xff] }
 0x1c0   :  { %4999 = vmatpush3.bf16.msra.mxu0 %v4998_v53  ;;  %v2128_v53 = vld [vmem:[#allocation4 + $0x138] sm:$0xff]  ;;  %v2361_v19 = vld [vmem:[#allocation7 + $0xc0] sm:$0xff]  ;;  %v5080_v20 = vpack.c.bf16 %v2365_v15, %v2362_v14 }
 0x1c1   :  { %5033 = vmatprep.subr.bf16.mxu0 %v5032_v3  ;;  %5011 = vmatpush1.bf16.msra.mxu1 %v5010_v33  ;;  %v5048_v56 = vpack.c.bf16 %v2128_v53, %v2124_v50  ;;  %v2133_v3 = vld [vmem:[#allocation4 + $0x160] sm:$0xff] }
 0x1c2   :  { %5013 = vmatprep.subr.bf16.mxu1 %v5012_v39  ;;  %v2088_v50 = vld [vmem:[%s6121_s0] sm:$0xff] }
 0x1c3   :  { %4083 = vmatmul.mubr.f32.vlgmr.msra.gmra.mrb[18].mxu0 %v165_v54  ;;  %v2121_v54 = vld [vmem:[#allocation4 + $0x100] sm:$0xff] }
 0x1c4   :  { %2310 = vmatprep.mubr.f32.mxu0 %v5555_v28  ;;  %5035 = vmatpush1.bf16.msra.mxu0 %v5034_v8  ;;  %v2142_v8 = vld [vmem:[#allocation4 + $0x1a8] sm:$0xff]  ;;  %v2344_v53 = vld [vmem:[#allocation7 + $0x38] sm:$0xff] }
 0x1c5   :  { %5037 = vmatprep.subr.bf16.mxu0 %v5036_v18  ;;  %5015 = vmatpush1.bf16.msra.mxu1 %v5014_v47 }
 0x1c8   :  { %5039 = vmatpush1.bf16.msra.mxu0 %v5038_v23  ;;  %v2152_v23 = vld [vmem:[#allocation4 + $0x1f8] sm:$0xff] }
 0x1c9   :  { %5041 = vmatprep.subr.bf16.mxu0 %v5040_v29  ;;  %v2149_v29 = vld [vmem:[#allocation4 + $0x1e0] sm:$0xff]  ;;  %v5060_v30 = vpack.c.bf16 %v2152_v23, %v2148_v22  ;;  %v2363_v22 = vld [vmem:[#allocation7 + $0xd0] sm:$0xff]  ;;  %v2366_v23 = vld [vmem:[#allocation7 + $0xe8] sm:$0xff] }
 0x1ca   :  { %v5030_v33 = vpack.c.bf16 %v2149_v29, %v2145_v27  ;;  %v5109_v27 = vpack.c.bf16 %v2366_v23, %v2363_v22  ;;  %v2367_v29 = vld [vmem:[#allocation7 + $0xf0] sm:$0xff]  ;;  %v2541_v23 = vld [vmem:[#allocation10] sm:$0xff] }
 0x1cc   :  { %5043 = vmatpush1.bf16.msra.mxu0 %v5042_v38  ;;  %v2341_v38 = vld [vmem:[#allocation7 + $0x20] sm:$0xff] }
 0x1cd   :  { %5045 = vmatprep.subr.bf16.mxu0 %v5044_v43  ;;  %v5064_v41 = vpack.c.bf16 %v2341_v38, %v2338_v37  ;;  %v2340_v43 = vld [vmem:[#allocation7 + $0x18] sm:$0xff]  ;;  %v5086_v37 = vpack.c.bf16 %v2370_v31, %v2367_v29 }
 0x1ce   :  { %v5066_v47 = vpack.c.bf16 %v2340_v43, %v2337_v42  ;;  %v2375_v42 = vld [vmem:[#allocation7 + $0x130] sm:$0xff]  ;;  %v2378_v43 = vld [vmem:[#allocation7 + $0x148] sm:$0xff]  ;;  %v2544_v31 = vld [vmem:[#allocation10 + $0x18] sm:$0xff] }
 0x1d0   :  { %5047 = vmatpush1.bf16.msra.mxu0 %v5046_v51 }
 0x1d1   :  { %5049 = vmatprep.subr.bf16.mxu0 %v5048_v56 }
 0x1d4   :  { %5051 = vmatpush1.bf16.msra.mxu0 %v5050_v0  ;;  %v2353_v0 = vld [vmem:[#allocation7 + $0x80] sm:$0xff] }
 0x1d5   :  { %5053 = vmatprep.subr.bf16.mxu0 %v5052_v5  ;;  %v2356_v5 = vld [vmem:[#allocation7 + $0x98] sm:$0xff] }
 0x1d6   :  { %v3492_v55 = vpop.f32.mrb[6].mxu0 }
 0x1d7   :  { %v3493_v59 = vpop.f32.mrb[7].mxu0  ;;  %v3527_v60 = vpop.f32.mrb[6].mxu1 }
 0x1d8   :  { %v3494_v1 = vadd.f32 %v3493_v59, %v3492_v55  ;;  %v3528_v2 = vpop.f32.mrb[7].mxu1  ;;  %v2125_v55 = vld [vmem:[#allocation4 + $0x120] sm:$0xff]  ;;  %v2130_v59 = vld [vmem:[#allocation4 + $0x148] sm:$0xff]  ;;  %5055 = vmatpush1.bf16.msra.mxu0 %v5054_v12 }
 0x1d9   :  { %v3529_v7 = vadd.f32 %v3528_v2, %v3527_v60  ;;  %v2134_v60 = vld [vmem:[#allocation4 + $0x168] sm:$0xff]  ;;  %v5018_v63 = vpack.c.bf16 %v2125_v55, %v2121_v54  ;;  %v2129_v2 = vld [vmem:[#allocation4 + $0x140] sm:$0xff]  ;;  %v2347_v54 = vld [vmem:[#allocation7 + $0x50] sm:$0xff] }
 0x1da   :  { %v1245_v9 = vadd.f32 %v3494_v1, %v1175_v52  ;;  %v5016_v52 = vpack.c.bf16 %v2126_v49, %v2122_v48  ;;  %v5020_v1 = vpack.c.bf16 %v2134_v60, %v2130_v59  ;;  %v5022_v11 = vpack.c.bf16 %v2133_v3, %v2129_v2  ;;  %v2342_v48 = vld [vmem:[#allocation7 + $0x28] sm:$0xff]  ;;  %v2343_v55 = vld [vmem:[#allocation7 + $0x30] sm:$0xff]  ;;  %v2348_v59 = vld [vmem:[#allocation7 + $0x58] sm:$0xff] }
 0x1db   :  { %v5097_v51 = vpack.c.bf16 %v2342_v48, %v2339_v44  ;;  %v5068_v56 = vpack.c.bf16 %v2347_v54, %v2344_v53  ;;  %v5070_v61 = vpack.c.bf16 %v2346_v57, %v2343_v55  ;;  %v5100_v62 = vpack.c.bf16 %v2348_v59, %v2345_v58  ;;  %v2352_v2 = vld [vmem:[#allocation7 + $0x78] sm:$0xff]  ;;  %v2351_v3 = vld [vmem:[#allocation7 + $0x70] sm:$0xff]  ;;  %v2357_v12 = vld [vmem:[#allocation7 + $0xa0] sm:$0xff] }
 0x1dc   :  { %v5838_v17 = vadd.f32 %v3529_v7, %v1245_v9  ;;  %5017 = vmatprep.subr.bf16.mxu1 %v5016_v52  ;;  %v2138_v7 = vld [vmem:[#allocation4 + $0x188] sm:$0xff]  ;;  %v2140_v9 = vld [vmem:[#allocation4 + $0x198] sm:$0xff] }
 0x1dd   :  { %5019 = vmatpush1.bf16.msra.mxu1 %v5018_v63  ;;  %v5024_v13 = vpack.c.bf16 %v2142_v8, %v2138_v7  ;;  %v5056_v18 = vpack.c.bf16 %v2144_v10, %v2140_v9  ;;  %v2350_v63 = vld [vmem:[#allocation7 + $0x68] sm:$0xff]  ;;  %v5103_v8 = vpack.c.bf16 %v2354_v4, %v2351_v3  ;;  %v2355_v9 = vld [vmem:[#allocation7 + $0x90] sm:$0xff]  ;;  %v5076_v10 = vpack.c.bf16 %v2359_v6, %v2356_v5  ;;  %v2380_v44 = vld [vmem:[#allocation7 + $0x158] sm:$0xff] }
 0x1de   :  { %5021 = vmatprep.subr.bf16.mxu1 %v5020_v1  ;;  %v5072_v1 = vpack.c.bf16 %v2353_v0, %v2350_v63  ;;  %v2379_v48 = vld [vmem:[#allocation7 + $0x150] sm:$0xff] }
 0x1df   :  { %5057 = vmatprep.subr.bf16.mxu0 %v5056_v18 }
 0x1e0   :  { %5059 = vmatpush1.bf16.msra.mxu0 %v5058_v25  ;;  %v2371_v25 = vld [vmem:[#allocation7 + $0x110] sm:$0xff] }
 0x1e1   :  { %5023 = vmatpush1.bf16.msra.mxu1 %v5022_v11  ;;  %5061 = vmatprep.subr.bf16.mxu0 %v5060_v30  ;;  %v2358_v11 = vld [vmem:[#allocation7 + $0xa8] sm:$0xff] }
 0x1e2   :  { %5025 = vmatprep.subr.bf16.mxu1 %v5024_v13  ;;  %v2360_v13 = vld [vmem:[#allocation7 + $0xb8] sm:$0xff]  ;;  %v5078_v16 = vpack.c.bf16 %v2358_v11, %v2355_v9 }
 0x1e3   :  { %v5106_v18 = vpack.c.bf16 %v2360_v13, %v2357_v12 }
 0x1e4   :  { %5063 = vmatpush1.bf16.msra.mxu0 %v5062_v34  ;;  %v2374_v34 = vld [vmem:[#allocation7 + $0x128] sm:$0xff] }
 0x1e5   :  { %5027 = vmatpush1.bf16.msra.mxu1 %v5026_v24  ;;  %5096 = vmatprep.subr.bf16.mxu0 %v5553_v36  ;;  %v2368_v24 = vld [vmem:[#allocation7 + $0xf8] sm:$0xff] }
 0x1e6   :  { %5029 = vmatprep.subr.bf16.mxu1 %v5028_v26  ;;  %v5082_v26 = vpack.c.bf16 %v2364_v21, %v2361_v19  ;;  %v5084_v30 = vpack.c.bf16 %v2371_v25, %v2368_v24  ;;  %v2542_v24 = vld [vmem:[#allocation10 + $0x8] sm:$0xff] }
 0x1e7   :  { %2311 = vmatmul.mubr.f32.vlgmr.msra.gmra.mrb[20].mxu0 %v2088_v50 }
 0x1e8   :  { %5098 = vmatpush3.bf16.msra.mxu0 %v5097_v51  ;;  %4117 = vmatprep.mubr.msk.f32.mxu0 %vm5554_vm0, %v5555_v28  ;;  %v2381_v51 = vld [vmem:[#allocation7 + $0x160] sm:$0xff] }
 0x1e9   :  { %5031 = vmatpush1.bf16.msra.mxu1 %v5030_v33  ;;  %5099 = vmatprep.subr.bf16.mxu0 %v5553_v36  ;;  %v2372_v33 = vld [vmem:[#allocation7 + $0x118] sm:$0xff] }
 0x1ea   :  { %5065 = vmatprep.subr.bf16.mxu1 %v5064_v41  ;;  %v5112_v38 = vpack.c.bf16 %v2372_v33, %v2369_v32  ;;  %v2376_v41 = vld [vmem:[#allocation7 + $0x138] sm:$0xff]  ;;  %v2545_v33 = vld [vmem:[#allocation10 + $0x20] sm:$0xff] }
 0x1ec   :  { %2240 = vmatmul.mubr.f32.vlgmr.msra.gmra.mrb[18].mxu1 %v2088_v50  ;;  %5101 = vmatpush3.bf16.msra.mxu0 %v5100_v62  ;;  %v2382_v50 = vld [vmem:[#allocation7 + $0x168] sm:$0xff] }
 0x1ed   :  { %5067 = vmatpush1.bf16.msra.mxu1 %v5066_v47  ;;  %2449 = vmatprep.mubr.f32.mxu1 %v5555_v28  ;;  %v5115_v47 = vpack.c.bf16 %v2378_v43, %v2375_v42  ;;  %v5094_v53 = vpack.c.bf16 %v2382_v50, %v2379_v48  ;;  %v2551_v43 = vld [vmem:[#allocation10 + $0x50] sm:$0xff]  ;;  %v2556_v50 = vld [vmem:[#allocation10 + $0x78] sm:$0xff] }
 0x1ee   :  { %5069 = vmatprep.subr.bf16.mxu1 %v5068_v56  ;;  %5102 = vmatprep.subr.bf16.mxu0 %v5553_v36 }
 0x1f0   :  { %5104 = vmatpush3.bf16.msra.mxu0 %v5103_v8 }
 0x1f1   :  { %5071 = vmatpush1.bf16.msra.mxu1 %v5070_v61  ;;  %5105 = vmatprep.subr.bf16.mxu0 %v5553_v36 }
 0x1f2   :  { %5073 = vmatprep.subr.bf16.mxu1 %v5072_v1 }
 0x1f4   :  { %5107 = vmatpush3.bf16.msra.mxu0 %v5106_v18 }
 0x1f5   :  { %5108 = vmatprep.subr.bf16.mxu0 %v5553_v36 }
 0x1f6   :  { %v3562_v35 = vpop.f32.mrb[8].mxu0 }
 0x1f7   :  { %v3563_v39 = vpop.f32.mrb[9].mxu0  ;;  %v3597_v40 = vpop.f32.mrb[8].mxu1 }
 0x1f8   :  { %v3564_v45 = vadd.f32 %v3563_v39, %v3562_v35  ;;  %v3598_v46 = vpop.f32.mrb[9].mxu1  ;;  %v2377_v35 = vld [vmem:[#allocation7 + $0x140] sm:$0xff]  ;;  %5110 = vmatpush3.bf16.msra.mxu0 %v5109_v27 }
 0x1f9   :  { %v3599_v49 = vadd.f32 %v3598_v46, %v3597_v40  ;;  %v2373_v39 = vld [vmem:[#allocation7 + $0x120] sm:$0xff]  ;;  %5111 = vmatprep.subr.bf16.mxu0 %v5553_v36  ;;  %v5088_v40 = vpack.c.bf16 %v2377_v35, %v2374_v34  ;;  %v2546_v34 = vld [vmem:[#allocation10 + $0x28] sm:$0xff] }
 0x1fa   :  { %v1385_v52 = vadd.f32 %v3564_v45, %v5838_v17  ;;  %v2349_v17 = vld [vmem:[#allocation7 + $0x60] sm:$0xff]  ;;  %v2383_v45 = vld [vmem:[#allocation7 + $0x170] sm:$0xff]  ;;  %v5090_v46 = vpack.c.bf16 %v2376_v41, %v2373_v39  ;;  %v5874_v35 = vpack.c.bf16 %v2546_v34, %v2545_v33 }
 0x1fb   :  { %v5074_v7 = vpack.c.bf16 %v2352_v2, %v2349_v17  ;;  %v2550_v41 = vld [vmem:[#allocation10 + $0x48] sm:$0xff] }
 0x1fc   :  { %v5845_v60 = vadd.f32 %v3599_v49, %v1385_v52  ;;  %5113 = vmatpush3.bf16.msra.mxu0 %v5112_v38  ;;  %v5092_v49 = vpack.c.bf16 %v2383_v45, %v2380_v44  ;;  %v2384_v52 = vld [vmem:[#allocation7 + $0x178] sm:$0xff] }
 0x1fd   :  { %5075 = vmatpush1.bf16.msra.mxu1 %v5074_v7  ;;  %5114 = vmatprep.subr.bf16.mxu0 %v5553_v36  ;;  %v5118_v54 = vpack.c.bf16 %v2384_v52, %v2381_v51  ;;  %v2548_v38 = vld [vmem:[#allocation10 + $0x38] sm:$0xff] }
 0x1fe   :  { %5077 = vmatprep.subr.bf16.mxu1 %v5076_v10  ;;  %v2552_v44 = vld [vmem:[#allocation10 + $0x58] sm:$0xff] }
 0x1ff   :  { %v5892_v45 = vpack.c.bf16 %v2552_v44, %v2551_v43  ;;  %v2540_v52 = vld [vmem:[%s6124_s3] sm:$0xff] }
 0x200   :  { %5116 = vmatpush3.bf16.msra.mxu0 %v5115_v47  ;;  %v2554_v47 = vld [vmem:[#allocation10 + $0x68] sm:$0xff]  ;;  %v2640_v44 = vld [vmem:[%s6123_s2] sm:$0xff] }
 0x201   :  { %5079 = vmatpush1.bf16.msra.mxu1 %v5078_v16  ;;  %5117 = vmatprep.subr.bf16.mxu0 %v5553_v36 }
 0x202   :  { %5081 = vmatprep.subr.bf16.mxu1 %v5080_v20 }
 0x204   :  { %5119 = vmatpush3.bf16.msra.mxu0 %v5118_v54 }
 0x205   :  { %5083 = vmatpush1.bf16.msra.mxu1 %v5082_v26  ;;  %5144 = vmatprep.subr.bf16.mxu0 %v5553_v36  ;;  %v5860_v26 = vpack.c.bf16 %v2542_v24, %v2541_v23  ;;  %v6063_v23 = vld [vmem:[#allocation12] ss:$0 sm:$0xff] }
 0x206   :  { %5085 = vmatprep.subr.bf16.mxu1 %v5084_v30  ;;  %v2543_v30 = vld [vmem:[#allocation10 + $0x10] sm:$0xff] }
 0x207   :  { %v5864_v32 = vpack.c.bf16 %v2544_v31, %v2543_v30 }
 0x209   :  { %5087 = vmatpush1.bf16.msra.mxu1 %v5086_v37  ;;  %v2547_v37 = vld [vmem:[#allocation10 + $0x30] sm:$0xff] }
 0x20a   :  { %5089 = vmatprep.subr.bf16.mxu1 %v5088_v40  ;;  %v5880_v39 = vpack.c.bf16 %v2548_v38, %v2547_v37  ;;  %v2549_v40 = vld [vmem:[#allocation10 + $0x40] sm:$0xff] }
 0x20b   :  { %v5886_v42 = vpack.c.bf16 %v2550_v41, %v2549_v40 }
 0x20d   :  { %5091 = vmatpush1.bf16.msra.mxu1 %v5090_v46  ;;  %v2553_v46 = vld [vmem:[#allocation10 + $0x60] sm:$0xff] }
 0x20e   :  { %5093 = vmatprep.subr.bf16.mxu1 %v5092_v49  ;;  %v5898_v48 = vpack.c.bf16 %v2554_v47, %v2553_v46  ;;  %v2555_v49 = vld [vmem:[#allocation10 + $0x70] sm:$0xff] }
 0x20f   :  { %v5904_v51 = vpack.c.bf16 %v2556_v50, %v2555_v49 }
 0x211   :  { %5095 = vmatpush1.bf16.msra.mxu1 %v5094_v53  ;;  %v3236_v53 = vld [vmem:[%s6124_s3 + $0x8] sm:$0xff] }
 0x212   :  { %5120 = vmatprep.subr.bf16.mxu1 %v5553_v36 }
 0x216   :  { %v3632_v55 = vpop.f32.mrb[10].mxu0 }
 0x217   :  { %v3633_v56 = vpop.f32.mrb[11].mxu0  ;;  %v3667_v57 = vpop.f32.mrb[10].mxu1 }
 0x218   :  { %v3634_v58 = vadd.f32 %v3633_v56, %v3632_v55  ;;  %v3668_v59 = vpop.f32.mrb[11].mxu1  ;;  %v3238_v56 = vld [vmem:[%s6124_s3 + $0x10] sm:$0xff] }
 0x219   :  { %v3669_v61 = vadd.f32 %v3668_v59, %v3667_v57  ;;  %v3240_v57 = vld [vmem:[%s6124_s3 + $0x18] sm:$0xff]  ;;  %v3244_v59 = vld [vmem:[%s6124_s3 + $0x28] sm:$0xff] }
 0x21a   :  { %v1525_v62 = vadd.f32 %v3634_v58, %v5845_v60  ;;  %v3242_v58 = vld [vmem:[%s6124_s3 + $0x20] sm:$0xff] }
 0x21c   :  { %v1595_v63 = vadd.f32 %v3669_v61, %v1525_v62  ;;  %v3248_v61 = vld [vmem:[%s6124_s3 + $0x38] sm:$0xff]  ;;  %v2155_v62 = vlaneseq }
 0x236   :  { %v3702_v0 = vpop.f32.mrb[12].mxu0 }
 0x237   :  { %v3703_v17 = vpop.f32.mrb[13].mxu0  ;;  %v3737_v1 = vpop.f32.mrb[12].mxu1 }
 0x238   :  { %v3704_v2 = vadd.f32 %v3703_v17, %v3702_v0  ;;  %v3738_v3 = vpop.f32.mrb[13].mxu1 }
 0x239   :  { %v3739_v4 = vadd.f32 %v3738_v3, %v3737_v1 }
 0x23a   :  { %v1665_v5 = vadd.f32 %v3704_v2, %v1595_v63  ;;  %v6046_v63 = vshrl.u32 %v2155_v62, 7  ;;  %v6053_v2 = vld [vmem:[#allocation9] sm:$0x7] }
 0x23c   :  { %v1735_v6 = vadd.f32 %v3739_v4, %v1665_v5  ;;  %v2165_v0 = vsub.s32 2, %v6046_v63  ;;  %v2157_v17 = vsub.s32 0, %v6046_v63 }
 0x23e   :  { %v2322_v4 = vrot.slane %v6053_v2, %v2157_v17 }
 0x256   :  { %v3772_v7 = vpop.f32.mrb[14].mxu0 }
 0x257   :  { %v3773_v8 = vpop.f32.mrb[15].mxu0  ;;  %v3807_v9 = vpop.f32.mrb[14].mxu1 }
 0x258   :  { %v3774_v10 = vadd.f32 %v3773_v8, %v3772_v7  ;;  %v3808_v11 = vpop.f32.mrb[15].mxu1 }
 0x259   :  { %v3809_v12 = vadd.f32 %v3808_v11, %v3807_v9 }
 0x25a   :  { %v1805_v13 = vadd.f32 %v3774_v10, %v1735_v6  ;;  %v2330_v6 = vrot.slane %v6053_v2, %v2165_v0 }
 0x25c   :  { %v1875_v14 = vadd.f32 %v3809_v12, %v1805_v13 }
 0x276   :  { %v3842_v15 = vpop.f32.mrb[16].mxu0 }
 0x277   :  { %v3843_v16 = vpop.f32.mrb[17].mxu0  ;;  %v3877_v60 = vpop.f32.mrb[16].mxu1 }
 0x278   :  { %v3844_v18 = vadd.f32 %v3843_v16, %v3842_v15  ;;  %v3878_v19 = vpop.f32.mrb[17].mxu1 }
 0x279   :  { %v3879_v20 = vadd.f32 %v3878_v19, %v3877_v60  ;;  %v2169_v19 = vsub.s32 3, %v6046_v63 }
 0x27a   :  { %v1945_v21 = vadd.f32 %v3844_v18, %v1875_v14 }
 0x27c   :  { %v2015_v22 = vadd.f32 %v3879_v20, %v1945_v21 }
 0x296   :  { %v2084_v25 = vpop.f32.mrb[18].mxu0 }
 0x297   :  { %v2085_v27 = vadd.f32 %v2084_v25, %v2015_v22  ;;  %v4084_v29 = vpop.f32.mrb[19].mxu0 }
 0x299   :  { %2450 = vmatmul.mubr.f32.vlgmr.msra.gmra.mrb[18].mxu1 %v2085_v27  ;;  %4118 = vmatmul.mubr.f32.vlgmr.msra.gmra.mrb[22].mxu0 %v2085_v27 }
 0x29a   :  { %5122 = vmatpush3.bf16.msra.mxu1 %v5860_v26  ;;  %5146 = vmatpush3.bf16.msra.mxu0 %v5860_v26 }
 0x29b   :  { %5123 = vmatprep.subr.bf16.mxu1 %v5553_v36  ;;  %5147 = vmatprep.subr.bf16.mxu0 %v5553_v36 }
 0x29c   :  { %4152 = vmatprep.mubr.msk.f32.mxu1 %vm5554_vm0, %v5555_v28  ;;  %4187 = vmatprep.mubr.msk.f32.mxu0 %vm5554_vm0, %v5555_v28 }
 0x29e   :  { %5125 = vmatpush3.bf16.msra.mxu1 %v5864_v32  ;;  %5149 = vmatpush3.bf16.msra.mxu0 %v5864_v32 }
 0x29f   :  { %5126 = vmatprep.subr.bf16.mxu1 %v5553_v36  ;;  %5150 = vmatprep.subr.bf16.mxu0 %v5553_v36 }
 0x2a2   :  { %5128 = vmatpush3.bf16.msra.mxu1 %v5874_v35  ;;  %5152 = vmatpush3.bf16.msra.mxu0 %v5874_v35 }
 0x2a3   :  { %5129 = vmatprep.subr.bf16.mxu1 %v5553_v36  ;;  %5153 = vmatprep.subr.bf16.mxu0 %v5553_v36 }
 0x2a6   :  { %5131 = vmatpush3.bf16.msra.mxu1 %v5880_v39  ;;  %5155 = vmatpush3.bf16.msra.mxu0 %v5880_v39 }
 0x2a7   :  { %5132 = vmatprep.subr.bf16.mxu1 %v5553_v36  ;;  %5156 = vmatprep.subr.bf16.mxu0 %v5553_v36 }
 0x2aa   :  { %5134 = vmatpush3.bf16.msra.mxu1 %v5886_v42  ;;  %5158 = vmatpush3.bf16.msra.mxu0 %v5886_v42 }
 0x2ab   :  { %5135 = vmatprep.subr.bf16.mxu1 %v5553_v36  ;;  %5159 = vmatprep.subr.bf16.mxu0 %v5553_v36 }
 0x2ae   :  { %5137 = vmatpush3.bf16.msra.mxu1 %v5892_v45  ;;  %5161 = vmatpush3.bf16.msra.mxu0 %v5892_v45 }
 0x2af   :  { %5138 = vmatprep.subr.bf16.mxu1 %v5553_v36  ;;  %5162 = vmatprep.subr.bf16.mxu0 %v5553_v36 }
 0x2b2   :  { %5140 = vmatpush3.bf16.msra.mxu1 %v5898_v48  ;;  %5164 = vmatpush3.bf16.msra.mxu0 %v5898_v48 }
 0x2b3   :  { %5141 = vmatprep.subr.bf16.mxu1 %v5553_v36  ;;  %5165 = vmatprep.subr.bf16.mxu0 %v5553_v36 }
 0x2b6   :  { %5143 = vmatpush3.bf16.msra.mxu1 %v5904_v51  ;;  %5167 = vmatpush3.bf16.msra.mxu0 %v5904_v51 }
 0x2b7   :  { %5168 = vmatprep.subr.bf16.mxu1 %v5553_v36  ;;  %5192 = vmatprep.subr.bf16.mxu0 %v5553_v36 }
 0x2b9   :  { %4153 = vmatmul.mubr.f32.vlgmr.msra.gmra.mrb[20].mxu1 %v2540_v52  ;;  %4188 = vmatmul.mubr.f32.vlgmr.msra.gmra.mrb[24].mxu0 %v3236_v53 }
 0x2ba   :  { %5170 = vmatpush3.bf16.msra.mxu1 %v5860_v26  ;;  %5194 = vmatpush3.bf16.msra.mxu0 %v5860_v26  ;;  %v5942_v54 = vpop.f32.mrb[20].mxu0 }
 0x2bb   :  { %5171 = vmatprep.subr.bf16.mxu1 %v5553_v36  ;;  %5195 = vmatprep.subr.bf16.mxu0 %v5553_v36  ;;  %v5946_v55 = vpop.f32.mrb[21].mxu0 }
 0x2bc   :  { %4222 = vmatprep.mubr.msk.f32.mxu1 %vm5554_vm0, %v5555_v28  ;;  %4257 = vmatprep.mubr.msk.f32.mxu0 %vm5554_vm0, %v5555_v28 }
 0x2be   :  { %5173 = vmatpush3.bf16.msra.mxu1 %v5864_v32  ;;  %5197 = vmatpush3.bf16.msra.mxu0 %v5864_v32 }
 0x2bf   :  { %5174 = vmatprep.subr.bf16.mxu1 %v5553_v36  ;;  %5198 = vmatprep.subr.bf16.mxu0 %v5553_v36 }
 0x2c2   :  { %5176 = vmatpush3.bf16.msra.mxu1 %v5874_v35  ;;  %5200 = vmatpush3.bf16.msra.mxu0 %v5874_v35 }
 0x2c3   :  { %5177 = vmatprep.subr.bf16.mxu1 %v5553_v36  ;;  %5201 = vmatprep.subr.bf16.mxu0 %v5553_v36 }
 0x2c6   :  { %5179 = vmatpush3.bf16.msra.mxu1 %v5880_v39  ;;  %5203 = vmatpush3.bf16.msra.mxu0 %v5880_v39 }
 0x2c7   :  { %5180 = vmatprep.subr.bf16.mxu1 %v5553_v36  ;;  %5204 = vmatprep.subr.bf16.mxu0 %v5553_v36 }
 0x2ca   :  { %5182 = vmatpush3.bf16.msra.mxu1 %v5886_v42  ;;  %5206 = vmatpush3.bf16.msra.mxu0 %v5886_v42 }
 0x2cb   :  { %5183 = vmatprep.subr.bf16.mxu1 %v5553_v36  ;;  %5207 = vmatprep.subr.bf16.mxu0 %v5553_v36 }
 0x2ce   :  { %5185 = vmatpush3.bf16.msra.mxu1 %v5892_v45  ;;  %5209 = vmatpush3.bf16.msra.mxu0 %v5892_v45 }
 0x2cf   :  { %5186 = vmatprep.subr.bf16.mxu1 %v5553_v36  ;;  %5210 = vmatprep.subr.bf16.mxu0 %v5553_v36 }
 0x2d2   :  { %5188 = vmatpush3.bf16.msra.mxu1 %v5898_v48  ;;  %5212 = vmatpush3.bf16.msra.mxu0 %v5898_v48 }
 0x2d3   :  { %5189 = vmatprep.subr.bf16.mxu1 %v5553_v36  ;;  %5213 = vmatprep.subr.bf16.mxu0 %v5553_v36 }
 0x2d6   :  { %5191 = vmatpush3.bf16.msra.mxu1 %v5904_v51  ;;  %5215 = vmatpush3.bf16.msra.mxu0 %v5904_v51 }
 0x2d7   :  { %5216 = vmatprep.subr.bf16.mxu1 %v5553_v36  ;;  %5240 = vmatprep.subr.bf16.mxu0 %v5553_v36 }
 0x2d9   :  { %4223 = vmatmul.mubr.f32.vlgmr.msra.gmra.mrb[22].mxu1 %v3238_v56  ;;  %4258 = vmatmul.mubr.f32.vlgmr.msra.gmra.mrb[26].mxu0 %v3240_v57 }
 0x2da   :  { %5218 = vmatpush3.bf16.msra.mxu1 %v5860_v26  ;;  %5242 = vmatpush3.bf16.msra.mxu0 %v5860_v26 }
 0x2db   :  { %5219 = vmatprep.subr.bf16.mxu1 %v5553_v36  ;;  %5243 = vmatprep.subr.bf16.mxu0 %v5553_v36 }
 0x2dc   :  { %4292 = vmatprep.mubr.msk.f32.mxu1 %vm5554_vm0, %v5555_v28  ;;  %4327 = vmatprep.mubr.msk.f32.mxu0 %vm5554_vm0, %v5555_v28 }
 0x2de   :  { %5221 = vmatpush3.bf16.msra.mxu1 %v5864_v32  ;;  %5245 = vmatpush3.bf16.msra.mxu0 %v5864_v32 }
 0x2df   :  { %5222 = vmatprep.subr.bf16.mxu1 %v5553_v36  ;;  %5246 = vmatprep.subr.bf16.mxu0 %v5553_v36 }
 0x2e2   :  { %5224 = vmatpush3.bf16.msra.mxu1 %v5874_v35  ;;  %5248 = vmatpush3.bf16.msra.mxu0 %v5874_v35 }
 0x2e3   :  { %5225 = vmatprep.subr.bf16.mxu1 %v5553_v36  ;;  %5249 = vmatprep.subr.bf16.mxu0 %v5553_v36 }
 0x2e6   :  { %5227 = vmatpush3.bf16.msra.mxu1 %v5880_v39  ;;  %5251 = vmatpush3.bf16.msra.mxu0 %v5880_v39 }
 0x2e7   :  { %5228 = vmatprep.subr.bf16.mxu1 %v5553_v36  ;;  %5252 = vmatprep.subr.bf16.mxu0 %v5553_v36 }
 0x2ea   :  { %5230 = vmatpush3.bf16.msra.mxu1 %v5886_v42  ;;  %5254 = vmatpush3.bf16.msra.mxu0 %v5886_v42 }
 0x2eb   :  { %5231 = vmatprep.subr.bf16.mxu1 %v5553_v36  ;;  %5255 = vmatprep.subr.bf16.mxu0 %v5553_v36 }
 0x2ee   :  { %5233 = vmatpush3.bf16.msra.mxu1 %v5892_v45  ;;  %5257 = vmatpush3.bf16.msra.mxu0 %v5892_v45 }
 0x2ef   :  { %5234 = vmatprep.subr.bf16.mxu1 %v5553_v36  ;;  %5258 = vmatprep.subr.bf16.mxu0 %v5553_v36 }
 0x2f2   :  { %5236 = vmatpush3.bf16.msra.mxu1 %v5898_v48  ;;  %5260 = vmatpush3.bf16.msra.mxu0 %v5898_v48 }
 0x2f3   :  { %5237 = vmatprep.subr.bf16.mxu1 %v5553_v36  ;;  %5261 = vmatprep.subr.bf16.mxu0 %v5553_v36 }
 0x2f6   :  { %5239 = vmatpush3.bf16.msra.mxu1 %v5904_v51  ;;  %5263 = vmatpush3.bf16.msra.mxu0 %v5904_v51 }
 0x2f7   :  { %5264 = vmatprep.subr.bf16.mxu1 %v5553_v36  ;;  %5288 = vmatprep.subr.bf16.mxu0 %v5553_v36 }
 0x2f9   :  { %4293 = vmatmul.mubr.f32.vlgmr.msra.gmra.mrb[24].mxu1 %v3242_v58  ;;  %4328 = vmatmul.mubr.f32.vlgmr.msra.gmra.mrb[28].mxu0 %v3244_v59 }
 0x2fa   :  { %5266 = vmatpush3.bf16.msra.mxu1 %v5860_v26  ;;  %5290 = vmatpush3.bf16.msra.mxu0 %v5860_v26 }
 0x2fb   :  { %5267 = vmatprep.subr.bf16.mxu1 %v5553_v36  ;;  %5291 = vmatprep.subr.bf16.mxu0 %v5553_v36 }
 0x2fc   :  { %4362 = vmatprep.mubr.msk.f32.mxu1 %vm5554_vm0, %v5555_v28  ;;  %4397 = vmatprep.mubr.msk.f32.mxu0 %vm5554_vm0, %v5555_v28  ;;  %v3246_v28 = vld [vmem:[%s6124_s3 + $0x30] sm:$0xff] }
 0x2fe   :  { %5269 = vmatpush3.bf16.msra.mxu1 %v5864_v32  ;;  %5293 = vmatpush3.bf16.msra.mxu0 %v5864_v32 }
 0x2ff   :  { %5270 = vmatprep.subr.bf16.mxu1 %v5553_v36  ;;  %5294 = vmatprep.subr.bf16.mxu0 %v5553_v36 }
 0x302   :  { %5272 = vmatpush3.bf16.msra.mxu1 %v5874_v35  ;;  %5296 = vmatpush3.bf16.msra.mxu0 %v5874_v35 }
 0x303   :  { %5273 = vmatprep.subr.bf16.mxu1 %v5553_v36  ;;  %5297 = vmatprep.subr.bf16.mxu0 %v5553_v36 }
 0x306   :  { %5275 = vmatpush3.bf16.msra.mxu1 %v5880_v39  ;;  %5299 = vmatpush3.bf16.msra.mxu0 %v5880_v39 }
 0x307   :  { %5276 = vmatprep.subr.bf16.mxu1 %v5553_v36  ;;  %5300 = vmatprep.subr.bf16.mxu0 %v5553_v36 }
 0x30a   :  { %5278 = vmatpush3.bf16.msra.mxu1 %v5886_v42  ;;  %5302 = vmatpush3.bf16.msra.mxu0 %v5886_v42 }
 0x30b   :  { %5279 = vmatprep.subr.bf16.mxu1 %v5553_v36  ;;  %5303 = vmatprep.subr.bf16.mxu0 %v5553_v36 }
 0x30e   :  { %5281 = vmatpush3.bf16.msra.mxu1 %v5892_v45  ;;  %5305 = vmatpush3.bf16.msra.mxu0 %v5892_v45  ;;  %v3237_v45 = vld [vmem:[%s6123_s2 + $0x8] sm:$0xff] }
 0x30f   :  { %5282 = vmatprep.subr.bf16.mxu1 %v5553_v36  ;;  %5306 = vmatprep.subr.bf16.mxu0 %v5553_v36 }
 0x312   :  { %5284 = vmatpush3.bf16.msra.mxu1 %v5898_v48  ;;  %5308 = vmatpush3.bf16.msra.mxu0 %v5898_v48 }
 0x313   :  { %5285 = vmatprep.subr.bf16.mxu1 %v5553_v36  ;;  %5309 = vmatprep.subr.bf16.mxu0 %v5553_v36  ;;  %v6049_v36 = vld [vmem:[#allocation6] sm:$0xf] }
 0x314   :  { %v2166_v1 = vrot.slane %v6049_v36, %v2165_v0  ;;  %v2158_v3 = vrot.slane %v6049_v36, %v2157_v17  ;;  %v2170_v21 = vrot.slane %v6049_v36, %v2169_v19 }
 0x316   :  { %5287 = vmatpush3.bf16.msra.mxu1 %v5904_v51  ;;  %5311 = vmatpush3.bf16.msra.mxu0 %v5904_v51  ;;  %v2313_v5 = vadd.f32 %v5942_v54, %v2166_v1  ;;  %v5312_v7 = vadd.f32 %v2322_v4, %v2158_v3  ;;  %v6068_v27 = vadd.f32 %v5946_v55, %v2170_v21  ;;  %v3239_v4 = vld [vmem:[%s6123_s2 + $0x10] sm:$0xff] }
 0x318   :  { %v2336_v8 = vadd.f32 %v2330_v6, %v2313_v5  ;;  %v3241_v6 = vld [vmem:[%s6123_s2 + $0x18] sm:$0xff] }
 0x319   :  { %4363 = vmatmul.mubr.f32.vlgmr.msra.gmra.mrb[26].mxu1 %v3246_v28  ;;  %4398 = vmatmul.mubr.f32.vlgmr.msra.gmra.mrb[30].mxu0 %v3248_v61 }
 0x36c   :  { %v2451_v9 = vpop.f32.mrb[18].mxu1  ;;  %v2522_v10 = vpop.f32.mrb[22].mxu0 }
 0x36d   :  { %v5313_v11 = vadd.f32 %v5312_v7, %v2451_v9  ;;  %v2528_v12 = vadd.f32 %v2522_v10, %v2336_v8  ;;  %v6059_v13 = vpop.f32.mrb[19].mxu1  ;;  %v4119_v14 = vpop.f32.mrb[23].mxu0 }
 0x36f   :  { %v2529_v15 = vsub.f32 0.0, %v5313_v11 }
 0x371   :  { %v2530_v16 = vmul.f32 1.442695, %v2529_v15 }
 0x373   :  { %5334 = vpow2.f32 %v2530_v16 }
 0x374   :  { %5336 = vtanh.f32 %v2528_v12 }
 0x37d   :  { %v5335_v60 = vpop.eup %5334 }
 0x37e   :  { %v2532_v18 = vadd.f32 1.0, %v5335_v60  ;;  %v5337_v20 = vpop.eup %5336 }
 0x380   :  { %5338 = vrcp.f32 %v2532_v18 }
 0x38a   :  { %v5339_v22 = vpop.eup %5338 }
 0x38b   :  { %v6065_v24 = vmul.f32 %v5339_v22, %v5337_v20 }
 0x38c   :  { %v2630_v25 = vpop.f32.mrb[20].mxu1  ;;  %v2711_v26 = vpop.f32.mrb[24].mxu0 }
 0x38d   :  { %v2631_v29 = vadd.f32 %v6063_v23, %v2630_v25  ;;  %v2712_v30 = vadd.f32 %v6063_v23, %v2711_v26  ;;  %v4154_v31 = vpop.f32.mrb[21].mxu1  ;;  %v4189_v32 = vpop.f32.mrb[25].mxu0 }
 0x38f   :  { %v2634_v33 = vadd.f32 %v2631_v29, %v6068_v27  ;;  %v2715_v34 = vadd.f32 %v2712_v30, %v6068_v27 }
 0x391   :  { %v2635_v35 = vsub.f32 0.0, %v2634_v33  ;;  %v2716_v37 = vsub.f32 0.0, %v2715_v34  ;;  %v2161_v33 = vsub.s32 1, %v6046_v63  ;;  %v3243_v34 = vld [vmem:[%s6123_s2 + $0x20] sm:$0xff] }
 0x393   :  { %v2636_v38 = vmul.f32 1.442695, %v2635_v35  ;;  %v2717_v39 = vmul.f32 1.442695, %v2716_v37  ;;  %v2162_v37 = vrot.slane %v6049_v36, %v2161_v33 }
 0x395   :  { %5340 = vpow2.f32 %v2636_v38  ;;  %v3245_v38 = vld [vmem:[%s6123_s2 + $0x28] sm:$0xff] }
 0x396   :  { %5342 = vpow2.f32 %v2717_v39 }
 0x39f   :  { %v5341_v40 = vpop.eup %5340 }
 0x3a0   :  { %v5343_v41 = vpop.eup %5342  ;;  %v2638_v42 = vadd.f32 1.0, %v5341_v40 }
 0x3a1   :  { %v2719_v43 = vadd.f32 1.0, %v5343_v41 }
 0x3a2   :  { %5344 = vrcp.f32 %v2638_v42  ;;  %v2326_v42 = vrot.slane %v6053_v2, %v2161_v33 }
 0x3a3   :  { %5346 = vrcp.f32 %v2719_v43 }
 0x3ac   :  { %v5345_v46 = vpop.eup %5344  ;;  %v2793_v47 = vpop.f32.mrb[22].mxu1 }
 0x3ad   :  { %v2875_v48 = vpop.f32.mrb[26].mxu0  ;;  %v5347_v49 = vpop.eup %5346  ;;  %v2641_v50 = vmul.f32 %v5345_v46, %v2640_v44  ;;  %v2794_v51 = vadd.f32 %v6063_v23, %v2793_v47 }
 0x3ae   :  { %v2876_v52 = vadd.f32 %v6063_v23, %v2875_v48  ;;  %v4224_v53 = vpop.f32.mrb[23].mxu1  ;;  %v4259_v54 = vpop.f32.mrb[27].mxu0  ;;  %v2723_v55 = vmul.f32 %v5347_v49, %v3237_v45 }
 0x3af   :  { %v2797_v56 = vadd.f32 %v2794_v51, %v6068_v27 }
 0x3b0   :  { %v2879_v57 = vadd.f32 %v2876_v52, %v6068_v27  ;;  %v2724_v58 = vadd.f32 %v2723_v55, %v2641_v50  ;;  %v5314_v50 = vadd.f32 %v2326_v42, %v2162_v37 }
 0x3b1   :  { %v2798_v59 = vsub.f32 0.0, %v2797_v56 }
 0x3b2   :  { %v2880_v28 = vsub.f32 0.0, %v2879_v57  ;;  %v5315_v2 = vadd.f32 %v5314_v50, %v6059_v13  ;;  %v3249_v13 = vld [vmem:[%s6123_s2 + $0x38] sm:$0xff] }
 0x3b3   :  { %v2799_v61 = vmul.f32 1.442695, %v2798_v59 }
 0x3b4   :  { %v2881_v62 = vmul.f32 1.442695, %v2880_v28  ;;  %v2534_v56 = vsub.f32 0.0, %v5315_v2 }
 0x3b5   :  { %5348 = vpow2.f32 %v2799_v61 }
 0x3b6   :  { %5350 = vpow2.f32 %v2881_v62 }
 0x3bf   :  { %v5349_v0 = vpop.eup %5348 }
 0x3c0   :  { %v5351_v17 = vpop.eup %5350  ;;  %v2801_v1 = vadd.f32 1.0, %v5349_v0 }
 0x3c1   :  { %v2883_v3 = vadd.f32 1.0, %v5351_v17 }
 0x3c2   :  { %5352 = vrcp.f32 %v2801_v1 }
 0x3c3   :  { %5354 = vrcp.f32 %v2883_v3 }
 0x3cc   :  { %v5353_v5 = vpop.eup %5352  ;;  %v2957_v7 = vpop.f32.mrb[24].mxu1 }
 0x3cd   :  { %v3039_v8 = vpop.f32.mrb[28].mxu0  ;;  %v5355_v9 = vpop.eup %5354  ;;  %v2805_v10 = vmul.f32 %v5353_v5, %v3239_v4  ;;  %v2958_v11 = vadd.f32 %v6063_v23, %v2957_v7 }
 0x3ce   :  { %v3040_v12 = vadd.f32 %v6063_v23, %v3039_v8  ;;  %v4294_v14 = vpop.f32.mrb[25].mxu1  ;;  %v4329_v15 = vpop.f32.mrb[29].mxu0  ;;  %v2887_v60 = vmul.f32 %v5355_v9, %v3241_v6 }
 0x3cf   :  { %v2806_v16 = vadd.f32 %v2805_v10, %v2724_v58  ;;  %v2961_v18 = vadd.f32 %v2958_v11, %v6068_v27 }
 0x3d0   :  { %v3043_v19 = vadd.f32 %v3040_v12, %v6068_v27 }
 0x3d1   :  { %v2888_v20 = vadd.f32 %v2887_v60, %v2806_v16  ;;  %v2962_v21 = vsub.f32 0.0, %v2961_v18 }
 0x3d2   :  { %v3044_v22 = vsub.f32 0.0, %v3043_v19 }
 0x3d3   :  { %v2963_v25 = vmul.f32 1.442695, %v2962_v21 }
 0x3d4   :  { %v3045_v26 = vmul.f32 1.442695, %v3044_v22 }
 0x3d5   :  { %5356 = vpow2.f32 %v2963_v25 }
 0x3d6   :  { %5358 = vpow2.f32 %v3045_v26 }
 0x3df   :  { %v5357_v29 = vpop.eup %5356 }
 0x3e0   :  { %v5359_v30 = vpop.eup %5358  ;;  %v2965_v31 = vadd.f32 1.0, %v5357_v29 }
 0x3e1   :  { %v3047_v32 = vadd.f32 1.0, %v5359_v30 }
 0x3e2   :  { %5360 = vrcp.f32 %v2965_v31 }
 0x3e3   :  { %5362 = vrcp.f32 %v3047_v32 }
 0x3ec   :  { %v5361_v35 = vpop.eup %5360  ;;  %v3121_v39 = vpop.f32.mrb[26].mxu1 }
 0x3ed   :  { %v3203_v40 = vpop.f32.mrb[30].mxu0  ;;  %v5363_v41 = vpop.eup %5362  ;;  %v2969_v43 = vmul.f32 %v5361_v35, %v3243_v34  ;;  %v3122_v44 = vadd.f32 %v6063_v23, %v3121_v39 }
 0x3ee   :  { %v3204_v63 = vadd.f32 %v6063_v23, %v3203_v40  ;;  %v4364_v45 = vpop.f32.mrb[27].mxu1  ;;  %v4399_v46 = vpop.f32.mrb[31].mxu0  ;;  %v3051_v48 = vmul.f32 %v5363_v41, %v3245_v38  ;;  %v2535_v23 = vmul.f32 1.442695, %v2534_v56 }
 0x3ef   :  { %v2970_v47 = vadd.f32 %v2969_v43, %v2888_v20  ;;  %v3125_v36 = vadd.f32 %v3122_v44, %v6068_v27 }
 0x3f0   :  { %v3207_v49 = vadd.f32 %v3204_v63, %v6068_v27  ;;  %v3247_v27 = vld [vmem:[%s6123_s2 + $0x30] sm:$0xff] }
 0x3f1   :  { %v3052_v51 = vadd.f32 %v3051_v48, %v2970_v47  ;;  %v3126_v52 = vsub.f32 0.0, %v3125_v36 }
 0x3f2   :  { %v3208_v53 = vsub.f32 0.0, %v3207_v49 }
 0x3f3   :  { %v3127_v54 = vmul.f32 1.442695, %v3126_v52 }
 0x3f4   :  { %v3209_v55 = vmul.f32 1.442695, %v3208_v53 }
 0x3f5   :  { %5364 = vpow2.f32 %v3127_v54 }
 0x3f6   :  { %5366 = vpow2.f32 %v3209_v55 }
 0x3f7   :  { %5368 = vpow2.f32 %v2535_v23 }
 0x3ff   :  { %v5365_v57 = vpop.eup %5364 }
 0x400   :  { %v5367_v58 = vpop.eup %5366  ;;  %v3129_v59 = vadd.f32 1.0, %v5365_v57 }
 0x401   :  { %v3211_v28 = vadd.f32 1.0, %v5367_v58  ;;  %v5369_v61 = vpop.eup %5368 }
 0x402   :  { %5370 = vrcp.f32 %v3129_v59  ;;  %v2537_v4 = vadd.f32 1.0, %v5369_v61 }
 0x403   :  { %5372 = vrcp.f32 %v3211_v28 }
 0x404   :  { %5374 = vrcp.f32 %v2537_v4 }
 0x40c   :  { %v5371_v62 = vpop.eup %5370 }
 0x40d   :  { %v5373_v0 = vpop.eup %5372  ;;  %v3133_v17 = vmul.f32 %v5371_v62, %v3247_v27 }
 0x40e   :  { %v3215_v3 = vmul.f32 %v5373_v0, %v3249_v13  ;;  %v5375_v7 = vpop.eup %5374 }
 0x40f   :  { %v3134_v1 = vadd.f32 %v3133_v17, %v3052_v51 }
 0x411   :  { %v3216_v5 = vadd.f32 %v3215_v3, %v3134_v1 }
 0x413   :  { %v3218_v6 = vadd.f32 %v6065_v24, %v3216_v5 }
 0x415   :  { %3219 = vst [vmem:[%s6132_s11] sm:$0xff] %v3218_v6  ;;  %5376 = vtanh.f32 %v3218_v6 }
 0x41f   :  { %v5377_v8 = vpop.eup %5376 }
 0x420   :  { %v3221_v9 = vmul.f32 %v5377_v8, %v5375_v7 }
 0x422   :  { %3222 = vst [vmem:[%s6133_s12] sm:$0xff] %v3221_v9 }
 0x423   :  { %3231 = vsyncpa [#allocation3], 1 }
 0x424   :  { %3232 = vsyncpa [#allocation5], 1 }
 0x425   :  { %3233 = vsyncpa [#allocation8], 1 }
 0x426   :  { %3234 = vsyncpa [#allocation11], 1 }

</bundles_post_ra>
